<compile_context>
chip_gen: v6e
topology: v6e:2x2x1
jax: 0.10.0
libtpu: 0.0.40
codegen_flags: <defaults>
</compile_context>

<pallas_src>
import functools

import jax
import jax.numpy as jnp
from jax import lax
from jax.experimental import pallas as pl
from jax.experimental.pallas import tpu as pltpu


# ----------------------------------------------------------------------------
# In-kernel recurrence helpers (operate on Refs)
# ----------------------------------------------------------------------------
def _bidir_recurrence(x_ref, wih_f_ref, whh_f_ref, b_f_ref,
                      wih_b_ref, whh_b_ref, b_b_ref,
                      hf_ref, hb_ref, out_ref):
    """Fused forward+backward tanh recurrences over the full sequence held in VMEM.

    x_ref: (T, Bp, Dp). Weights are pre-transposed: wih (Dp, Hp), whh (Hp, Hp), b (1, Hp).
    hf_ref / hb_ref: (Bp, Hp) scratches carrying the two hidden states.
    out_ref: optional (T, Bp, 2*Hp) per-step output ([:, :, :Hp]=fwd, [:, :, Hp:]=bwd).
    """
    T = x_ref.shape[0]
    Hp = hf_ref.shape[-1]
    hf_ref[...] = jnp.zeros_like(hf_ref)
    hb_ref[...] = jnp.zeros_like(hb_ref)

    def step(t, carry):
        tb = T - 1 - t
        h_f = jnp.tanh(
            jnp.dot(x_ref[t], wih_f_ref[...], preferred_element_type=jnp.float32)
            + jnp.dot(hf_ref[...], whh_f_ref[...], preferred_element_type=jnp.float32)
            + b_f_ref[...])
        h_b = jnp.tanh(
            jnp.dot(x_ref[tb], wih_b_ref[...], preferred_element_type=jnp.float32)
            + jnp.dot(hb_ref[...], whh_b_ref[...], preferred_element_type=jnp.float32)
            + b_b_ref[...])
        hf_ref[...] = h_f
        hb_ref[...] = h_b
        if out_ref is not None:
            out_ref[t, :, 0:Hp] = h_f
            out_ref[tb, :, Hp:2 * Hp] = h_b
        return carry

    lax.fori_loop(0, T, step, 0, unroll=True)


def _unidir_recurrence(x_ref, wih_ref, whh_ref, b_ref, h_ref, out_ref):
    """Single-direction tanh recurrence over the full sequence held in VMEM."""
    T = x_ref.shape[0]
    h_ref[...] = jnp.zeros_like(h_ref)

    def step(t, carry):
        h = jnp.tanh(
            jnp.dot(x_ref[t], wih_ref[...], preferred_element_type=jnp.float32)
            + jnp.dot(h_ref[...], whh_ref[...], preferred_element_type=jnp.float32)
            + b_ref[...])
        h_ref[...] = h
        if out_ref is not None:
            out_ref[t, :, :] = h
        return carry

    lax.fori_loop(0, T, step, 0, unroll=True)


# ----------------------------------------------------------------------------
# Pallas kernels
# ----------------------------------------------------------------------------
def _bidir_layer_kernel(x_ref, wih_f, whh_f, b_f, wih_b, whh_b, b_b,
                        out_ref, hf, hb):
    _bidir_recurrence(x_ref, wih_f, whh_f, b_f, wih_b, whh_b, b_b, hf, hb, out_ref)


def _bidir_head_kernel(x_ref, wih_f, whh_f, b_f, wih_b, whh_b, b_b,
                       wfc_f, wfc_b, bfc, logits_ref, hf, hb):
    # Last layer: sequence output is never materialized; fc is fused on the final hiddens.
    _bidir_recurrence(x_ref, wih_f, whh_f, b_f, wih_b, whh_b, b_b, hf, hb, None)
    logits_ref[...] = (
        jnp.dot(hf[...], wfc_f[...], preferred_element_type=jnp.float32)
        + jnp.dot(hb[...], wfc_b[...], preferred_element_type=jnp.float32)
        + bfc[...])


def _unidir_layer_kernel(x_ref, wih, whh, b, out_ref, h):
    _unidir_recurrence(x_ref, wih, whh, b, h, out_ref)


def _unidir_head_kernel(x_ref, wih, whh, b, wfc, bfc, logits_ref, h):
    _unidir_recurrence(x_ref, wih, whh, b, h, None)
    logits_ref[...] = (
        jnp.dot(h[...], wfc[...], preferred_element_type=jnp.float32) + bfc[...])


# ----------------------------------------------------------------------------
# pallas_call wrappers (whole arrays resident in VMEM; no grid, no per-step launch)
# ----------------------------------------------------------------------------
def run_bidir_layer(x, wih_f, whh_f, b_f, wih_b, whh_b, b_b):
    T, Bp, _ = x.shape
    Hp = whh_f.shape[0]
    return pl.pallas_call(
        _bidir_layer_kernel,
        out_shape=jax.ShapeDtypeStruct((T, Bp, 2 * Hp), jnp.float32),
        scratch_shapes=[pltpu.VMEM((Bp, Hp), jnp.float32),
                        pltpu.VMEM((Bp, Hp), jnp.float32)],
    )(x, wih_f, whh_f, b_f, wih_b, whh_b, b_b)


def run_bidir_head(x, wih_f, whh_f, b_f, wih_b, whh_b, b_b, wfc_f, wfc_b, bfc):
    T, Bp, _ = x.shape
    Hp = whh_f.shape[0]
    Cp = wfc_f.shape[1]
    return pl.pallas_call(
        _bidir_head_kernel,
        out_shape=jax.ShapeDtypeStruct((Bp, Cp), jnp.float32),
        scratch_shapes=[pltpu.VMEM((Bp, Hp), jnp.float32),
                        pltpu.VMEM((Bp, Hp), jnp.float32)],
    )(x, wih_f, whh_f, b_f, wih_b, whh_b, b_b, wfc_f, wfc_b, bfc)


def run_unidir_layer(x, wih, whh, b):
    T, Bp, _ = x.shape
    Hp = whh.shape[0]
    return pl.pallas_call(
        _unidir_layer_kernel,
        out_shape=jax.ShapeDtypeStruct((T, Bp, Hp), jnp.float32),
        scratch_shapes=[pltpu.VMEM((Bp, Hp), jnp.float32)],
    )(x, wih, whh, b)


def run_unidir_head(x, wih, whh, b, wfc, bfc):
    T, Bp, _ = x.shape
    Hp = whh.shape[0]
    Cp = wfc.shape[1]
    return pl.pallas_call(
        _unidir_head_kernel,
        out_shape=jax.ShapeDtypeStruct((Bp, Cp), jnp.float32),
        scratch_shapes=[pltpu.VMEM((Bp, Hp), jnp.float32)],
    )(x, wih, whh, b, wfc, bfc)


# ----------------------------------------------------------------------------
# Wrapper-side weight prep (pre-transpose + zero-pad to 8x128-aligned tiles)
# ----------------------------------------------------------------------------
def _round_up(n, m):
    return ((n + m - 1) // m) * m


def _pad2(a, rows, cols):
    return jnp.pad(a, ((0, rows - a.shape[0]), (0, cols - a.shape[1])))


def _prep_direction_weights(w_ih, w_hh, b, Hp, H, split_bidir_input):
    """Transpose + zero-pad one direction's weights.

    Returns w_ihT (Din_p, Hp), w_hhT (Hp, Hp), b (1, Hp). When the layer input is a
    previous bidirectional layer's padded output ([fwd Hp | bwd Hp]), the two halves of
    W_ih are padded independently so their rows line up with that padded layout.
    """
    w_ihT = w_ih.T.astype(jnp.float32)
    if split_bidir_input:
        w_ihT_p = jnp.concatenate(
            [_pad2(w_ihT[:H], Hp, Hp), _pad2(w_ihT[H:], Hp, Hp)], axis=0)
    else:
        d_in = w_ihT.shape[0]
        w_ihT_p = _pad2(w_ihT, _round_up(d_in, 128), Hp)
    w_hhT_p = _pad2(w_hh.T.astype(jnp.float32), Hp, Hp)
    b_p = _pad2(b.astype(jnp.float32), 1, Hp)
    return w_ihT_p, w_hhT_p, b_p


def rnn_classifier_forward(text, params, *, num_layers, bidirectional):
    """Forward pass matching RNNClassifier.forward (eval mode)."""
    T, B = text.shape
    H = params["rnn"][0]["w_hh_f"].shape[0]
    C = params["fc_w"].shape[0]
    E = params["embedding"].shape[1]
    Bp = _round_up(B, 8)
    Hp = _round_up(H, 128)
    Ep = _round_up(E, 128)
    Cp = _round_up(C, 128)

    # Embedding lookup (glue, plain JAX gather), zero-padded to lane/sublane-dense tiles.
    x = params["embedding"][text].astype(jnp.float32)      # (T, B, E)
    x = jnp.pad(x, ((0, 0), (0, Bp - B), (0, Ep - E)))      # (T, Bp, Ep)

    # Pre-transposed + padded classifier weights (forward / backward halves split so the
    # in-kernel fused fc never slices or transposes).
    fc_wT = params["fc_w"].T.astype(jnp.float32)            # (H * num_dirs, C)
    if bidirectional:
        wfc_f = _pad2(fc_wT[:H], Hp, Cp)
        wfc_b = _pad2(fc_wT[H:], Hp, Cp)
    else:
        wfc = _pad2(fc_wT, Hp, Cp)
    bfc = _pad2(params["fc_b"].astype(jnp.float32), 1, Cp)

    logits_p = None
    for layer in range(num_layers):
        p = params["rnn"][layer]
        split_in = bidirectional and layer > 0
        last = layer == num_layers - 1
        wih_f, whh_f, b_f = _prep_direction_weights(
            p["w_ih_f"], p["w_hh_f"], p["b_f"], Hp, H, split_in)
        if bidirectional:
            wih_b, whh_b, b_b = _prep_direction_weights(
                p["w_ih_b"], p["w_hh_b"], p["b_b"], Hp, H, split_in)
            if last:
                logits_p = run_bidir_head(
                    x, wih_f, whh_f, b_f, wih_b, whh_b, b_b, wfc_f, wfc_b, bfc)
            else:
                x = run_bidir_layer(x, wih_f, whh_f, b_f, wih_b, whh_b, b_b)
        else:
            if last:
                logits_p = run_unidir_head(x, wih_f, whh_f, b_f, wfc, bfc)
            else:
                x = run_unidir_layer(x, wih_f, whh_f, b_f)

    # TODO(synk): nn.Dropout in training mode not implemented; eval-mode dropout == identity.
    return logits_p[:B, :C]


# ----------------------------------------------------------------------------
# Pure-JAX reference (for correctness checking)
# ----------------------------------------------------------------------------
def reference_forward(text, params, *, num_layers, bidirectional):
    x = params["embedding"][text]

    def run_dir(xs, w_ih, w_hh, b):
        T, B, _ = xs.shape
        H = w_ih.shape[0]
        h = jnp.zeros((B, H), jnp.float32)
        outs = []
        for t in range(T):
            h = jnp.tanh(xs[t] @ w_ih.T + h @ w_hh.T + b)
            outs.append(h)
        return jnp.stack(outs, axis=0), h

    h_fwd = h_bwd = None
    for layer in range(num_layers):
        p = params["rnn"][layer]
        out_f, h_fwd = run_dir(x, p["w_ih_f"], p["w_hh_f"], p["b_f"])
        if bidirectional:
            out_b_rev, h_bwd = run_dir(jnp.flip(x, 0), p["w_ih_b"], p["w_hh_b"], p["b_b"])
            x = jnp.concatenate([out_f, jnp.flip(out_b_rev, 0)], axis=-1)
        else:
            x = out_f
    hidden = jnp.concatenate([h_fwd, h_bwd], axis=1) if bidirectional else h_fwd
    return hidden @ params["fc_w"].T + params["fc_b"]


# ----------------------------------------------------------------------------
# Deterministic parameter init (shapes follow nn.Embedding / nn.RNN / nn.Linear)
# ----------------------------------------------------------------------------
def init_params(key, *, vocab_size, embedding_dim, hidden_dim, num_classes,
                num_layers, bidirectional):
    keys = jax.random.split(key, 4 + num_layers)
    scale = 1.0 / jnp.sqrt(hidden_dim)
    num_dirs = 2 if bidirectional else 1

    params = {
        "embedding": jax.random.normal(keys[0], (vocab_size, embedding_dim), jnp.float32),
        "rnn": [],
    }
    for layer in range(num_layers):
        lk = jax.random.split(keys[1 + layer], 12)
        d_in = embedding_dim if layer == 0 else hidden_dim * num_dirs

        def u(k, shape):
            return jax.random.uniform(k, shape, jnp.float32, -scale, scale)

        lp = {
            "w_ih_f": u(lk[0], (hidden_dim, d_in)),
            "w_hh_f": u(lk[1], (hidden_dim, hidden_dim)),
            # PyTorch keeps b_ih and b_hh separately; only their sum enters the math.
            "b_f": (u(lk[2], (hidden_dim,)) + u(lk[3], (hidden_dim,))).reshape(1, hidden_dim),
        }
        if bidirectional:
            lp.update({
                "w_ih_b": u(lk[4], (hidden_dim, d_in)),
                "w_hh_b": u(lk[5], (hidden_dim, hidden_dim)),
                "b_b": (u(lk[6], (hidden_dim,)) + u(lk[7], (hidden_dim,))).reshape(1, hidden_dim),
            })
        params["rnn"].append(lp)

    fc_in = hidden_dim * num_dirs
    fc_scale = 1.0 / jnp.sqrt(fc_in)
    params["fc_w"] = jax.random.uniform(keys[-2], (num_classes, fc_in), jnp.float32,
                                        -fc_scale, fc_scale)
    params["fc_b"] = jax.random.uniform(keys[-1], (1, num_classes), jnp.float32,
                                        -fc_scale, fc_scale)
    return params


# ----------------------------------------------------------------------------
if __name__ == "__main__":
    VOCAB = 50
    EMB = 16
    HID = 32
    CLASSES = 4
    LAYERS = 2
    BIDIR = True
    SEQ = 8
    BATCH = 2

    key = jax.random.PRNGKey(0)
    k_tok, k_par = jax.random.split(key)

    # (T, B) int32 token ids — seq-major like PyTorch nn.RNN default.
    text = jax.random.randint(k_tok, (SEQ, BATCH), 0, VOCAB, dtype=jnp.int32)

    params = init_params(
        k_par,
        vocab_size=VOCAB, embedding_dim=EMB, hidden_dim=HID,
        num_classes=CLASSES, num_layers=LAYERS, bidirectional=BIDIR,
    )

    fwd = functools.partial(rnn_classifier_forward, num_layers=LAYERS, bidirectional=BIDIR)
    logits = jax.block_until_ready(fwd(text, params))

    ref = reference_forward(text, params, num_layers=LAYERS, bidirectional=BIDIR)
    assert logits.shape == (BATCH, CLASSES), logits.shape
    assert jnp.allclose(logits, ref, rtol=1e-3, atol=1e-3), (logits, ref)

    print("KERNEL_OK")
</pallas_src>

<mosaic_0001>
module attributes {stable_mosaic.version = 11 : i64} {
  func.func @_bidir_layer_kernel(%arg0: memref<8x8x128xf32, #tpu.memory_space<vmem>>, %arg1: memref<128x128xf32, #tpu.memory_space<vmem>>, %arg2: memref<128x128xf32, #tpu.memory_space<vmem>>, %arg3: memref<1x128xf32, #tpu.memory_space<vmem>>, %arg4: memref<128x128xf32, #tpu.memory_space<vmem>>, %arg5: memref<128x128xf32, #tpu.memory_space<vmem>>, %arg6: memref<1x128xf32, #tpu.memory_space<vmem>>, %arg7: memref<8x8x256xf32, #tpu.memory_space<vmem>>, %arg8: memref<8x128xf32, #tpu.memory_space<vmem>>, %arg9: memref<8x128xf32, #tpu.memory_space<vmem>>) attributes {dimension_semantics = [], scalar_prefetch = 0 : i64, scratch_operands = 2 : i64, tpu.core_type = #tpu.core_type<tc>} {
    %cst = arith.constant 0.000000e+00 : f32
    %0 = vector.broadcast %cst : f32 to vector<8x128xf32>
    %c0 = arith.constant 0 : index
    %c0_0 = arith.constant 0 : index
    %1 = vector.load %arg8[%c0, %c0_0] : memref<8x128xf32, #tpu.memory_space<vmem>>, vector<8x128xf32>
    tpu.vector_store %arg8[%c0, %c0_0], %0 {strides = array<i32>} : memref<8x128xf32, #tpu.memory_space<vmem>>, vector<8x128xf32>,
    %cst_1 = arith.constant 0.000000e+00 : f32
    %2 = vector.broadcast %cst_1 : f32 to vector<8x128xf32>
    %c0_2 = arith.constant 0 : index
    %c0_3 = arith.constant 0 : index
    %3 = vector.load %arg9[%c0_2, %c0_3] : memref<8x128xf32, #tpu.memory_space<vmem>>, vector<8x128xf32>
    tpu.vector_store %arg9[%c0_2, %c0_3], %2 {strides = array<i32>} : memref<8x128xf32, #tpu.memory_space<vmem>>, vector<8x128xf32>,
    %c0_i32 = arith.constant 0 : i32
    %c7_i32 = arith.constant 7 : i32
    %4 = arith.subi %c7_i32, %c0_i32 : i32
    %5 = arith.index_cast %c0_i32 : i32 to index
    %c0_4 = arith.constant 0 : index
    %c0_5 = arith.constant 0 : index
    %6 = vector.load %arg0[%5, %c0_4, %c0_5] : memref<8x8x128xf32, #tpu.memory_space<vmem>>, vector<1x8x128xf32>
    %7 = vector.shape_cast %6 : vector<1x8x128xf32> to vector<8x128xf32>
    %c0_6 = arith.constant 0 : index
    %c0_7 = arith.constant 0 : index
    %8 = vector.load %arg1[%c0_6, %c0_7] : memref<128x128xf32, #tpu.memory_space<vmem>>, vector<128x128xf32>
    %cst_8 = arith.constant dense<0.000000e+00> : vector<8x128xf32>
    %9 = tpu.matmul %7, %8, %cst_8 {dimension_numbers = #tpu.dot_dimension_numbers<[1], [0], [0], [1], [0, 0, 1, 1], [], []>} : vector<8x128xf32>, vector<128x128xf32>, vector<8x128xf32> -> vector<8x128xf32>
    %c0_9 = arith.constant 0 : index
    %c0_10 = arith.constant 0 : index
    %10 = vector.load %arg8[%c0_9, %c0_10] : memref<8x128xf32, #tpu.memory_space<vmem>>, vector<8x128xf32>
    %c0_11 = arith.constant 0 : index
    %c0_12 = arith.constant 0 : index
    %11 = vector.load %arg2[%c0_11, %c0_12] : memref<128x128xf32, #tpu.memory_space<vmem>>, vector<128x128xf32>
    %cst_13 = arith.constant dense<0.000000e+00> : vector<8x128xf32>
    %12 = tpu.matmul %10, %11, %cst_13 {dimension_numbers = #tpu.dot_dimension_numbers<[1], [0], [0], [1], [0, 0, 1, 1], [], []>} : vector<8x128xf32>, vector<128x128xf32>, vector<8x128xf32> -> vector<8x128xf32>
    %13 = arith.addf %9, %12 : vector<8x128xf32>
    %c0_14 = arith.constant 0 : index
    %c0_15 = arith.constant 0 : index
    %14 = vector.load %arg3[%c0_14, %c0_15] : memref<1x128xf32, #tpu.memory_space<vmem>>, vector<1x128xf32>
    %15 = vector.broadcast %14 : vector<1x128xf32> to vector<8x128xf32>
    %16 = arith.addf %13, %15 : vector<8x128xf32>
    %17 = math.tanh %16 : vector<8x128xf32>
    %18 = arith.index_cast %4 : i32 to index
    %c0_16 = arith.constant 0 : index
    %c0_17 = arith.constant 0 : index
    %19 = vector.load %arg0[%18, %c0_16, %c0_17] : memref<8x8x128xf32, #tpu.memory_space<vmem>>, vector<1x8x128xf32>
    %20 = vector.shape_cast %19 : vector<1x8x128xf32> to vector<8x128xf32>
    %c0_18 = arith.constant 0 : index
    %c0_19 = arith.constant 0 : index
    %21 = vector.load %arg4[%c0_18, %c0_19] : memref<128x128xf32, #tpu.memory_space<vmem>>, vector<128x128xf32>
    %cst_20 = arith.constant dense<0.000000e+00> : vector<8x128xf32>
    %22 = tpu.matmul %20, %21, %cst_20 {dimension_numbers = #tpu.dot_dimension_numbers<[1], [0], [0], [1], [0, 0, 1, 1], [], []>} : vector<8x128xf32>, vector<128x128xf32>, vector<8x128xf32> -> vector<8x128xf32>
    %c0_21 = arith.constant 0 : index
    %c0_22 = arith.constant 0 : index
    %23 = vector.load %arg9[%c0_21, %c0_22] : memref<8x128xf32, #tpu.memory_space<vmem>>, vector<8x128xf32>
    %c0_23 = arith.constant 0 : index
    %c0_24 = arith.constant 0 : index
    %24 = vector.load %arg5[%c0_23, %c0_24] : memref<128x128xf32, #tpu.memory_space<vmem>>, vector<128x128xf32>
    %cst_25 = arith.constant dense<0.000000e+00> : vector<8x128xf32>
    %25 = tpu.matmul %23, %24, %cst_25 {dimension_numbers = #tpu.dot_dimension_numbers<[1], [0], [0], [1], [0, 0, 1, 1], [], []>} : vector<8x128xf32>, vector<128x128xf32>, vector<8x128xf32> -> vector<8x128xf32>
    %26 = arith.addf %22, %25 : vector<8x128xf32>
    %c0_26 = arith.constant 0 : index
    %c0_27 = arith.constant 0 : index
    %27 = vector.load %arg6[%c0_26, %c0_27] : memref<1x128xf32, #tpu.memory_space<vmem>>, vector<1x128xf32>
    %28 = vector.broadcast %27 : vector<1x128xf32> to vector<8x128xf32>
    %29 = arith.addf %26, %28 : vector<8x128xf32>
    %30 = math.tanh %29 : vector<8x128xf32>
    %c0_28 = arith.constant 0 : index
    %c0_29 = arith.constant 0 : index
    %31 = vector.load %arg8[%c0_28, %c0_29] : memref<8x128xf32, #tpu.memory_space<vmem>>, vector<8x128xf32>
    tpu.vector_store %arg8[%c0_28, %c0_29], %17 {strides = array<i32>} : memref<8x128xf32, #tpu.memory_space<vmem>>, vector<8x128xf32>,
    %c0_30 = arith.constant 0 : index
    %c0_31 = arith.constant 0 : index
    %32 = vector.load %arg9[%c0_30, %c0_31] : memref<8x128xf32, #tpu.memory_space<vmem>>, vector<8x128xf32>
    tpu.vector_store %arg9[%c0_30, %c0_31], %30 {strides = array<i32>} : memref<8x128xf32, #tpu.memory_space<vmem>>, vector<8x128xf32>,
    %33 = arith.index_cast %c0_i32 : i32 to index
    %c0_32 = arith.constant 0 : index
    %c0_33 = arith.constant 0 : index
    %34 = vector.load %arg7[%33, %c0_32, %c0_33] : memref<8x8x256xf32, #tpu.memory_space<vmem>>, vector<1x8x128xf32>
    %35 = vector.shape_cast %34 : vector<1x8x128xf32> to vector<8x128xf32>
    %36 = vector.shape_cast %17 : vector<8x128xf32> to vector<1x8x128xf32>
    tpu.vector_store %arg7[%33, %c0_32, %c0_33], %36 {strides = array<i32>} : memref<8x8x256xf32, #tpu.memory_space<vmem>>, vector<1x8x128xf32>,
    %37 = arith.index_cast %4 : i32 to index
    %c0_34 = arith.constant 0 : index
    %c128 = arith.constant 128 : index
    %38 = vector.load %arg7[%37, %c0_34, %c128] : memref<8x8x256xf32, #tpu.memory_space<vmem>>, vector<1x8x128xf32>
    %39 = vector.shape_cast %38 : vector<1x8x128xf32> to vector<8x128xf32>
    %40 = vector.shape_cast %30 : vector<8x128xf32> to vector<1x8x128xf32>
    tpu.vector_store %arg7[%37, %c0_34, %c128], %40 {strides = array<i32>} : memref<8x8x256xf32, #tpu.memory_space<vmem>>, vector<1x8x128xf32>,
    %c1_i32 = arith.constant 1 : i32
    %c7_i32_35 = arith.constant 7 : i32
    %41 = arith.subi %c7_i32_35, %c1_i32 : i32
    %42 = arith.index_cast %c1_i32 : i32 to index
    %c0_36 = arith.constant 0 : index
    %c0_37 = arith.constant 0 : index
    %43 = vector.load %arg0[%42, %c0_36, %c0_37] : memref<8x8x128xf32, #tpu.memory_space<vmem>>, vector<1x8x128xf32>
    %44 = vector.shape_cast %43 : vector<1x8x128xf32> to vector<8x128xf32>
    %c0_38 = arith.constant 0 : index
    %c0_39 = arith.constant 0 : index
    %45 = vector.load %arg1[%c0_38, %c0_39] : memref<128x128xf32, #tpu.memory_space<vmem>>, vector<128x128xf32>
    %cst_40 = arith.constant dense<0.000000e+00> : vector<8x128xf32>
    %46 = tpu.matmul %44, %45, %cst_40 {dimension_numbers = #tpu.dot_dimension_numbers<[1], [0], [0], [1], [0, 0, 1, 1], [], []>} : vector<8x128xf32>, vector<128x128xf32>, vector<8x128xf32> -> vector<8x128xf32>
    %c0_41 = arith.constant 0 : index
    %c0_42 = arith.constant 0 : index
    %47 = vector.load %arg8[%c0_41, %c0_42] : memref<8x128xf32, #tpu.memory_space<vmem>>, vector<8x128xf32>
    %c0_43 = arith.constant 0 : index
    %c0_44 = arith.constant 0 : index
    %48 = vector.load %arg2[%c0_43, %c0_44] : memref<128x128xf32, #tpu.memory_space<vmem>>, vector<128x128xf32>
    %cst_45 = arith.constant dense<0.000000e+00> : vector<8x128xf32>
    %49 = tpu.matmul %47, %48, %cst_45 {dimension_numbers = #tpu.dot_dimension_numbers<[1], [0], [0], [1], [0, 0, 1, 1], [], []>} : vector<8x128xf32>, vector<128x128xf32>, vector<8x128xf32> -> vector<8x128xf32>
    %50 = arith.addf %46, %49 : vector<8x128xf32>
    %c0_46 = arith.constant 0 : index
    %c0_47 = arith.constant 0 : index
    %51 = vector.load %arg3[%c0_46, %c0_47] : memref<1x128xf32, #tpu.memory_space<vmem>>, vector<1x128xf32>
    %52 = vector.broadcast %51 : vector<1x128xf32> to vector<8x128xf32>
    %53 = arith.addf %50, %52 : vector<8x128xf32>
    %54 = math.tanh %53 : vector<8x128xf32>
    %55 = arith.index_cast %41 : i32 to index
    %c0_48 = arith.constant 0 : index
    %c0_49 = arith.constant 0 : index
    %56 = vector.load %arg0[%55, %c0_48, %c0_49] : memref<8x8x128xf32, #tpu.memory_space<vmem>>, vector<1x8x128xf32>
    %57 = vector.shape_cast %56 : vector<1x8x128xf32> to vector<8x128xf32>
    %c0_50 = arith.constant 0 : index
    %c0_51 = arith.constant 0 : index
    %58 = vector.load %arg4[%c0_50, %c0_51] : memref<128x128xf32, #tpu.memory_space<vmem>>, vector<128x128xf32>
    %cst_52 = arith.constant dense<0.000000e+00> : vector<8x128xf32>
    %59 = tpu.matmul %57, %58, %cst_52 {dimension_numbers = #tpu.dot_dimension_numbers<[1], [0], [0], [1], [0, 0, 1, 1], [], []>} : vector<8x128xf32>, vector<128x128xf32>, vector<8x128xf32> -> vector<8x128xf32>
    %c0_53 = arith.constant 0 : index
    %c0_54 = arith.constant 0 : index
    %60 = vector.load %arg9[%c0_53, %c0_54] : memref<8x128xf32, #tpu.memory_space<vmem>>, vector<8x128xf32>
    %c0_55 = arith.constant 0 : index
    %c0_56 = arith.constant 0 : index
    %61 = vector.load %arg5[%c0_55, %c0_56] : memref<128x128xf32, #tpu.memory_space<vmem>>, vector<128x128xf32>
    %cst_57 = arith.constant dense<0.000000e+00> : vector<8x128xf32>
    %62 = tpu.matmul %60, %61, %cst_57 {dimension_numbers = #tpu.dot_dimension_numbers<[1], [0], [0], [1], [0, 0, 1, 1], [], []>} : vector<8x128xf32>, vector<128x128xf32>, vector<8x128xf32> -> vector<8x128xf32>
    %63 = arith.addf %59, %62 : vector<8x128xf32>
    %c0_58 = arith.constant 0 : index
    %c0_59 = arith.constant 0 : index
    %64 = vector.load %arg6[%c0_58, %c0_59] : memref<1x128xf32, #tpu.memory_space<vmem>>, vector<1x128xf32>
    %65 = vector.broadcast %64 : vector<1x128xf32> to vector<8x128xf32>
    %66 = arith.addf %63, %65 : vector<8x128xf32>
    %67 = math.tanh %66 : vector<8x128xf32>
    %c0_60 = arith.constant 0 : index
    %c0_61 = arith.constant 0 : index
    %68 = vector.load %arg8[%c0_60, %c0_61] : memref<8x128xf32, #tpu.memory_space<vmem>>, vector<8x128xf32>
    tpu.vector_store %arg8[%c0_60, %c0_61], %54 {strides = array<i32>} : memref<8x128xf32, #tpu.memory_space<vmem>>, vector<8x128xf32>,
    %c0_62 = arith.constant 0 : index
    %c0_63 = arith.constant 0 : index
    %69 = vector.load %arg9[%c0_62, %c0_63] : memref<8x128xf32, #tpu.memory_space<vmem>>, vector<8x128xf32>
    tpu.vector_store %arg9[%c0_62, %c0_63], %67 {strides = array<i32>} : memref<8x128xf32, #tpu.memory_space<vmem>>, vector<8x128xf32>,
    %70 = arith.index_cast %c1_i32 : i32 to index
    %c0_64 = arith.constant 0 : index
    %c0_65 = arith.constant 0 : index
    %71 = vector.load %arg7[%70, %c0_64, %c0_65] : memref<8x8x256xf32, #tpu.memory_space<vmem>>, vector<1x8x128xf32>
    %72 = vector.shape_cast %71 : vector<1x8x128xf32> to vector<8x128xf32>
    %73 = vector.shape_cast %54 : vector<8x128xf32> to vector<1x8x128xf32>
    tpu.vector_store %arg7[%70, %c0_64, %c0_65], %73 {strides = array<i32>} : memref<8x8x256xf32, #tpu.memory_space<vmem>>, vector<1x8x128xf32>,
    %74 = arith.index_cast %41 : i32 to index
    %c0_66 = arith.constant 0 : index
    %c128_67 = arith.constant 128 : index
    %75 = vector.load %arg7[%74, %c0_66, %c128_67] : memref<8x8x256xf32, #tpu.memory_space<vmem>>, vector<1x8x128xf32>
    %76 = vector.shape_cast %75 : vector<1x8x128xf32> to vector<8x128xf32>
    %77 = vector.shape_cast %67 : vector<8x128xf32> to vector<1x8x128xf32>
    tpu.vector_store %arg7[%74, %c0_66, %c128_67], %77 {strides = array<i32>} : memref<8x8x256xf32, #tpu.memory_space<vmem>>, vector<1x8x128xf32>,
    %c2_i32 = arith.constant 2 : i32
    %c7_i32_68 = arith.constant 7 : i32
    %78 = arith.subi %c7_i32_68, %c2_i32 : i32
    %79 = arith.index_cast %c2_i32 : i32 to index
    %c0_69 = arith.constant 0 : index
    %c0_70 = arith.constant 0 : index
    %80 = vector.load %arg0[%79, %c0_69, %c0_70] : memref<8x8x128xf32, #tpu.memory_space<vmem>>, vector<1x8x128xf32>
    %81 = vector.shape_cast %80 : vector<1x8x128xf32> to vector<8x128xf32>
    %c0_71 = arith.constant 0 : index
    %c0_72 = arith.constant 0 : index
    %82 = vector.load %arg1[%c0_71, %c0_72] : memref<128x128xf32, #tpu.memory_space<vmem>>, vector<128x128xf32>
    %cst_73 = arith.constant dense<0.000000e+00> : vector<8x128xf32>
    %83 = tpu.matmul %81, %82, %cst_73 {dimension_numbers = #tpu.dot_dimension_numbers<[1], [0], [0], [1], [0, 0, 1, 1], [], []>} : vector<8x128xf32>, vector<128x128xf32>, vector<8x128xf32> -> vector<8x128xf32>
    %c0_74 = arith.constant 0 : index
    %c0_75 = arith.constant 0 : index
    %84 = vector.load %arg8[%c0_74, %c0_75] : memref<8x128xf32, #tpu.memory_space<vmem>>, vector<8x128xf32>
    %c0_76 = arith.constant 0 : index
    %c0_77 = arith.constant 0 : index
    %85 = vector.load %arg2[%c0_76, %c0_77] : memref<128x128xf32, #tpu.memory_space<vmem>>, vector<128x128xf32>
    %cst_78 = arith.constant dense<0.000000e+00> : vector<8x128xf32>
    %86 = tpu.matmul %84, %85, %cst_78 {dimension_numbers = #tpu.dot_dimension_numbers<[1], [0], [0], [1], [0, 0, 1, 1], [], []>} : vector<8x128xf32>, vector<128x128xf32>, vector<8x128xf32> -> vector<8x128xf32>
    %87 = arith.addf %83, %86 : vector<8x128xf32>
    %c0_79 = arith.constant 0 : index
    %c0_80 = arith.constant 0 : index
    %88 = vector.load %arg3[%c0_79, %c0_80] : memref<1x128xf32, #tpu.memory_space<vmem>>, vector<1x128xf32>
    %89 = vector.broadcast %88 : vector<1x128xf32> to vector<8x128xf32>
    %90 = arith.addf %87, %89 : vector<8x128xf32>
    %91 = math.tanh %90 : vector<8x128xf32>
    %92 = arith.index_cast %78 : i32 to index
    %c0_81 = arith.constant 0 : index
    %c0_82 = arith.constant 0 : index
    %93 = vector.load %arg0[%92, %c0_81, %c0_82] : memref<8x8x128xf32, #tpu.memory_space<vmem>>, vector<1x8x128xf32>
    %94 = vector.shape_cast %93 : vector<1x8x128xf32> to vector<8x128xf32>
    %c0_83 = arith.constant 0 : index
    %c0_84 = arith.constant 0 : index
    %95 = vector.load %arg4[%c0_83, %c0_84] : memref<128x128xf32, #tpu.memory_space<vmem>>, vector<128x128xf32>
    %cst_85 = arith.constant dense<0.000000e+00> : vector<8x128xf32>
    %96 = tpu.matmul %94, %95, %cst_85 {dimension_numbers = #tpu.dot_dimension_numbers<[1], [0], [0], [1], [0, 0, 1, 1], [], []>} : vector<8x128xf32>, vector<128x128xf32>, vector<8x128xf32> -> vector<8x128xf32>
    %c0_86 = arith.constant 0 : index
    %c0_87 = arith.constant 0 : index
    %97 = vector.load %arg9[%c0_86, %c0_87] : memref<8x128xf32, #tpu.memory_space<vmem>>, vector<8x128xf32>
    %c0_88 = arith.constant 0 : index
    %c0_89 = arith.constant 0 : index
    %98 = vector.load %arg5[%c0_88, %c0_89] : memref<128x128xf32, #tpu.memory_space<vmem>>, vector<128x128xf32>
    %cst_90 = arith.constant dense<0.000000e+00> : vector<8x128xf32>
    %99 = tpu.matmul %97, %98, %cst_90 {dimension_numbers = #tpu.dot_dimension_numbers<[1], [0], [0], [1], [0, 0, 1, 1], [], []>} : vector<8x128xf32>, vector<128x128xf32>, vector<8x128xf32> -> vector<8x128xf32>
    %100 = arith.addf %96, %99 : vector<8x128xf32>
    %c0_91 = arith.constant 0 : index
    %c0_92 = arith.constant 0 : index
    %101 = vector.load %arg6[%c0_91, %c0_92] : memref<1x128xf32, #tpu.memory_space<vmem>>, vector<1x128xf32>
    %102 = vector.broadcast %101 : vector<1x128xf32> to vector<8x128xf32>
    %103 = arith.addf %100, %102 : vector<8x128xf32>
    %104 = math.tanh %103 : vector<8x128xf32>
    %c0_93 = arith.constant 0 : index
    %c0_94 = arith.constant 0 : index
    %105 = vector.load %arg8[%c0_93, %c0_94] : memref<8x128xf32, #tpu.memory_space<vmem>>, vector<8x128xf32>
    tpu.vector_store %arg8[%c0_93, %c0_94], %91 {strides = array<i32>} : memref<8x128xf32, #tpu.memory_space<vmem>>, vector<8x128xf32>,
    %c0_95 = arith.constant 0 : index
    %c0_96 = arith.constant 0 : index
    %106 = vector.load %arg9[%c0_95, %c0_96] : memref<8x128xf32, #tpu.memory_space<vmem>>, vector<8x128xf32>
    tpu.vector_store %arg9[%c0_95, %c0_96], %104 {strides = array<i32>} : memref<8x128xf32, #tpu.memory_space<vmem>>, vector<8x128xf32>,
    %107 = arith.index_cast %c2_i32 : i32 to index
    %c0_97 = arith.constant 0 : index
    %c0_98 = arith.constant 0 : index
    %108 = vector.load %arg7[%107, %c0_97, %c0_98] : memref<8x8x256xf32, #tpu.memory_space<vmem>>, vector<1x8x128xf32>
    %109 = vector.shape_cast %108 : vector<1x8x128xf32> to vector<8x128xf32>
    %110 = vector.shape_cast %91 : vector<8x128xf32> to vector<1x8x128xf32>
    tpu.vector_store %arg7[%107, %c0_97, %c0_98], %110 {strides = array<i32>} : memref<8x8x256xf32, #tpu.memory_space<vmem>>, vector<1x8x128xf32>,
    %111 = arith.index_cast %78 : i32 to index
    %c0_99 = arith.constant 0 : index
    %c128_100 = arith.constant 128 : index
    %112 = vector.load %arg7[%111, %c0_99, %c128_100] : memref<8x8x256xf32, #tpu.memory_space<vmem>>, vector<1x8x128xf32>
    %113 = vector.shape_cast %112 : vector<1x8x128xf32> to vector<8x128xf32>
    %114 = vector.shape_cast %104 : vector<8x128xf32> to vector<1x8x128xf32>
    tpu.vector_store %arg7[%111, %c0_99, %c128_100], %114 {strides = array<i32>} : memref<8x8x256xf32, #tpu.memory_space<vmem>>, vector<1x8x128xf32>,
    %c3_i32 = arith.constant 3 : i32
    %c7_i32_101 = arith.constant 7 : i32
    %115 = arith.subi %c7_i32_101, %c3_i32 : i32
    %116 = arith.index_cast %c3_i32 : i32 to index
    %c0_102 = arith.constant 0 : index
    %c0_103 = arith.constant 0 : index
    %117 = vector.load %arg0[%116, %c0_102, %c0_103] : memref<8x8x128xf32, #tpu.memory_space<vmem>>, vector<1x8x128xf32>
    %118 = vector.shape_cast %117 : vector<1x8x128xf32> to vector<8x128xf32>
    %c0_104 = arith.constant 0 : index
    %c0_105 = arith.constant 0 : index
    %119 = vector.load %arg1[%c0_104, %c0_105] : memref<128x128xf32, #tpu.memory_space<vmem>>, vector<128x128xf32>
    %cst_106 = arith.constant dense<0.000000e+00> : vector<8x128xf32>
    %120 = tpu.matmul %118, %119, %cst_106 {dimension_numbers = #tpu.dot_dimension_numbers<[1], [0], [0], [1], [0, 0, 1, 1], [], []>} : vector<8x128xf32>, vector<128x128xf32>, vector<8x128xf32> -> vector<8x128xf32>
    %c0_107 = arith.constant 0 : index
    %c0_108 = arith.constant 0 : index
    %121 = vector.load %arg8[%c0_107, %c0_108] : memref<8x128xf32, #tpu.memory_space<vmem>>, vector<8x128xf32>
    %c0_109 = arith.constant 0 : index
    %c0_110 = arith.constant 0 : index
    %122 = vector.load %arg2[%c0_109, %c0_110] : memref<128x128xf32, #tpu.memory_space<vmem>>, vector<128x128xf32>
    %cst_111 = arith.constant dense<0.000000e+00> : vector<8x128xf32>
    %123 = tpu.matmul %121, %122, %cst_111 {dimension_numbers = #tpu.dot_dimension_numbers<[1], [0], [0], [1], [0, 0, 1, 1], [], []>} : vector<8x128xf32>, vector<128x128xf32>, vector<8x128xf32> -> vector<8x128xf32>
    %124 = arith.addf %120, %123 : vector<8x128xf32>
    %c0_112 = arith.constant 0 : index
    %c0_113 = arith.constant 0 : index
    %125 = vector.load %arg3[%c0_112, %c0_113] : memref<1x128xf32, #tpu.memory_space<vmem>>, vector<1x128xf32>
    %126 = vector.broadcast %125 : vector<1x128xf32> to vector<8x128xf32>
    %127 = arith.addf %124, %126 : vector<8x128xf32>
    %128 = math.tanh %127 : vector<8x128xf32>
    %129 = arith.index_cast %115 : i32 to index
    %c0_114 = arith.constant 0 : index
    %c0_115 = arith.constant 0 : index
    %130 = vector.load %arg0[%129, %c0_114, %c0_115] : memref<8x8x128xf32, #tpu.memory_space<vmem>>, vector<1x8x128xf32>
    %131 = vector.shape_cast %130 : vector<1x8x128xf32> to vector<8x128xf32>
    %c0_116 = arith.constant 0 : index
    %c0_117 = arith.constant 0 : index
    %132 = vector.load %arg4[%c0_116, %c0_117] : memref<128x128xf32, #tpu.memory_space<vmem>>, vector<128x128xf32>
    %cst_118 = arith.constant dense<0.000000e+00> : vector<8x128xf32>
    %133 = tpu.matmul %131, %132, %cst_118 {dimension_numbers = #tpu.dot_dimension_numbers<[1], [0], [0], [1], [0, 0, 1, 1], [], []>} : vector<8x128xf32>, vector<128x128xf32>, vector<8x128xf32> -> vector<8x128xf32>
    %c0_119 = arith.constant 0 : index
    %c0_120 = arith.constant 0 : index
    %134 = vector.load %arg9[%c0_119, %c0_120] : memref<8x128xf32, #tpu.memory_space<vmem>>, vector<8x128xf32>
    %c0_121 = arith.constant 0 : index
    %c0_122 = arith.constant 0 : index
    %135 = vector.load %arg5[%c0_121, %c0_122] : memref<128x128xf32, #tpu.memory_space<vmem>>, vector<128x128xf32>
    %cst_123 = arith.constant dense<0.000000e+00> : vector<8x128xf32>
    %136 = tpu.matmul %134, %135, %cst_123 {dimension_numbers = #tpu.dot_dimension_numbers<[1], [0], [0], [1], [0, 0, 1, 1], [], []>} : vector<8x128xf32>, vector<128x128xf32>, vector<8x128xf32> -> vector<8x128xf32>
    %137 = arith.addf %133, %136 : vector<8x128xf32>
    %c0_124 = arith.constant 0 : index
    %c0_125 = arith.constant 0 : index
    %138 = vector.load %arg6[%c0_124, %c0_125] : memref<1x128xf32, #tpu.memory_space<vmem>>, vector<1x128xf32>
    %139 = vector.broadcast %138 : vector<1x128xf32> to vector<8x128xf32>
    %140 = arith.addf %137, %139 : vector<8x128xf32>
    %141 = math.tanh %140 : vector<8x128xf32>
    %c0_126 = arith.constant 0 : index
    %c0_127 = arith.constant 0 : index
    %142 = vector.load %arg8[%c0_126, %c0_127] : memref<8x128xf32, #tpu.memory_space<vmem>>, vector<8x128xf32>
    tpu.vector_store %arg8[%c0_126, %c0_127], %128 {strides = array<i32>} : memref<8x128xf32, #tpu.memory_space<vmem>>, vector<8x128xf32>,
    %c0_128 = arith.constant 0 : index
    %c0_129 = arith.constant 0 : index
    %143 = vector.load %arg9[%c0_128, %c0_129] : memref<8x128xf32, #tpu.memory_space<vmem>>, vector<8x128xf32>
    tpu.vector_store %arg9[%c0_128, %c0_129], %141 {strides = array<i32>} : memref<8x128xf32, #tpu.memory_space<vmem>>, vector<8x128xf32>,
    %144 = arith.index_cast %c3_i32 : i32 to index
    %c0_130 = arith.constant 0 : index
    %c0_131 = arith.constant 0 : index
    %145 = vector.load %arg7[%144, %c0_130, %c0_131] : memref<8x8x256xf32, #tpu.memory_space<vmem>>, vector<1x8x128xf32>
    %146 = vector.shape_cast %145 : vector<1x8x128xf32> to vector<8x128xf32>
    %147 = vector.shape_cast %128 : vector<8x128xf32> to vector<1x8x128xf32>
    tpu.vector_store %arg7[%144, %c0_130, %c0_131], %147 {strides = array<i32>} : memref<8x8x256xf32, #tpu.memory_space<vmem>>, vector<1x8x128xf32>,
    %148 = arith.index_cast %115 : i32 to index
    %c0_132 = arith.constant 0 : index
    %c128_133 = arith.constant 128 : index
    %149 = vector.load %arg7[%148, %c0_132, %c128_133] : memref<8x8x256xf32, #tpu.memory_space<vmem>>, vector<1x8x128xf32>
    %150 = vector.shape_cast %149 : vector<1x8x128xf32> to vector<8x128xf32>
    %151 = vector.shape_cast %141 : vector<8x128xf32> to vector<1x8x128xf32>
    tpu.vector_store %arg7[%148, %c0_132, %c128_133], %151 {strides = array<i32>} : memref<8x8x256xf32, #tpu.memory_space<vmem>>, vector<1x8x128xf32>,
    %c4_i32 = arith.constant 4 : i32
    %c7_i32_134 = arith.constant 7 : i32
    %152 = arith.subi %c7_i32_134, %c4_i32 : i32
    %153 = arith.index_cast %c4_i32 : i32 to index
    %c0_135 = arith.constant 0 : index
    %c0_136 = arith.constant 0 : index
    %154 = vector.load %arg0[%153, %c0_135, %c0_136] : memref<8x8x128xf32, #tpu.memory_space<vmem>>, vector<1x8x128xf32>
    %155 = vector.shape_cast %154 : vector<1x8x128xf32> to vector<8x128xf32>
    %c0_137 = arith.constant 0 : index
    %c0_138 = arith.constant 0 : index
    %156 = vector.load %arg1[%c0_137, %c0_138] : memref<128x128xf32, #tpu.memory_space<vmem>>, vector<128x128xf32>
    %cst_139 = arith.constant dense<0.000000e+00> : vector<8x128xf32>
    %157 = tpu.matmul %155, %156, %cst_139 {dimension_numbers = #tpu.dot_dimension_numbers<[1], [0], [0], [1], [0, 0, 1, 1], [], []>} : vector<8x128xf32>, vector<128x128xf32>, vector<8x128xf32> -> vector<8x128xf32>
    %c0_140 = arith.constant 0 : index
    %c0_141 = arith.constant 0 : index
    %158 = vector.load %arg8[%c0_140, %c0_141] : memref<8x128xf32, #tpu.memory_space<vmem>>, vector<8x128xf32>
    %c0_142 = arith.constant 0 : index
    %c0_143 = arith.constant 0 : index
    %159 = vector.load %arg2[%c0_142, %c0_143] : memref<128x128xf32, #tpu.memory_space<vmem>>, vector<128x128xf32>
    %cst_144 = arith.constant dense<0.000000e+00> : vector<8x128xf32>
    %160 = tpu.matmul %158, %159, %cst_144 {dimension_numbers = #tpu.dot_dimension_numbers<[1], [0], [0], [1], [0, 0, 1, 1], [], []>} : vector<8x128xf32>, vector<128x128xf32>, vector<8x128xf32> -> vector<8x128xf32>
    %161 = arith.addf %157, %160 : vector<8x128xf32>
    %c0_145 = arith.constant 0 : index
    %c0_146 = arith.constant 0 : index
    %162 = vector.load %arg3[%c0_145, %c0_146] : memref<1x128xf32, #tpu.memory_space<vmem>>, vector<1x128xf32>
    %163 = vector.broadcast %162 : vector<1x128xf32> to vector<8x128xf32>
    %164 = arith.addf %161, %163 : vector<8x128xf32>
    %165 = math.tanh %164 : vector<8x128xf32>
    %166 = arith.index_cast %152 : i32 to index
    %c0_147 = arith.constant 0 : index
    %c0_148 = arith.constant 0 : index
    %167 = vector.load %arg0[%166, %c0_147, %c0_148] : memref<8x8x128xf32, #tpu.memory_space<vmem>>, vector<1x8x128xf32>
    %168 = vector.shape_cast %167 : vector<1x8x128xf32> to vector<8x128xf32>
    %c0_149 = arith.constant 0 : index
    %c0_150 = arith.constant 0 : index
    %169 = vector.load %arg4[%c0_149, %c0_150] : memref<128x128xf32, #tpu.memory_space<vmem>>, vector<128x128xf32>
    %cst_151 = arith.constant dense<0.000000e+00> : vector<8x128xf32>
    %170 = tpu.matmul %168, %169, %cst_151 {dimension_numbers = #tpu.dot_dimension_numbers<[1], [0], [0], [1], [0, 0, 1, 1], [], []>} : vector<8x128xf32>, vector<128x128xf32>, vector<8x128xf32> -> vector<8x128xf32>
    %c0_152 = arith.constant 0 : index
    %c0_153 = arith.constant 0 : index
    %171 = vector.load %arg9[%c0_152, %c0_153] : memref<8x128xf32, #tpu.memory_space<vmem>>, vector<8x128xf32>
    %c0_154 = arith.constant 0 : index
    %c0_155 = arith.constant 0 : index
    %172 = vector.load %arg5[%c0_154, %c0_155] : memref<128x128xf32, #tpu.memory_space<vmem>>, vector<128x128xf32>
    %cst_156 = arith.constant dense<0.000000e+00> : vector<8x128xf32>
    %173 = tpu.matmul %171, %172, %cst_156 {dimension_numbers = #tpu.dot_dimension_numbers<[1], [0], [0], [1], [0, 0, 1, 1], [], []>} : vector<8x128xf32>, vector<128x128xf32>, vector<8x128xf32> -> vector<8x128xf32>
    %174 = arith.addf %170, %173 : vector<8x128xf32>
    %c0_157 = arith.constant 0 : index
    %c0_158 = arith.constant 0 : index
    %175 = vector.load %arg6[%c0_157, %c0_158] : memref<1x128xf32, #tpu.memory_space<vmem>>, vector<1x128xf32>
    %176 = vector.broadcast %175 : vector<1x128xf32> to vector<8x128xf32>
    %177 = arith.addf %174, %176 : vector<8x128xf32>
    %178 = math.tanh %177 : vector<8x128xf32>
    %c0_159 = arith.constant 0 : index
    %c0_160 = arith.constant 0 : index
    %179 = vector.load %arg8[%c0_159, %c0_160] : memref<8x128xf32, #tpu.memory_space<vmem>>, vector<8x128xf32>
    tpu.vector_store %arg8[%c0_159, %c0_160], %165 {strides = array<i32>} : memref<8x128xf32, #tpu.memory_space<vmem>>, vector<8x128xf32>,
    %c0_161 = arith.constant 0 : index
    %c0_162 = arith.constant 0 : index
    %180 = vector.load %arg9[%c0_161, %c0_162] : memref<8x128xf32, #tpu.memory_space<vmem>>, vector<8x128xf32>
    tpu.vector_store %arg9[%c0_161, %c0_162], %178 {strides = array<i32>} : memref<8x128xf32, #tpu.memory_space<vmem>>, vector<8x128xf32>,
    %181 = arith.index_cast %c4_i32 : i32 to index
    %c0_163 = arith.constant 0 : index
    %c0_164 = arith.constant 0 : index
    %182 = vector.load %arg7[%181, %c0_163, %c0_164] : memref<8x8x256xf32, #tpu.memory_space<vmem>>, vector<1x8x128xf32>
    %183 = vector.shape_cast %182 : vector<1x8x128xf32> to vector<8x128xf32>
    %184 = vector.shape_cast %165 : vector<8x128xf32> to vector<1x8x128xf32>
    tpu.vector_store %arg7[%181, %c0_163, %c0_164], %184 {strides = array<i32>} : memref<8x8x256xf32, #tpu.memory_space<vmem>>, vector<1x8x128xf32>,
    %185 = arith.index_cast %152 : i32 to index
    %c0_165 = arith.constant 0 : index
    %c128_166 = arith.constant 128 : index
    %186 = vector.load %arg7[%185, %c0_165, %c128_166] : memref<8x8x256xf32, #tpu.memory_space<vmem>>, vector<1x8x128xf32>
    %187 = vector.shape_cast %186 : vector<1x8x128xf32> to vector<8x128xf32>
    %188 = vector.shape_cast %178 : vector<8x128xf32> to vector<1x8x128xf32>
    tpu.vector_store %arg7[%185, %c0_165, %c128_166], %188 {strides = array<i32>} : memref<8x8x256xf32, #tpu.memory_space<vmem>>, vector<1x8x128xf32>,
    %c5_i32 = arith.constant 5 : i32
    %c7_i32_167 = arith.constant 7 : i32
    %189 = arith.subi %c7_i32_167, %c5_i32 : i32
    %190 = arith.index_cast %c5_i32 : i32 to index
    %c0_168 = arith.constant 0 : index
    %c0_169 = arith.constant 0 : index
    %191 = vector.load %arg0[%190, %c0_168, %c0_169] : memref<8x8x128xf32, #tpu.memory_space<vmem>>, vector<1x8x128xf32>
    %192 = vector.shape_cast %191 : vector<1x8x128xf32> to vector<8x128xf32>
    %c0_170 = arith.constant 0 : index
    %c0_171 = arith.constant 0 : index
    %193 = vector.load %arg1[%c0_170, %c0_171] : memref<128x128xf32, #tpu.memory_space<vmem>>, vector<128x128xf32>
    %cst_172 = arith.constant dense<0.000000e+00> : vector<8x128xf32>
    %194 = tpu.matmul %192, %193, %cst_172 {dimension_numbers = #tpu.dot_dimension_numbers<[1], [0], [0], [1], [0, 0, 1, 1], [], []>} : vector<8x128xf32>, vector<128x128xf32>, vector<8x128xf32> -> vector<8x128xf32>
    %c0_173 = arith.constant 0 : index
    %c0_174 = arith.constant 0 : index
    %195 = vector.load %arg8[%c0_173, %c0_174] : memref<8x128xf32, #tpu.memory_space<vmem>>, vector<8x128xf32>
    %c0_175 = arith.constant 0 : index
    %c0_176 = arith.constant 0 : index
    %196 = vector.load %arg2[%c0_175, %c0_176] : memref<128x128xf32, #tpu.memory_space<vmem>>, vector<128x128xf32>
    %cst_177 = arith.constant dense<0.000000e+00> : vector<8x128xf32>
    %197 = tpu.matmul %195, %196, %cst_177 {dimension_numbers = #tpu.dot_dimension_numbers<[1], [0], [0], [1], [0, 0, 1, 1], [], []>} : vector<8x128xf32>, vector<128x128xf32>, vector<8x128xf32> -> vector<8x128xf32>
    %198 = arith.addf %194, %197 : vector<8x128xf32>
    %c0_178 = arith.constant 0 : index
    %c0_179 = arith.constant 0 : index
    %199 = vector.load %arg3[%c0_178, %c0_179] : memref<1x128xf32, #tpu.memory_space<vmem>>, vector<1x128xf32>
    %200 = vector.broadcast %199 : vector<1x128xf32> to vector<8x128xf32>
    %201 = arith.addf %198, %200 : vector<8x128xf32>
    %202 = math.tanh %201 : vector<8x128xf32>
    %203 = arith.index_cast %189 : i32 to index
    %c0_180 = arith.constant 0 : index
    %c0_181 = arith.constant 0 : index
    %204 = vector.load %arg0[%203, %c0_180, %c0_181] : memref<8x8x128xf32, #tpu.memory_space<vmem>>, vector<1x8x128xf32>
    %205 = vector.shape_cast %204 : vector<1x8x128xf32> to vector<8x128xf32>
    %c0_182 = arith.constant 0 : index
    %c0_183 = arith.constant 0 : index
    %206 = vector.load %arg4[%c0_182, %c0_183] : memref<128x128xf32, #tpu.memory_space<vmem>>, vector<128x128xf32>
    %cst_184 = arith.constant dense<0.000000e+00> : vector<8x128xf32>
    %207 = tpu.matmul %205, %206, %cst_184 {dimension_numbers = #tpu.dot_dimension_numbers<[1], [0], [0], [1], [0, 0, 1, 1], [], []>} : vector<8x128xf32>, vector<128x128xf32>, vector<8x128xf32> -> vector<8x128xf32>
    %c0_185 = arith.constant 0 : index
    %c0_186 = arith.constant 0 : index
    %208 = vector.load %arg9[%c0_185, %c0_186] : memref<8x128xf32, #tpu.memory_space<vmem>>, vector<8x128xf32>
    %c0_187 = arith.constant 0 : index
    %c0_188 = arith.constant 0 : index
    %209 = vector.load %arg5[%c0_187, %c0_188] : memref<128x128xf32, #tpu.memory_space<vmem>>, vector<128x128xf32>
    %cst_189 = arith.constant dense<0.000000e+00> : vector<8x128xf32>
    %210 = tpu.matmul %208, %209, %cst_189 {dimension_numbers = #tpu.dot_dimension_numbers<[1], [0], [0], [1], [0, 0, 1, 1], [], []>} : vector<8x128xf32>, vector<128x128xf32>, vector<8x128xf32> -> vector<8x128xf32>
    %211 = arith.addf %207, %210 : vector<8x128xf32>
    %c0_190 = arith.constant 0 : index
    %c0_191 = arith.constant 0 : index
    %212 = vector.load %arg6[%c0_190, %c0_191] : memref<1x128xf32, #tpu.memory_space<vmem>>, vector<1x128xf32>
    %213 = vector.broadcast %212 : vector<1x128xf32> to vector<8x128xf32>
    %214 = arith.addf %211, %213 : vector<8x128xf32>
    %215 = math.tanh %214 : vector<8x128xf32>
    %c0_192 = arith.constant 0 : index
    %c0_193 = arith.constant 0 : index
    %216 = vector.load %arg8[%c0_192, %c0_193] : memref<8x128xf32, #tpu.memory_space<vmem>>, vector<8x128xf32>
    tpu.vector_store %arg8[%c0_192, %c0_193], %202 {strides = array<i32>} : memref<8x128xf32, #tpu.memory_space<vmem>>, vector<8x128xf32>,
    %c0_194 = arith.constant 0 : index
    %c0_195 = arith.constant 0 : index
    %217 = vector.load %arg9[%c0_194, %c0_195] : memref<8x128xf32, #tpu.memory_space<vmem>>, vector<8x128xf32>
    tpu.vector_store %arg9[%c0_194, %c0_195], %215 {strides = array<i32>} : memref<8x128xf32, #tpu.memory_space<vmem>>, vector<8x128xf32>,
    %218 = arith.index_cast %c5_i32 : i32 to index
    %c0_196 = arith.constant 0 : index
    %c0_197 = arith.constant 0 : index
    %219 = vector.load %arg7[%218, %c0_196, %c0_197] : memref<8x8x256xf32, #tpu.memory_space<vmem>>, vector<1x8x128xf32>
    %220 = vector.shape_cast %219 : vector<1x8x128xf32> to vector<8x128xf32>
    %221 = vector.shape_cast %202 : vector<8x128xf32> to vector<1x8x128xf32>
    tpu.vector_store %arg7[%218, %c0_196, %c0_197], %221 {strides = array<i32>} : memref<8x8x256xf32, #tpu.memory_space<vmem>>, vector<1x8x128xf32>,
    %222 = arith.index_cast %189 : i32 to index
    %c0_198 = arith.constant 0 : index
    %c128_199 = arith.constant 128 : index
    %223 = vector.load %arg7[%222, %c0_198, %c128_199] : memref<8x8x256xf32, #tpu.memory_space<vmem>>, vector<1x8x128xf32>
    %224 = vector.shape_cast %223 : vector<1x8x128xf32> to vector<8x128xf32>
    %225 = vector.shape_cast %215 : vector<8x128xf32> to vector<1x8x128xf32>
    tpu.vector_store %arg7[%222, %c0_198, %c128_199], %225 {strides = array<i32>} : memref<8x8x256xf32, #tpu.memory_space<vmem>>, vector<1x8x128xf32>,
    %c6_i32 = arith.constant 6 : i32
    %c7_i32_200 = arith.constant 7 : i32
    %226 = arith.subi %c7_i32_200, %c6_i32 : i32
    %227 = arith.index_cast %c6_i32 : i32 to index
    %c0_201 = arith.constant 0 : index
    %c0_202 = arith.constant 0 : index
    %228 = vector.load %arg0[%227, %c0_201, %c0_202] : memref<8x8x128xf32, #tpu.memory_space<vmem>>, vector<1x8x128xf32>
    %229 = vector.shape_cast %228 : vector<1x8x128xf32> to vector<8x128xf32>
    %c0_203 = arith.constant 0 : index
    %c0_204 = arith.constant 0 : index
    %230 = vector.load %arg1[%c0_203, %c0_204] : memref<128x128xf32, #tpu.memory_space<vmem>>, vector<128x128xf32>
    %cst_205 = arith.constant dense<0.000000e+00> : vector<8x128xf32>
    %231 = tpu.matmul %229, %230, %cst_205 {dimension_numbers = #tpu.dot_dimension_numbers<[1], [0], [0], [1], [0, 0, 1, 1], [], []>} : vector<8x128xf32>, vector<128x128xf32>, vector<8x128xf32> -> vector<8x128xf32>
    %c0_206 = arith.constant 0 : index
    %c0_207 = arith.constant 0 : index
    %232 = vector.load %arg8[%c0_206, %c0_207] : memref<8x128xf32, #tpu.memory_space<vmem>>, vector<8x128xf32>
    %c0_208 = arith.constant 0 : index
    %c0_209 = arith.constant 0 : index
    %233 = vector.load %arg2[%c0_208, %c0_209] : memref<128x128xf32, #tpu.memory_space<vmem>>, vector<128x128xf32>
    %cst_210 = arith.constant dense<0.000000e+00> : vector<8x128xf32>
    %234 = tpu.matmul %232, %233, %cst_210 {dimension_numbers = #tpu.dot_dimension_numbers<[1], [0], [0], [1], [0, 0, 1, 1], [], []>} : vector<8x128xf32>, vector<128x128xf32>, vector<8x128xf32> -> vector<8x128xf32>
    %235 = arith.addf %231, %234 : vector<8x128xf32>
    %c0_211 = arith.constant 0 : index
    %c0_212 = arith.constant 0 : index
    %236 = vector.load %arg3[%c0_211, %c0_212] : memref<1x128xf32, #tpu.memory_space<vmem>>, vector<1x128xf32>
    %237 = vector.broadcast %236 : vector<1x128xf32> to vector<8x128xf32>
    %238 = arith.addf %235, %237 : vector<8x128xf32>
    %239 = math.tanh %238 : vector<8x128xf32>
    %240 = arith.index_cast %226 : i32 to index
    %c0_213 = arith.constant 0 : index
    %c0_214 = arith.constant 0 : index
    %241 = vector.load %arg0[%240, %c0_213, %c0_214] : memref<8x8x128xf32, #tpu.memory_space<vmem>>, vector<1x8x128xf32>
    %242 = vector.shape_cast %241 : vector<1x8x128xf32> to vector<8x128xf32>
    %c0_215 = arith.constant 0 : index
    %c0_216 = arith.constant 0 : index
    %243 = vector.load %arg4[%c0_215, %c0_216] : memref<128x128xf32, #tpu.memory_space<vmem>>, vector<128x128xf32>
    %cst_217 = arith.constant dense<0.000000e+00> : vector<8x128xf32>
    %244 = tpu.matmul %242, %243, %cst_217 {dimension_numbers = #tpu.dot_dimension_numbers<[1], [0], [0], [1], [0, 0, 1, 1], [], []>} : vector<8x128xf32>, vector<128x128xf32>, vector<8x128xf32> -> vector<8x128xf32>
    %c0_218 = arith.constant 0 : index
    %c0_219 = arith.constant 0 : index
    %245 = vector.load %arg9[%c0_218, %c0_219] : memref<8x128xf32, #tpu.memory_space<vmem>>, vector<8x128xf32>
    %c0_220 = arith.constant 0 : index
    %c0_221 = arith.constant 0 : index
    %246 = vector.load %arg5[%c0_220, %c0_221] : memref<128x128xf32, #tpu.memory_space<vmem>>, vector<128x128xf32>
    %cst_222 = arith.constant dense<0.000000e+00> : vector<8x128xf32>
    %247 = tpu.matmul %245, %246, %cst_222 {dimension_numbers = #tpu.dot_dimension_numbers<[1], [0], [0], [1], [0, 0, 1, 1], [], []>} : vector<8x128xf32>, vector<128x128xf32>, vector<8x128xf32> -> vector<8x128xf32>
    %248 = arith.addf %244, %247 : vector<8x128xf32>
    %c0_223 = arith.constant 0 : index
    %c0_224 = arith.constant 0 : index
    %249 = vector.load %arg6[%c0_223, %c0_224] : memref<1x128xf32, #tpu.memory_space<vmem>>, vector<1x128xf32>
    %250 = vector.broadcast %249 : vector<1x128xf32> to vector<8x128xf32>
    %251 = arith.addf %248, %250 : vector<8x128xf32>
    %252 = math.tanh %251 : vector<8x128xf32>
    %c0_225 = arith.constant 0 : index
    %c0_226 = arith.constant 0 : index
    %253 = vector.load %arg8[%c0_225, %c0_226] : memref<8x128xf32, #tpu.memory_space<vmem>>, vector<8x128xf32>
    tpu.vector_store %arg8[%c0_225, %c0_226], %239 {strides = array<i32>} : memref<8x128xf32, #tpu.memory_space<vmem>>, vector<8x128xf32>,
    %c0_227 = arith.constant 0 : index
    %c0_228 = arith.constant 0 : index
    %254 = vector.load %arg9[%c0_227, %c0_228] : memref<8x128xf32, #tpu.memory_space<vmem>>, vector<8x128xf32>
    tpu.vector_store %arg9[%c0_227, %c0_228], %252 {strides = array<i32>} : memref<8x128xf32, #tpu.memory_space<vmem>>, vector<8x128xf32>,
    %255 = arith.index_cast %c6_i32 : i32 to index
    %c0_229 = arith.constant 0 : index
    %c0_230 = arith.constant 0 : index
    %256 = vector.load %arg7[%255, %c0_229, %c0_230] : memref<8x8x256xf32, #tpu.memory_space<vmem>>, vector<1x8x128xf32>
    %257 = vector.shape_cast %256 : vector<1x8x128xf32> to vector<8x128xf32>
    %258 = vector.shape_cast %239 : vector<8x128xf32> to vector<1x8x128xf32>
    tpu.vector_store %arg7[%255, %c0_229, %c0_230], %258 {strides = array<i32>} : memref<8x8x256xf32, #tpu.memory_space<vmem>>, vector<1x8x128xf32>,
    %259 = arith.index_cast %226 : i32 to index
    %c0_231 = arith.constant 0 : index
    %c128_232 = arith.constant 128 : index
    %260 = vector.load %arg7[%259, %c0_231, %c128_232] : memref<8x8x256xf32, #tpu.memory_space<vmem>>, vector<1x8x128xf32>
    %261 = vector.shape_cast %260 : vector<1x8x128xf32> to vector<8x128xf32>
    %262 = vector.shape_cast %252 : vector<8x128xf32> to vector<1x8x128xf32>
    tpu.vector_store %arg7[%259, %c0_231, %c128_232], %262 {strides = array<i32>} : memref<8x8x256xf32, #tpu.memory_space<vmem>>, vector<1x8x128xf32>,
    %c7_i32_233 = arith.constant 7 : i32
    %c7_i32_234 = arith.constant 7 : i32
    %263 = arith.subi %c7_i32_234, %c7_i32_233 : i32
    %264 = arith.index_cast %c7_i32_233 : i32 to index
    %c0_235 = arith.constant 0 : index
    %c0_236 = arith.constant 0 : index
    %265 = vector.load %arg0[%264, %c0_235, %c0_236] : memref<8x8x128xf32, #tpu.memory_space<vmem>>, vector<1x8x128xf32>
    %266 = vector.shape_cast %265 : vector<1x8x128xf32> to vector<8x128xf32>
    %c0_237 = arith.constant 0 : index
    %c0_238 = arith.constant 0 : index
    %267 = vector.load %arg1[%c0_237, %c0_238] : memref<128x128xf32, #tpu.memory_space<vmem>>, vector<128x128xf32>
    %cst_239 = arith.constant dense<0.000000e+00> : vector<8x128xf32>
    %268 = tpu.matmul %266, %267, %cst_239 {dimension_numbers = #tpu.dot_dimension_numbers<[1], [0], [0], [1], [0, 0, 1, 1], [], []>} : vector<8x128xf32>, vector<128x128xf32>, vector<8x128xf32> -> vector<8x128xf32>
    %c0_240 = arith.constant 0 : index
    %c0_241 = arith.constant 0 : index
    %269 = vector.load %arg8[%c0_240, %c0_241] : memref<8x128xf32, #tpu.memory_space<vmem>>, vector<8x128xf32>
    %c0_242 = arith.constant 0 : index
    %c0_243 = arith.constant 0 : index
    %270 = vector.load %arg2[%c0_242, %c0_243] : memref<128x128xf32, #tpu.memory_space<vmem>>, vector<128x128xf32>
    %cst_244 = arith.constant dense<0.000000e+00> : vector<8x128xf32>
    %271 = tpu.matmul %269, %270, %cst_244 {dimension_numbers = #tpu.dot_dimension_numbers<[1], [0], [0], [1], [0, 0, 1, 1], [], []>} : vector<8x128xf32>, vector<128x128xf32>, vector<8x128xf32> -> vector<8x128xf32>
    %272 = arith.addf %268, %271 : vector<8x128xf32>
    %c0_245 = arith.constant 0 : index
    %c0_246 = arith.constant 0 : index
    %273 = vector.load %arg3[%c0_245, %c0_246] : memref<1x128xf32, #tpu.memory_space<vmem>>, vector<1x128xf32>
    %274 = vector.broadcast %273 : vector<1x128xf32> to vector<8x128xf32>
    %275 = arith.addf %272, %274 : vector<8x128xf32>
    %276 = math.tanh %275 : vector<8x128xf32>
    %277 = arith.index_cast %263 : i32 to index
    %c0_247 = arith.constant 0 : index
    %c0_248 = arith.constant 0 : index
    %278 = vector.load %arg0[%277, %c0_247, %c0_248] : memref<8x8x128xf32, #tpu.memory_space<vmem>>, vector<1x8x128xf32>
    %279 = vector.shape_cast %278 : vector<1x8x128xf32> to vector<8x128xf32>
    %c0_249 = arith.constant 0 : index
    %c0_250 = arith.constant 0 : index
    %280 = vector.load %arg4[%c0_249, %c0_250] : memref<128x128xf32, #tpu.memory_space<vmem>>, vector<128x128xf32>
    %cst_251 = arith.constant dense<0.000000e+00> : vector<8x128xf32>
    %281 = tpu.matmul %279, %280, %cst_251 {dimension_numbers = #tpu.dot_dimension_numbers<[1], [0], [0], [1], [0, 0, 1, 1], [], []>} : vector<8x128xf32>, vector<128x128xf32>, vector<8x128xf32> -> vector<8x128xf32>
    %c0_252 = arith.constant 0 : index
    %c0_253 = arith.constant 0 : index
    %282 = vector.load %arg9[%c0_252, %c0_253] : memref<8x128xf32, #tpu.memory_space<vmem>>, vector<8x128xf32>
    %c0_254 = arith.constant 0 : index
    %c0_255 = arith.constant 0 : index
    %283 = vector.load %arg5[%c0_254, %c0_255] : memref<128x128xf32, #tpu.memory_space<vmem>>, vector<128x128xf32>
    %cst_256 = arith.constant dense<0.000000e+00> : vector<8x128xf32>
    %284 = tpu.matmul %282, %283, %cst_256 {dimension_numbers = #tpu.dot_dimension_numbers<[1], [0], [0], [1], [0, 0, 1, 1], [], []>} : vector<8x128xf32>, vector<128x128xf32>, vector<8x128xf32> -> vector<8x128xf32>
    %285 = arith.addf %281, %284 : vector<8x128xf32>
    %c0_257 = arith.constant 0 : index
    %c0_258 = arith.constant 0 : index
    %286 = vector.load %arg6[%c0_257, %c0_258] : memref<1x128xf32, #tpu.memory_space<vmem>>, vector<1x128xf32>
    %287 = vector.broadcast %286 : vector<1x128xf32> to vector<8x128xf32>
    %288 = arith.addf %285, %287 : vector<8x128xf32>
    %289 = math.tanh %288 : vector<8x128xf32>
    %c0_259 = arith.constant 0 : index
    %c0_260 = arith.constant 0 : index
    %290 = vector.load %arg8[%c0_259, %c0_260] : memref<8x128xf32, #tpu.memory_space<vmem>>, vector<8x128xf32>
    tpu.vector_store %arg8[%c0_259, %c0_260], %276 {strides = array<i32>} : memref<8x128xf32, #tpu.memory_space<vmem>>, vector<8x128xf32>,
    %c0_261 = arith.constant 0 : index
    %c0_262 = arith.constant 0 : index
    %291 = vector.load %arg9[%c0_261, %c0_262] : memref<8x128xf32, #tpu.memory_space<vmem>>, vector<8x128xf32>
    tpu.vector_store %arg9[%c0_261, %c0_262], %289 {strides = array<i32>} : memref<8x128xf32, #tpu.memory_space<vmem>>, vector<8x128xf32>,
    %292 = arith.index_cast %c7_i32_233 : i32 to index
    %c0_263 = arith.constant 0 : index
    %c0_264 = arith.constant 0 : index
    %293 = vector.load %arg7[%292, %c0_263, %c0_264] : memref<8x8x256xf32, #tpu.memory_space<vmem>>, vector<1x8x128xf32>
    %294 = vector.shape_cast %293 : vector<1x8x128xf32> to vector<8x128xf32>
    %295 = vector.shape_cast %276 : vector<8x128xf32> to vector<1x8x128xf32>
    tpu.vector_store %arg7[%292, %c0_263, %c0_264], %295 {strides = array<i32>} : memref<8x8x256xf32, #tpu.memory_space<vmem>>, vector<1x8x128xf32>,
    %296 = arith.index_cast %263 : i32 to index
    %c0_265 = arith.constant 0 : index
    %c128_266 = arith.constant 128 : index
    %297 = vector.load %arg7[%296, %c0_265, %c128_266] : memref<8x8x256xf32, #tpu.memory_space<vmem>>, vector<1x8x128xf32>
    %298 = vector.shape_cast %297 : vector<1x8x128xf32> to vector<8x128xf32>
    %299 = vector.shape_cast %289 : vector<8x128xf32> to vector<1x8x128xf32>
    tpu.vector_store %arg7[%296, %c0_265, %c128_266], %299 {strides = array<i32>} : memref<8x8x256xf32, #tpu.memory_space<vmem>>, vector<1x8x128xf32>,
    %c8_i32 = arith.constant 8 : i32
    return
  }
}

</mosaic_0001>

<bundles_post_ra>
// kernel: tpu_custom_call.1
= control target key start
LH: loop header
LB: loop body
LE: loop exit
PB: predicated region body
PF: predicated region fallthrough
CT: control target
= control target key end

     0   :  { %12 = vsyncpa [#allocation5], 0  ;;  %s6567_s0 = inlined_call_operand.hbm [shape: f32[8,8,128], index: 0, kind: input, shape index: {}]   ;;  %s6568_s1 = inlined_call_operand.hbm [shape: f32[128,128], index: 1, kind: input, shape index: {}]   ;;  %s6569_s2 = inlined_call_operand.hbm [shape: f32[128,128], index: 2, kind: input, shape index: {}]   ;;  %s6570_s3 = inlined_call_operand.vmem [shape: f32[1,128], index: 3, kind: input, shape index: {}]   ;;  %s6571_s4 = inlined_call_operand.hbm [shape: f32[128,128], index: 4, kind: input, shape index: {}]   ;;  %s6572_s5 = inlined_call_operand.hbm [shape: f32[128,128], index: 5, kind: input, shape index: {}]   ;;  %s6573_s6 = inlined_call_operand.vmem [shape: f32[1,128], index: 6, kind: input, shape index: {}]   ;;  %s6574_s7 = inlined_call_operand.hbm [shape: f32[8,8,256], index: 7, kind: output, shape index: {}]  }
   0x1   :  { %13 = vsyncpa [#allocation8], 0 }
   0x2   :  { %14 = vsyncpa [#allocation11], 0 }
   0x3   :  { %15 = vsyncpa [#allocation6], 0  ;;  %s4942_s24 = smov [#allocation7]   ;;  %s4943_s26 = smov [#allocation10]  }
   0x4   :  { %s33_s25 = sshll.u32 %s4942_s24, 4  ;;  %s59_s27 = sshll.u32 %s4943_s26, 4  ;;  %s34_s25 = int_to_ptr.vmem [resolvable:$true] %s33_s25  ;;  %s60_s27 = int_to_ptr.vmem [resolvable:$true] %s59_s27 }
   0x5   :  { %s4822_s28 = scalar_lea.vmem %s34_s25, 2048  ;;  %p4827_p1 = scmp.lt.s32.totalorder %s34_s25, %s34_s25 }
   0x6   :  { %p4823_p0 = scmp.ne.s32.totalorder %s34_s25, %s4822_s28  ;;  %p4828_p2 = scmp.lt.s32.totalorder %s4822_s28, %s4822_s28 }
   0x8   :  { %p4829_p3 = por %p4828_p2, %p4827_p1 }
   0xa   :  { %p4830_p4 = pnand %p4829_p3, %p4823_p0 }
   0xc   :  { %4833 = shalt.err (!%p4830_p4)
}
   0xd   :  { %s4944_s29 = smov 128   ;;  %s4945_s30 = smov 8  }
   0xe   :  { %39 = dma.hbm_to_vmem [thread:$0]  %s6568_s1, 2048, %s34_s25, [#allocation8], %s4944_s29, %s4944_s29, %s4945_s30  }
   0xf   :  { %s4842_s10 = scalar_lea.vmem %s60_s27, 2048  ;;  %p4847_p6 = scmp.lt.s32.totalorder %s60_s27, %s60_s27 }
  0x10   :  { %p4843_p5 = scmp.ne.s32.totalorder %s60_s27, %s4842_s10  ;;  %p4848_p7 = scmp.lt.s32.totalorder %s4842_s10, %s4842_s10 }
  0x12   :  { %p4849_p8 = por %p4848_p7, %p4847_p6 }
  0x14   :  { %p4850_p9 = pnand %p4849_p8, %p4843_p5 }
  0x16   :  { %4853 = shalt.err (!%p4850_p9)
}
  0x17   :  { %65 = dma.hbm_to_vmem [thread:$0]  %s6571_s4, 2048, %s60_s27, [#allocation11], %s4944_s29, %s4944_s29, %s4945_s30  }
  0x18   :  { %s4946_s13 = smov [#allocation4]   ;;  %s4947_s15 = smov [#allocation9]  }
  0x19   :  { %s21_s14 = sshll.u32 %s4946_s13, 4  ;;  %s45_s16 = sshll.u32 %s4947_s15, 4  ;;  %s22_s14 = int_to_ptr.vmem [resolvable:$true] %s21_s14  ;;  %s46_s16 = int_to_ptr.vmem [resolvable:$true] %s45_s16 }
  0x1a   :  { %s4862_s1 = scalar_lea.vmem %s22_s14, 1024  ;;  %p4867_p11 = scmp.lt.s32.totalorder %s22_s14, %s22_s14 }
  0x1b   :  { %p4863_p10 = scmp.ne.s32.totalorder %s22_s14, %s4862_s1  ;;  %p4868_p12 = scmp.lt.s32.totalorder %s4862_s1, %s4862_s1 }
  0x1d   :  { %p4869_p13 = por %p4868_p12, %p4867_p11 }
  0x1f   :  { %p4870_p0 = pnand %p4869_p13, %p4863_p10 }
  0x21   :  { %4873 = shalt.err (!%p4870_p0)
}
  0x22   :  { %27 = dma.hbm_to_vmem [thread:$0]  %s6567_s0, 1024, %s22_s14, [#allocation5], %s4944_s29, %s4944_s29, %s4945_s30  }
  0x23   :  { %s4882_s4 = scalar_lea.vmem %s46_s16, 2048  ;;  %p4887_p2 = scmp.lt.s32.totalorder %s46_s16, %s46_s16 }
  0x24   :  { %p4883_p1 = scmp.ne.s32.totalorder %s46_s16, %s4882_s4  ;;  %p4888_p3 = scmp.lt.s32.totalorder %s4882_s4, %s4882_s4 }
  0x26   :  { %p4889_p4 = por %p4888_p3, %p4887_p2 }
  0x28   :  { %p4890_p5 = pnand %p4889_p4, %p4883_p1 }
  0x2a   :  { %4893 = shalt.err (!%p4890_p5)
}
  0x2b   :  { %51 = dma.hbm_to_vmem [thread:$0]  %s6569_s2, 2048, %s46_s16, [#allocation8], %s4944_s29, %s4944_s29, %s4945_s30  }
  0x2c   :  { %s4948_s21 = smov [#allocation12]  }
  0x2d   :  { %s71_s22 = sshll.u32 %s4948_s21, 4  ;;  %s72_s22 = int_to_ptr.vmem [resolvable:$true] %s71_s22 }
  0x2e   :  { %s4902_s23 = scalar_lea.vmem %s72_s22, 2048  ;;  %p4907_p7 = scmp.lt.s32.totalorder %s72_s22, %s72_s22 }
  0x2f   :  { %p4903_p6 = scmp.ne.s32.totalorder %s72_s22, %s4902_s23  ;;  %p4908_p8 = scmp.lt.s32.totalorder %s4902_s23, %s4902_s23 }
  0x31   :  { %p4909_p9 = por %p4908_p8, %p4907_p7 }
  0x33   :  { %p4910_p10 = pnand %p4909_p9, %p4903_p6 }
  0x35   :  { %4913 = shalt.err (!%p4910_p10)
}
  0x36   :  { %77 = dma.hbm_to_vmem [thread:$0]  %s6572_s5, 2048, %s72_s22, [#allocation11], %s4944_s29, %s4944_s29, %s4945_s30  }
  0x37   :  { %4934 = dma.done.wait [#allocation5], 1024  }
  0x38   :  { %4935 = vsyncadd [#allocation5], 4294966272 }
  0x39   :  { %4936 = dma.done.wait [#allocation8], 4096  }
  0x3a   :  { %4937 = vsyncadd [#allocation8], 4294963200 }
  0x3b   :  { %4938 = dma.done.wait [#allocation11], 4096  }
  0x3c   :  { %4939 = vsyncadd [#allocation11], 4294963200  ;;  %v4949_v0 = vmov 0.0   ;;  %vm4950_vm0 = vmmov 0   ;;  %v5030_v1 = vld [vmem:[#allocation9 + $0x78] sm:$0xff]  ;;  %v5034_v3 = vld [vmem:[#allocation9 + $0x70] sm:$0xff] }
  0x3d   :  { %3650 = vmatprep.subr.mxu0 %v4949_v0  ;;  %3685 = vmatprep.subr.mxu1 %v4949_v0  ;;  %v5032_v2 = vld [vmem:[#allocation7 + $0x78] sm:$0xff]  ;;  %v5038_v4 = vld [vmem:[#allocation7 + $0x70] sm:$0xff]  ;;  %v5042_v5 = vld [vmem:[#allocation9 + $0x68] sm:$0xff] }
  0x3e   :  { %3682 = vmatprep.mubr.msk.f32.mxu0 %vm4950_vm0, %v4949_v0  ;;  %3717 = vmatprep.mubr.msk.f32.mxu1 %vm4950_vm0, %v4949_v0  ;;  %v5044_v6 = vld [vmem:[#allocation7 + $0x68] sm:$0xff]  ;;  %v5050_v7 = vld [vmem:[#allocation9 + $0x60] sm:$0xff]  ;;  %v5058_v9 = vld [vmem:[#allocation9 + $0x58] sm:$0xff] }
  0x3f   :  { %3651 = vmatpush3.msra.mxu0 %v5030_v1  ;;  %3686 = vmatpush3.msra.mxu1 %v5032_v2  ;;  %v5052_v8 = vld [vmem:[#allocation7 + $0x60] sm:$0xff]  ;;  %v5060_v10 = vld [vmem:[#allocation7 + $0x58] sm:$0xff]  ;;  %v5066_v11 = vld [vmem:[#allocation9 + $0x50] sm:$0xff] }
  0x40   :  { %3652 = vmatprep.subr.mxu0 %v4949_v0  ;;  %3687 = vmatprep.subr.mxu1 %v4949_v0  ;;  %v5068_v12 = vld [vmem:[#allocation7 + $0x50] sm:$0xff]  ;;  %v5074_v13 = vld [vmem:[#allocation9 + $0x48] sm:$0xff]  ;;  %v5082_v15 = vld [vmem:[#allocation9 + $0x40] sm:$0xff] }
  0x41   :  { %3653 = vmatpush3.msra.mxu0 %v5034_v3  ;;  %3688 = vmatpush3.msra.mxu1 %v5038_v4  ;;  %v5076_v14 = vld [vmem:[#allocation7 + $0x48] sm:$0xff]  ;;  %v5084_v16 = vld [vmem:[#allocation7 + $0x40] sm:$0xff]  ;;  %v5090_v17 = vld [vmem:[#allocation9 + $0x38] sm:$0xff] }
  0x42   :  { %3654 = vmatprep.subr.mxu0 %v4949_v0  ;;  %3689 = vmatprep.subr.mxu1 %v4949_v0  ;;  %v5092_v18 = vld [vmem:[#allocation7 + $0x38] sm:$0xff]  ;;  %v5098_v19 = vld [vmem:[#allocation9 + $0x30] sm:$0xff]  ;;  %v5106_v21 = vld [vmem:[#allocation9 + $0x28] sm:$0xff] }
  0x43   :  { %3655 = vmatpush3.msra.mxu0 %v5042_v5  ;;  %3690 = vmatpush3.msra.mxu1 %v5044_v6  ;;  %v5100_v20 = vld [vmem:[#allocation7 + $0x30] sm:$0xff]  ;;  %v5108_v22 = vld [vmem:[#allocation7 + $0x28] sm:$0xff]  ;;  %v5114_v23 = vld [vmem:[#allocation9 + $0x20] sm:$0xff] }
  0x44   :  { %3656 = vmatprep.subr.mxu0 %v4949_v0  ;;  %3691 = vmatprep.subr.mxu1 %v4949_v0  ;;  %v5116_v24 = vld [vmem:[#allocation7 + $0x20] sm:$0xff]  ;;  %v5122_v25 = vld [vmem:[#allocation9 + $0x18] sm:$0xff]  ;;  %v5130_v27 = vld [vmem:[#allocation9 + $0x10] sm:$0xff] }
  0x45   :  { %3657 = vmatpush3.msra.mxu0 %v5050_v7  ;;  %3692 = vmatpush3.msra.mxu1 %v5052_v8  ;;  %v5124_v26 = vld [vmem:[#allocation7 + $0x18] sm:$0xff]  ;;  %v5132_v28 = vld [vmem:[#allocation7 + $0x10] sm:$0xff]  ;;  %v5138_v29 = vld [vmem:[#allocation9 + $0x8] sm:$0xff] }
  0x46   :  { %3658 = vmatprep.subr.mxu0 %v4949_v0  ;;  %3693 = vmatprep.subr.mxu1 %v4949_v0  ;;  %v5140_v30 = vld [vmem:[#allocation7 + $0x8] sm:$0xff]  ;;  %v5146_v31 = vld [vmem:[#allocation9] sm:$0xff]  ;;  %v5156_v34 = vld [vmem:[#allocation12 + $0x78] sm:$0xff] }
  0x47   :  { %3659 = vmatpush3.msra.mxu0 %v5058_v9  ;;  %3694 = vmatpush3.msra.mxu1 %v5060_v10  ;;  %v5148_v32 = vld [vmem:[#allocation7] sm:$0xff]  ;;  %v5158_v35 = vld [vmem:[#allocation10 + $0x78] sm:$0xff]  ;;  %v5163_v36 = vld [vmem:[#allocation12 + $0x70] sm:$0xff] }
  0x48   :  { %3660 = vmatprep.subr.mxu0 %v4949_v0  ;;  %3695 = vmatprep.subr.mxu1 %v4949_v0  ;;  %v97_v33 = vld [vmem:[#allocation4] sm:$0xff]  ;;  %v5165_v37 = vld [vmem:[#allocation10 + $0x70] sm:$0xff]  ;;  %v5171_v38 = vld [vmem:[#allocation12 + $0x68] sm:$0xff] }
  0x49   :  { %3661 = vmatpush3.msra.mxu0 %v5066_v11  ;;  %3696 = vmatpush3.msra.mxu1 %v5068_v12  ;;  %v5173_v39 = vld [vmem:[#allocation10 + $0x68] sm:$0xff]  ;;  %v5179_v40 = vld [vmem:[#allocation12 + $0x60] sm:$0xff]  ;;  %v5187_v42 = vld [vmem:[#allocation12 + $0x58] sm:$0xff] }
  0x4a   :  { %3662 = vmatprep.subr.mxu0 %v4949_v0  ;;  %3697 = vmatprep.subr.mxu1 %v4949_v0  ;;  %v5181_v41 = vld [vmem:[#allocation10 + $0x60] sm:$0xff]  ;;  %v5189_v43 = vld [vmem:[#allocation10 + $0x58] sm:$0xff]  ;;  %v5195_v44 = vld [vmem:[#allocation12 + $0x50] sm:$0xff] }
  0x4b   :  { %3663 = vmatpush3.msra.mxu0 %v5074_v13  ;;  %3698 = vmatpush3.msra.mxu1 %v5076_v14  ;;  %v5197_v45 = vld [vmem:[#allocation10 + $0x50] sm:$0xff]  ;;  %v5203_v46 = vld [vmem:[#allocation12 + $0x48] sm:$0xff]  ;;  %v5211_v48 = vld [vmem:[#allocation12 + $0x40] sm:$0xff] }
  0x4c   :  { %3664 = vmatprep.subr.mxu0 %v4949_v0  ;;  %3699 = vmatprep.subr.mxu1 %v4949_v0  ;;  %v5205_v47 = vld [vmem:[#allocation10 + $0x48] sm:$0xff]  ;;  %v5213_v49 = vld [vmem:[#allocation10 + $0x40] sm:$0xff]  ;;  %v5219_v50 = vld [vmem:[#allocation12 + $0x38] sm:$0xff] }
  0x4d   :  { %3665 = vmatpush3.msra.mxu0 %v5082_v15  ;;  %3700 = vmatpush3.msra.mxu1 %v5084_v16  ;;  %v5221_v51 = vld [vmem:[#allocation10 + $0x38] sm:$0xff]  ;;  %v5227_v52 = vld [vmem:[#allocation12 + $0x30] sm:$0xff]  ;;  %v5235_v54 = vld [vmem:[#allocation12 + $0x28] sm:$0xff] }
  0x4e   :  { %3666 = vmatprep.subr.mxu0 %v4949_v0  ;;  %3701 = vmatprep.subr.mxu1 %v4949_v0  ;;  %v5229_v53 = vld [vmem:[#allocation10 + $0x30] sm:$0xff]  ;;  %v5237_v55 = vld [vmem:[#allocation10 + $0x28] sm:$0xff]  ;;  %v5243_v56 = vld [vmem:[#allocation12 + $0x20] sm:$0xff] }
  0x4f   :  { %3667 = vmatpush3.msra.mxu0 %v5090_v17  ;;  %3702 = vmatpush3.msra.mxu1 %v5092_v18  ;;  %6579 = vst [vmem:[#allocation18_spill] sm:$0xff] %v5243_v56  ;;  %v5245_v57 = vld [vmem:[#allocation10 + $0x20] sm:$0xff]  ;;  %v5251_v58 = vld [vmem:[#allocation12 + $0x18] sm:$0xff]  ;;  %v5259_v60 = vld [vmem:[#allocation12 + $0x10] sm:$0xff] }
  0x50   :  { %3668 = vmatprep.subr.mxu0 %v4949_v0  ;;  %3703 = vmatprep.subr.mxu1 %v4949_v0  ;;  %6580 = vst [vmem:[#allocation19_spill] sm:$0xff] %v5251_v58  ;;  %v5253_v59 = vld [vmem:[#allocation10 + $0x18] sm:$0xff]  ;;  %v5261_v61 = vld [vmem:[#allocation10 + $0x10] sm:$0xff]  ;;  %v5267_v62 = vld [vmem:[#allocation12 + $0x8] sm:$0xff] }
  0x51   :  { %3669 = vmatpush3.msra.mxu0 %v5098_v19  ;;  %3704 = vmatpush3.msra.mxu1 %v5100_v20  ;;  %v5269_v63 = vld [vmem:[#allocation10 + $0x8] sm:$0xff] }
  0x52   :  { %3670 = vmatprep.subr.mxu0 %v4949_v0  ;;  %3705 = vmatprep.subr.mxu1 %v4949_v0 }
  0x53   :  { %3671 = vmatpush3.msra.mxu0 %v5106_v21  ;;  %3706 = vmatpush3.msra.mxu1 %v5108_v22 }
  0x54   :  { %3672 = vmatprep.subr.mxu0 %v4949_v0  ;;  %3707 = vmatprep.subr.mxu1 %v4949_v0 }
  0x55   :  { %3673 = vmatpush3.msra.mxu0 %v5114_v23  ;;  %3708 = vmatpush3.msra.mxu1 %v5116_v24 }
  0x56   :  { %3674 = vmatprep.subr.mxu0 %v4949_v0  ;;  %3709 = vmatprep.subr.mxu1 %v4949_v0 }
  0x57   :  { %3675 = vmatpush3.msra.mxu0 %v5122_v25  ;;  %3710 = vmatpush3.msra.mxu1 %v5124_v26 }
  0x58   :  { %3676 = vmatprep.subr.mxu0 %v4949_v0  ;;  %3711 = vmatprep.subr.mxu1 %v4949_v0 }
  0x59   :  { %3677 = vmatpush3.msra.mxu0 %v5130_v27  ;;  %3712 = vmatpush3.msra.mxu1 %v5132_v28 }
  0x5a   :  { %3678 = vmatprep.subr.mxu0 %v4949_v0  ;;  %3713 = vmatprep.subr.mxu1 %v4949_v0 }
  0x5b   :  { %3679 = vmatpush3.msra.mxu0 %v5138_v29  ;;  %3714 = vmatpush3.msra.mxu1 %v5140_v30 }
  0x5c   :  { %3680 = vmatprep.subr.mxu0 %v4949_v0  ;;  %3715 = vmatprep.subr.mxu1 %v4949_v0 }
  0x5d   :  { %3681 = vmatpush3.msra.mxu0 %v5146_v31  ;;  %3716 = vmatpush3.msra.mxu1 %v5148_v32 }
  0x5e   :  { %3683 = vmatmul.mubr.f32.vlgmr.msra.gmra.mxu0 %v4949_v0  ;;  %3718 = vmatmul.mubr.f32.vlgmr.msra.gmra.mxu1 %v97_v33  ;;  %v5275_v33 = vld [vmem:[#allocation12] sm:$0xff] }
  0x5f   :  { %3720 = vmatprep.subr.mxu0 %v4949_v0  ;;  %3755 = vmatprep.subr.mxu1 %v4949_v0 }
  0x60   :  { %3721 = vmatpush3.msra.mxu0 %v5156_v34  ;;  %3756 = vmatpush3.msra.mxu1 %v5158_v35 }
  0x61   :  { %3722 = vmatprep.subr.mxu0 %v4949_v0  ;;  %3757 = vmatprep.subr.mxu1 %v4949_v0 }
  0x62   :  { %3723 = vmatpush3.msra.mxu0 %v5163_v36  ;;  %3758 = vmatpush3.msra.mxu1 %v5165_v37 }
  0x63   :  { %3724 = vmatprep.subr.mxu0 %v4949_v0  ;;  %3759 = vmatprep.subr.mxu1 %v4949_v0 }
  0x64   :  { %3725 = vmatpush3.msra.mxu0 %v5171_v38  ;;  %3760 = vmatpush3.msra.mxu1 %v5173_v39 }
  0x65   :  { %3726 = vmatprep.subr.mxu0 %v4949_v0  ;;  %3761 = vmatprep.subr.mxu1 %v4949_v0 }
  0x66   :  { %3727 = vmatpush3.msra.mxu0 %v5179_v40  ;;  %3762 = vmatpush3.msra.mxu1 %v5181_v41 }
  0x67   :  { %3728 = vmatprep.subr.mxu0 %v4949_v0  ;;  %3763 = vmatprep.subr.mxu1 %v4949_v0 }
  0x68   :  { %3729 = vmatpush3.msra.mxu0 %v5187_v42  ;;  %3764 = vmatpush3.msra.mxu1 %v5189_v43 }
  0x69   :  { %3730 = vmatprep.subr.mxu0 %v4949_v0  ;;  %3765 = vmatprep.subr.mxu1 %v4949_v0 }
  0x6a   :  { %3731 = vmatpush3.msra.mxu0 %v5195_v44  ;;  %3766 = vmatpush3.msra.mxu1 %v5197_v45 }
  0x6b   :  { %3732 = vmatprep.subr.mxu0 %v4949_v0  ;;  %3767 = vmatprep.subr.mxu1 %v4949_v0 }
  0x6c   :  { %3733 = vmatpush3.msra.mxu0 %v5203_v46  ;;  %3768 = vmatpush3.msra.mxu1 %v5205_v47 }
  0x6d   :  { %3734 = vmatprep.subr.mxu0 %v4949_v0  ;;  %3769 = vmatprep.subr.mxu1 %v4949_v0 }
  0x6e   :  { %3735 = vmatpush3.msra.mxu0 %v5211_v48  ;;  %3770 = vmatpush3.msra.mxu1 %v5213_v49 }
  0x6f   :  { %3736 = vmatprep.subr.mxu0 %v4949_v0  ;;  %3771 = vmatprep.subr.mxu1 %v4949_v0 }
  0x70   :  { %3737 = vmatpush3.msra.mxu0 %v5219_v50  ;;  %3772 = vmatpush3.msra.mxu1 %v5221_v51 }
  0x71   :  { %3738 = vmatprep.subr.mxu0 %v4949_v0  ;;  %3773 = vmatprep.subr.mxu1 %v4949_v0 }
  0x72   :  { %3739 = vmatpush3.msra.mxu0 %v5227_v52  ;;  %3774 = vmatpush3.msra.mxu1 %v5229_v53 }
  0x73   :  { %3740 = vmatprep.subr.mxu0 %v4949_v0  ;;  %3775 = vmatprep.subr.mxu1 %v4949_v0 }
  0x74   :  { %3741 = vmatpush3.msra.mxu0 %v5235_v54  ;;  %3776 = vmatpush3.msra.mxu1 %v5237_v55 }
  0x75   :  { %3742 = vmatprep.subr.mxu0 %v4949_v0  ;;  %3777 = vmatprep.subr.mxu1 %v4949_v0 }
  0x76   :  { %3743 = vmatpush3.msra.mxu0 %v5243_v56  ;;  %3778 = vmatpush3.msra.mxu1 %v5245_v57  ;;  %v281_v56 = vld [vmem:[#allocation4 + $0x38] sm:$0xff] }
  0x77   :  { %3744 = vmatprep.subr.mxu0 %v4949_v0  ;;  %3779 = vmatprep.subr.mxu1 %v4949_v0 }
  0x78   :  { %3745 = vmatpush3.msra.mxu0 %v5251_v58  ;;  %3780 = vmatpush3.msra.mxu1 %v5253_v59  ;;  %v5279_v58 = vld [vmem:[#allocation10] sm:$0xff] }
  0x79   :  { %3746 = vmatprep.subr.mxu0 %v4949_v0  ;;  %3781 = vmatprep.subr.mxu1 %v4949_v0 }
  0x7a   :  { %3747 = vmatpush3.msra.mxu0 %v5259_v60  ;;  %3782 = vmatpush3.msra.mxu1 %v5261_v61 }
  0x7b   :  { %3748 = vmatprep.subr.mxu0 %v4949_v0  ;;  %3783 = vmatprep.subr.mxu1 %v4949_v0 }
  0x7c   :  { %3749 = vmatpush3.msra.mxu0 %v5267_v62  ;;  %3784 = vmatpush3.msra.mxu1 %v5269_v63 }
  0x7d   :  { %3750 = vmatprep.subr.mxu0 %v4949_v0  ;;  %3785 = vmatprep.subr.mxu1 %v4949_v0 }
  0x7e   :  { %3751 = vmatpush3.msra.mxu0 %v5275_v33  ;;  %3752 = vmatprep.mubr.msk.f32.mxu0 %vm4950_vm0, %v4949_v0 }
  0x7f   :  { %3786 = vmatpush3.msra.mxu1 %v5279_v58  ;;  %3787 = vmatprep.mubr.msk.f32.mxu1 %vm4950_vm0, %v4949_v0 }
  0x80   :  { %3753 = vmatmul.mubr.f32.vlgmr.msra.gmra.mxu0 %v4949_v0  ;;  %3788 = vmatmul.mubr.f32.vlgmr.msra.gmra.mxu1 %v281_v56  ;;  %v470_v56 = vld [vmem:[#allocation4 + $0x8] sm:$0xff] }
  0x81   :  { %3825 = vmatprep.subr.mxu1 %v4949_v0  ;;  %3790 = vmatprep.subr.mxu0 %v4949_v0 }
  0x82   :  { %3826 = vmatpush3.msra.mxu1 %v5032_v2  ;;  %3791 = vmatpush3.msra.mxu0 %v5030_v1 }
  0x83   :  { %3827 = vmatprep.subr.mxu1 %v4949_v0  ;;  %3792 = vmatprep.subr.mxu0 %v4949_v0 }
  0x84   :  { %3828 = vmatpush3.msra.mxu1 %v5038_v4  ;;  %3793 = vmatpush3.msra.mxu0 %v5034_v3 }
  0x85   :  { %3829 = vmatprep.subr.mxu1 %v4949_v0  ;;  %3794 = vmatprep.subr.mxu0 %v4949_v0 }
  0x86   :  { %3830 = vmatpush3.msra.mxu1 %v5044_v6  ;;  %3795 = vmatpush3.msra.mxu0 %v5042_v5 }
  0x87   :  { %3831 = vmatprep.subr.mxu1 %v4949_v0  ;;  %3796 = vmatprep.subr.mxu0 %v4949_v0 }
  0x88   :  { %3832 = vmatpush3.msra.mxu1 %v5052_v8  ;;  %3797 = vmatpush3.msra.mxu0 %v5050_v7 }
  0x89   :  { %3833 = vmatprep.subr.mxu1 %v4949_v0  ;;  %3798 = vmatprep.subr.mxu0 %v4949_v0 }
  0x8a   :  { %3834 = vmatpush3.msra.mxu1 %v5060_v10  ;;  %3799 = vmatpush3.msra.mxu0 %v5058_v9 }
  0x8b   :  { %3835 = vmatprep.subr.mxu1 %v4949_v0  ;;  %3800 = vmatprep.subr.mxu0 %v4949_v0 }
  0x8c   :  { %3836 = vmatpush3.msra.mxu1 %v5068_v12  ;;  %3801 = vmatpush3.msra.mxu0 %v5066_v11 }
  0x8d   :  { %3837 = vmatprep.subr.mxu1 %v4949_v0  ;;  %3802 = vmatprep.subr.mxu0 %v4949_v0 }
  0x8e   :  { %3838 = vmatpush3.msra.mxu1 %v5076_v14  ;;  %3803 = vmatpush3.msra.mxu0 %v5074_v13 }
  0x8f   :  { %3839 = vmatprep.subr.mxu1 %v4949_v0  ;;  %3804 = vmatprep.subr.mxu0 %v4949_v0 }
  0x90   :  { %3840 = vmatpush3.msra.mxu1 %v5084_v16  ;;  %3805 = vmatpush3.msra.mxu0 %v5082_v15 }
  0x91   :  { %3841 = vmatprep.subr.mxu1 %v4949_v0  ;;  %3806 = vmatprep.subr.mxu0 %v4949_v0 }
  0x92   :  { %3842 = vmatpush3.msra.mxu1 %v5092_v18  ;;  %3807 = vmatpush3.msra.mxu0 %v5090_v17 }
  0x93   :  { %3843 = vmatprep.subr.mxu1 %v4949_v0  ;;  %3808 = vmatprep.subr.mxu0 %v4949_v0 }
  0x94   :  { %3844 = vmatpush3.msra.mxu1 %v5100_v20  ;;  %3809 = vmatpush3.msra.mxu0 %v5098_v19 }
  0x95   :  { %3845 = vmatprep.subr.mxu1 %v4949_v0  ;;  %3810 = vmatprep.subr.mxu0 %v4949_v0 }
  0x96   :  { %3846 = vmatpush3.msra.mxu1 %v5108_v22  ;;  %3811 = vmatpush3.msra.mxu0 %v5106_v21 }
  0x97   :  { %3847 = vmatprep.subr.mxu1 %v4949_v0  ;;  %3812 = vmatprep.subr.mxu0 %v4949_v0 }
  0x98   :  { %3848 = vmatpush3.msra.mxu1 %v5116_v24  ;;  %3813 = vmatpush3.msra.mxu0 %v5114_v23 }
  0x99   :  { %3849 = vmatprep.subr.mxu1 %v4949_v0  ;;  %3814 = vmatprep.subr.mxu0 %v4949_v0 }
  0x9a   :  { %3850 = vmatpush3.msra.mxu1 %v5124_v26  ;;  %3815 = vmatpush3.msra.mxu0 %v5122_v25 }
  0x9b   :  { %3851 = vmatprep.subr.mxu1 %v4949_v0  ;;  %3816 = vmatprep.subr.mxu0 %v4949_v0 }
  0x9c   :  { %3852 = vmatpush3.msra.mxu1 %v5132_v28  ;;  %3817 = vmatpush3.msra.mxu0 %v5130_v27 }
  0x9d   :  { %3853 = vmatprep.subr.mxu1 %v4949_v0  ;;  %3818 = vmatprep.subr.mxu0 %v4949_v0 }
  0x9e   :  { %3854 = vmatpush3.msra.mxu1 %v5140_v30  ;;  %3819 = vmatpush3.msra.mxu0 %v5138_v29 }
  0x9f   :  { %3855 = vmatprep.subr.mxu1 %v4949_v0  ;;  %3820 = vmatprep.subr.mxu0 %v4949_v0 }
  0xa0   :  { %3856 = vmatpush3.msra.mxu1 %v5148_v32  ;;  %3857 = vmatprep.mubr.msk.f32.mxu1 %vm4950_vm0, %v4949_v0 }
  0xa1   :  { %3895 = vmatprep.subr.mxu1 %v4949_v0  ;;  %3821 = vmatpush3.msra.mxu0 %v5146_v31 }
  0xa2   :  { %3822 = vmatprep.mubr.msk.f32.mxu0 %vm4950_vm0, %v4949_v0  ;;  %3860 = vmatprep.subr.mxu0 %v4949_v0 }
  0xa3   :  { %3858 = vmatmul.mubr.f32.vlgmr.msra.gmra.mxu1 %v470_v56  ;;  %v654_v56 = vld [vmem:[#allocation4 + $0x30] sm:$0xff] }
  0xa4   :  { %3896 = vmatpush3.msra.mxu1 %v5158_v35  ;;  %3927 = vmatprep.mubr.msk.f32.mxu1 %vm4950_vm0, %v4949_v0 }
  0xa5   :  { %3897 = vmatprep.subr.mxu1 %v4949_v0 }
  0xa6   :  { %3898 = vmatpush3.msra.mxu1 %v5165_v37 }
  0xa7   :  { %3899 = vmatprep.subr.mxu1 %v4949_v0 }
  0xa8   :  { %3900 = vmatpush3.msra.mxu1 %v5173_v39 }
  0xa9   :  { %3901 = vmatprep.subr.mxu1 %v4949_v0 }
  0xaa   :  { %3902 = vmatpush3.msra.mxu1 %v5181_v41 }
  0xab   :  { %3903 = vmatprep.subr.mxu1 %v4949_v0 }
  0xac   :  { %3904 = vmatpush3.msra.mxu1 %v5189_v43 }
  0xad   :  { %3905 = vmatprep.subr.mxu1 %v4949_v0 }
  0xae   :  { %3906 = vmatpush3.msra.mxu1 %v5197_v45 }
  0xaf   :  { %3907 = vmatprep.subr.mxu1 %v4949_v0 }
  0xb0   :  { %3908 = vmatpush3.msra.mxu1 %v5205_v47 }
  0xb1   :  { %3909 = vmatprep.subr.mxu1 %v4949_v0 }
  0xb2   :  { %3910 = vmatpush3.msra.mxu1 %v5213_v49 }
  0xb3   :  { %3911 = vmatprep.subr.mxu1 %v4949_v0 }
  0xb4   :  { %3912 = vmatpush3.msra.mxu1 %v5221_v51 }
  0xb5   :  { %3913 = vmatprep.subr.mxu1 %v4949_v0 }
  0xb6   :  { %3914 = vmatpush3.msra.mxu1 %v5229_v53 }
  0xb7   :  { %3915 = vmatprep.subr.mxu1 %v4949_v0 }
  0xb8   :  { %3916 = vmatpush3.msra.mxu1 %v5237_v55 }
  0xb9   :  { %3917 = vmatprep.subr.mxu1 %v4949_v0 }
  0xba   :  { %3918 = vmatpush3.msra.mxu1 %v5245_v57 }
  0xbb   :  { %3919 = vmatprep.subr.mxu1 %v4949_v0 }
  0xbc   :  { %3920 = vmatpush3.msra.mxu1 %v5253_v59 }
  0xbd   :  { %3921 = vmatprep.subr.mxu1 %v4949_v0 }
  0xbe   :  { %3922 = vmatpush3.msra.mxu1 %v5261_v61 }
  0xbf   :  { %3923 = vmatprep.subr.mxu1 %v4949_v0 }
  0xc0   :  { %3924 = vmatpush3.msra.mxu1 %v5269_v63 }
  0xc1   :  { %3925 = vmatprep.subr.mxu1 %v4949_v0 }
  0xc2   :  { %3926 = vmatpush3.msra.mxu1 %v5279_v58 }
  0xc3   :  { %3928 = vmatmul.mubr.f32.vlgmr.msra.gmra.mxu1 %v654_v56  ;;  %3965 = vmatprep.subr.mxu1 %v4949_v0  ;;  %v6582_v56 = vld [vmem:[#allocation19_spill] sm:$0xff] }
  0xc4   :  { %3966 = vmatpush3.msra.mxu1 %v5032_v2  ;;  %3997 = vmatprep.mubr.msk.f32.mxu1 %vm4950_vm0, %v4949_v0 }
  0xc5   :  { %3967 = vmatprep.subr.mxu1 %v4949_v0 }
  0xc6   :  { %3968 = vmatpush3.msra.mxu1 %v5038_v4 }
  0xc7   :  { %3969 = vmatprep.subr.mxu1 %v4949_v0 }
  0xc8   :  { %3970 = vmatpush3.msra.mxu1 %v5044_v6  ;;  %v5431_v6 = vld [vmem:[%s6570_s3] ss:$0 sm:$0xff] }
  0xc9   :  { %3971 = vmatprep.subr.mxu1 %v4949_v0 }
  0xca   :  { %3972 = vmatpush3.msra.mxu1 %v5052_v8 }
  0xcb   :  { %3973 = vmatprep.subr.mxu1 %v4949_v0 }
  0xcc   :  { %3974 = vmatpush3.msra.mxu1 %v5060_v10 }
  0xcd   :  { %3975 = vmatprep.subr.mxu1 %v4949_v0 }
  0xce   :  { %3976 = vmatpush3.msra.mxu1 %v5068_v12 }
  0xcf   :  { %3977 = vmatprep.subr.mxu1 %v4949_v0 }
  0xd0   :  { %3978 = vmatpush3.msra.mxu1 %v5076_v14 }
  0xd1   :  { %3979 = vmatprep.subr.mxu1 %v4949_v0 }
  0xd2   :  { %3980 = vmatpush3.msra.mxu1 %v5084_v16 }
  0xd3   :  { %3981 = vmatprep.subr.mxu1 %v4949_v0 }
  0xd4   :  { %3982 = vmatpush3.msra.mxu1 %v5092_v18 }
  0xd5   :  { %3983 = vmatprep.subr.mxu1 %v4949_v0 }
  0xd6   :  { %3984 = vmatpush3.msra.mxu1 %v5100_v20 }
  0xd7   :  { %3985 = vmatprep.subr.mxu1 %v4949_v0 }
  0xd8   :  { %3986 = vmatpush3.msra.mxu1 %v5108_v22  ;;  %v5453_v22 = vld [vmem:[%s6573_s6] ss:$0 sm:$0xff] }
  0xd9   :  { %3987 = vmatprep.subr.mxu1 %v4949_v0 }
  0xda   :  { %3988 = vmatpush3.msra.mxu1 %v5116_v24 }
  0xdb   :  { %3989 = vmatprep.subr.mxu1 %v4949_v0 }
  0xdc   :  { %3990 = vmatpush3.msra.mxu1 %v5124_v26 }
  0xdd   :  { %3991 = vmatprep.subr.mxu1 %v4949_v0 }
  0xde   :  { %3992 = vmatpush3.msra.mxu1 %v5132_v28 }
  0xdf   :  { %3993 = vmatprep.subr.mxu1 %v4949_v0 }
  0xe0   :  { %3994 = vmatpush3.msra.mxu1 %v5140_v30 }
  0xe1   :  { %3995 = vmatprep.subr.mxu1 %v4949_v0 }
  0xe2   :  { %3996 = vmatpush3.msra.mxu1 %v5148_v32  ;;  %v6581_v32 = vld [vmem:[#allocation18_spill] sm:$0xff] }
  0xe3   :  { %4035 = vmatprep.subr.mxu1 %v4949_v0 }
 0x11e   :  { %v197_v2 = vpop.f32.mrf.mxu0  ;;  %v267_v4 = vpop.f32.mrf.mxu1 }
 0x11f   :  { %v268_v8 = vadd.f32 %v267_v4, %v197_v2  ;;  %v5700_v4 = vld [vmem:[#allocation7 + $0x8] sm:$0xff] }
 0x120   :  { %v3684_v10 = vpop.f32.mrf.mxu0  ;;  %v3719_v12 = vpop.f32.mrf.mxu1 }
 0x121   :  { %v278_v14 = vadd.f32 %v5431_v6, %v268_v8  ;;  %v5706_v8 = vld [vmem:[#allocation9 + $0x8] sm:$0xff]  ;;  %v5708_v10 = vld [vmem:[#allocation7] sm:$0xff] }
 0x122   :  { %v5714_v12 = vld [vmem:[#allocation9] sm:$0xff] }
 0x123   :  { %4782 = vtanh.f32 %v278_v14  ;;  %v5716_v14 = vld [vmem:[#allocation4 + $0x18] sm:$0xff] }
 0x130   :  { %v4783_v16 = vpop.eup %4782 }
 0x131   :  { %466 = vst [vmem:[#allocation13] sm:$0xff] %v4783_v16  ;;  %3823 = vmatmul.mubr.f32.vlgmr.msra.gmra.mxu0 %v4783_v16  ;;  %v5718_v16 = vld [vmem:[#allocation10 + $0x78] sm:$0xff] }
 0x132   :  { %3861 = vmatpush3.msra.mxu0 %v5156_v34  ;;  %3892 = vmatprep.mubr.msk.f32.mxu0 %vm4950_vm0, %v4949_v0 }
 0x133   :  { %3862 = vmatprep.subr.mxu0 %v4949_v0 }
 0x134   :  { %3863 = vmatpush3.msra.mxu0 %v5163_v36 }
 0x135   :  { %3864 = vmatprep.subr.mxu0 %v4949_v0 }
 0x136   :  { %3865 = vmatpush3.msra.mxu0 %v5171_v38 }
 0x137   :  { %3866 = vmatprep.subr.mxu0 %v4949_v0 }
 0x138   :  { %3867 = vmatpush3.msra.mxu0 %v5179_v40 }
 0x139   :  { %3868 = vmatprep.subr.mxu0 %v4949_v0 }
 0x13a   :  { %3869 = vmatpush3.msra.mxu0 %v5187_v42 }
 0x13b   :  { %3870 = vmatprep.subr.mxu0 %v4949_v0 }
 0x13c   :  { %3871 = vmatpush3.msra.mxu0 %v5195_v44 }
 0x13d   :  { %3872 = vmatprep.subr.mxu0 %v4949_v0 }
 0x13e   :  { %3873 = vmatpush3.msra.mxu0 %v5203_v46 }
 0x13f   :  { %3874 = vmatprep.subr.mxu0 %v4949_v0 }
 0x140   :  { %v381_v18 = vpop.f32.mrf.mxu0  ;;  %v451_v20 = vpop.f32.mrf.mxu1  ;;  %3875 = vmatpush3.msra.mxu0 %v5211_v48 }
 0x141   :  { %v452_v24 = vadd.f32 %v451_v20, %v381_v18  ;;  %3876 = vmatprep.subr.mxu0 %v4949_v0  ;;  %v5722_v18 = vld [vmem:[#allocation10 + $0x70] sm:$0xff]  ;;  %v5727_v20 = vld [vmem:[#allocation10 + $0x68] sm:$0xff] }
 0x142   :  { %v3754_v26 = vpop.f32.mrf.mxu0  ;;  %v3789_v28 = vpop.f32.mrf.mxu1  ;;  %3877 = vmatpush3.msra.mxu0 %v5219_v50 }
 0x143   :  { %v462_v30 = vadd.f32 %v5453_v22, %v452_v24  ;;  %3878 = vmatprep.subr.mxu0 %v4949_v0  ;;  %v5733_v24 = vld [vmem:[#allocation10 + $0x60] sm:$0xff]  ;;  %v5737_v26 = vld [vmem:[#allocation10 + $0x58] sm:$0xff]  ;;  %v5741_v28 = vld [vmem:[#allocation10 + $0x50] sm:$0xff] }
 0x144   :  { %3879 = vmatpush3.msra.mxu0 %v5227_v52 }
 0x145   :  { %4784 = vtanh.f32 %v462_v30  ;;  %3880 = vmatprep.subr.mxu0 %v4949_v0  ;;  %v5745_v30 = vld [vmem:[#allocation10 + $0x48] sm:$0xff] }
 0x146   :  { %3881 = vmatpush3.msra.mxu0 %v5235_v54 }
 0x147   :  { %3882 = vmatprep.subr.mxu0 %v4949_v0 }
 0x148   :  { %3883 = vmatpush3.msra.mxu0 %v6581_v32 }
 0x149   :  { %3884 = vmatprep.subr.mxu0 %v4949_v0 }
 0x14a   :  { %3885 = vmatpush3.msra.mxu0 %v6582_v56 }
 0x14b   :  { %3886 = vmatprep.subr.mxu0 %v4949_v0 }
 0x14c   :  { %3887 = vmatpush3.msra.mxu0 %v5259_v60 }
 0x14d   :  { %3888 = vmatprep.subr.mxu0 %v4949_v0 }
 0x14e   :  { %3889 = vmatpush3.msra.mxu0 %v5267_v62 }
 0x14f   :  { %3890 = vmatprep.subr.mxu0 %v4949_v0 }
 0x150   :  { %3891 = vmatpush3.msra.mxu0 %v5275_v33 }
 0x151   :  { %3930 = vmatprep.subr.mxu0 %v4949_v0 }
 0x152   :  { %v4785_v2 = vpop.eup %4784 }
 0x153   :  { %468 = vst [vmem:[#allocation13 + $0x78] sm:$0xff] %v4785_v2  ;;  %3893 = vmatmul.mubr.f32.vlgmr.msra.gmra.mxu0 %v4785_v2 }
 0x154   :  { %3931 = vmatpush3.msra.mxu0 %v5030_v1  ;;  %3962 = vmatprep.mubr.msk.f32.mxu0 %vm4950_vm0, %v4949_v0 }
 0x155   :  { %3932 = vmatprep.subr.mxu0 %v4949_v0 }
 0x156   :  { %3933 = vmatpush3.msra.mxu0 %v5034_v3 }
 0x157   :  { %3934 = vmatprep.subr.mxu0 %v4949_v0 }
 0x158   :  { %3935 = vmatpush3.msra.mxu0 %v5042_v5  ;;  %v844_v5 = vld [vmem:[#allocation4 + $0x10] sm:$0xff] }
 0x159   :  { %3936 = vmatprep.subr.mxu0 %v4949_v0  ;;  %3998 = vmatmul.mubr.f32.vlgmr.msra.gmra.mxu1 %v844_v5  ;;  %v5764_v5 = vld [vmem:[#allocation10 + $0x28] sm:$0xff] }
 0x15a   :  { %3937 = vmatpush3.msra.mxu0 %v5050_v7  ;;  %4036 = vmatpush3.msra.mxu1 %v5158_v35 }
 0x15b   :  { %3938 = vmatprep.subr.mxu0 %v4949_v0  ;;  %4067 = vmatprep.mubr.msk.f32.mxu1 %vm4950_vm0, %v4949_v0 }
 0x15c   :  { %3939 = vmatpush3.msra.mxu0 %v5058_v9  ;;  %4037 = vmatprep.subr.mxu1 %v4949_v0 }
 0x15d   :  { %3940 = vmatprep.subr.mxu0 %v4949_v0  ;;  %4038 = vmatpush3.msra.mxu1 %v5165_v37 }
 0x15e   :  { %3941 = vmatpush3.msra.mxu0 %v5066_v11  ;;  %4039 = vmatprep.subr.mxu1 %v4949_v0  ;;  %v1028_v11 = vld [vmem:[#allocation4 + $0x28] sm:$0xff] }
 0x15f   :  { %3942 = vmatprep.subr.mxu0 %v4949_v0  ;;  %4040 = vmatpush3.msra.mxu1 %v5173_v39 }
 0x160   :  { %3943 = vmatpush3.msra.mxu0 %v5074_v13  ;;  %4041 = vmatprep.subr.mxu1 %v4949_v0  ;;  %v5546_v13 = vld [vmem:[#allocation7 + $0x78] sm:$0xff] }
 0x161   :  { %3944 = vmatprep.subr.mxu0 %v4949_v0  ;;  %4042 = vmatpush3.msra.mxu1 %v5181_v41 }
 0x162   :  { %3945 = vmatpush3.msra.mxu0 %v5082_v15  ;;  %4043 = vmatprep.subr.mxu1 %v4949_v0  ;;  %v5551_v15 = vld [vmem:[#allocation7 + $0x70] sm:$0xff] }
 0x163   :  { %3946 = vmatprep.subr.mxu0 %v4949_v0  ;;  %v5506_v1 = vpop.f32.mrf.mxu1  ;;  %4044 = vmatpush3.msra.mxu1 %v5189_v43  ;;  %v5622_v43 = vld [vmem:[#allocation9 + $0x68] sm:$0xff] }
 0x164   :  { %3947 = vmatpush3.msra.mxu0 %v5090_v17  ;;  %4045 = vmatprep.subr.mxu1 %v4949_v0  ;;  %v5555_v17 = vld [vmem:[#allocation7 + $0x68] sm:$0xff] }
 0x165   :  { %3948 = vmatprep.subr.mxu0 %v4949_v0  ;;  %v3859_v3 = vpop.f32.mrf.mxu1  ;;  %4046 = vmatpush3.msra.mxu1 %v5197_v45  ;;  %v5630_v45 = vld [vmem:[#allocation9 + $0x58] sm:$0xff] }
 0x166   :  { %3949 = vmatpush3.msra.mxu0 %v5098_v19  ;;  %4047 = vmatprep.subr.mxu1 %v4949_v0  ;;  %v5559_v19 = vld [vmem:[#allocation7 + $0x60] sm:$0xff]  ;;  %v5760_v3 = vld [vmem:[#allocation10 + $0x30] sm:$0xff] }
 0x167   :  { %3950 = vmatprep.subr.mxu0 %v4949_v0  ;;  %4048 = vmatpush3.msra.mxu1 %v5205_v47 }
 0x168   :  { %3951 = vmatpush3.msra.mxu0 %v5106_v21  ;;  %4049 = vmatprep.subr.mxu1 %v4949_v0  ;;  %v5563_v21 = vld [vmem:[#allocation7 + $0x58] sm:$0xff] }
 0x169   :  { %3952 = vmatprep.subr.mxu0 %v4949_v0  ;;  %4050 = vmatpush3.msra.mxu1 %v5213_v49  ;;  %v5644_v49 = vld [vmem:[#allocation7 + $0x40] sm:$0xff] }
 0x16a   :  { %3953 = vmatpush3.msra.mxu0 %v5114_v23  ;;  %4051 = vmatprep.subr.mxu1 %v4949_v0  ;;  %v5567_v23 = vld [vmem:[#allocation7 + $0x50] sm:$0xff] }
 0x16b   :  { %3954 = vmatprep.subr.mxu0 %v4949_v0  ;;  %4052 = vmatpush3.msra.mxu1 %v5221_v51  ;;  %v5650_v51 = vld [vmem:[#allocation9 + $0x40] sm:$0xff] }
 0x16c   :  { %3955 = vmatpush3.msra.mxu0 %v5122_v25  ;;  %4053 = vmatprep.subr.mxu1 %v4949_v0  ;;  %v5571_v25 = vld [vmem:[#allocation7 + $0x48] sm:$0xff] }
 0x16d   :  { %3956 = vmatprep.subr.mxu0 %v4949_v0  ;;  %4054 = vmatpush3.msra.mxu1 %v5229_v53  ;;  %v5658_v53 = vld [vmem:[#allocation9 + $0x38] sm:$0xff] }
 0x16e   :  { %3957 = vmatpush3.msra.mxu0 %v5130_v27  ;;  %4055 = vmatprep.subr.mxu1 %v4949_v0 }
 0x16f   :  { %3958 = vmatprep.subr.mxu0 %v4949_v0  ;;  %4056 = vmatpush3.msra.mxu1 %v5237_v55  ;;  %v5666_v55 = vld [vmem:[#allocation9 + $0x30] sm:$0xff] }
 0x170   :  { %3959 = vmatpush3.msra.mxu0 %v5138_v29  ;;  %4057 = vmatprep.subr.mxu1 %v4949_v0 }
 0x171   :  { %3960 = vmatprep.subr.mxu0 %v4949_v0  ;;  %4058 = vmatpush3.msra.mxu1 %v5245_v57  ;;  %v5668_v57 = vld [vmem:[#allocation7 + $0x28] sm:$0xff] }
 0x172   :  { %3961 = vmatpush3.msra.mxu0 %v5146_v31  ;;  %4059 = vmatprep.subr.mxu1 %v4949_v0 }
 0x173   :  { %4000 = vmatprep.subr.mxu0 %v4949_v0  ;;  %4060 = vmatpush3.msra.mxu1 %v5253_v59  ;;  %v5676_v59 = vld [vmem:[#allocation7 + $0x20] sm:$0xff] }
 0x174   :  { %4061 = vmatprep.subr.mxu1 %v4949_v0 }
 0x175   :  { %4062 = vmatpush3.msra.mxu1 %v5261_v61  ;;  %v5684_v61 = vld [vmem:[#allocation7 + $0x18] sm:$0xff] }
 0x176   :  { %4063 = vmatprep.subr.mxu1 %v4949_v0 }
 0x177   :  { %4064 = vmatpush3.msra.mxu1 %v5269_v63  ;;  %v5692_v63 = vld [vmem:[#allocation7 + $0x10] sm:$0xff] }
 0x178   :  { %4065 = vmatprep.subr.mxu1 %v4949_v0 }
 0x179   :  { %4066 = vmatpush3.msra.mxu1 %v5279_v58  ;;  %v5674_v58 = vld [vmem:[#allocation9 + $0x28] sm:$0xff] }
 0x17a   :  { %4068 = vmatmul.mubr.f32.vlgmr.msra.gmra.mxu1 %v1028_v11  ;;  %4105 = vmatprep.subr.mxu1 %v4949_v0  ;;  %v5776_v11 = vld [vmem:[#allocation10 + $0x10] sm:$0xff] }
 0x17b   :  { %4137 = vmatprep.mubr.msk.f32.mxu1 %vm4950_vm0, %v4949_v0  ;;  %4106 = vmatpush3.msra.mxu1 %v5546_v13 }
 0x17c   :  { %4107 = vmatprep.subr.mxu1 %v4949_v0 }
 0x17d   :  { %4108 = vmatpush3.msra.mxu1 %v5551_v15 }
 0x17e   :  { %4109 = vmatprep.subr.mxu1 %v4949_v0 }
 0x17f   :  { %4110 = vmatpush3.msra.mxu1 %v5555_v17 }
 0x180   :  { %4111 = vmatprep.subr.mxu1 %v4949_v0 }
 0x181   :  { %4112 = vmatpush3.msra.mxu1 %v5559_v19 }
 0x182   :  { %4113 = vmatprep.subr.mxu1 %v4949_v0 }
 0x183   :  { %v5524_v7 = vpop.f32.mrf.mxu1  ;;  %4114 = vmatpush3.msra.mxu1 %v5563_v21 }
 0x184   :  { %4115 = vmatprep.subr.mxu1 %v4949_v0 }
 0x185   :  { %v3929_v9 = vpop.f32.mrf.mxu1  ;;  %4116 = vmatpush3.msra.mxu1 %v5567_v23 }
 0x186   :  { %4117 = vmatprep.subr.mxu1 %v4949_v0  ;;  %v5772_v9 = vld [vmem:[#allocation10 + $0x18] sm:$0xff] }
 0x187   :  { %4118 = vmatpush3.msra.mxu1 %v5571_v25 }
 0x188   :  { %4119 = vmatprep.subr.mxu1 %v4949_v0 }
 0x189   :  { %4120 = vmatpush3.msra.mxu1 %v5644_v49 }
 0x18a   :  { %4121 = vmatprep.subr.mxu1 %v4949_v0 }
 0x1f1   :  { %v570_v27 = vpop.f32.mrf.mxu0 }
 0x1f2   :  { %v641_v29 = vadd.f32 %v5506_v1, %v570_v27  ;;  %v5756_v1 = vld [vmem:[#allocation10 + $0x38] sm:$0xff]  ;;  %v5780_v27 = vld [vmem:[#allocation10 + $0x8] sm:$0xff] }
 0x1f3   :  { %v3824_v31 = vpop.f32.mrf.mxu0 }
 0x1f4   :  { %v651_v35 = vadd.f32 %v5431_v6, %v641_v29  ;;  %v5784_v29 = vld [vmem:[#allocation10] sm:$0xff] }
 0x1f5   :  { %v1402_v31 = vld [vmem:[#allocation4 + $0x20] sm:$0xff] }
 0x1f6   :  { %4786 = vtanh.f32 %v651_v35  ;;  %v5906_v35 = vld [vmem:[#allocation12 + $0x60] sm:$0xff] }
 0x203   :  { %v4787_v37 = vpop.eup %4786 }
 0x204   :  { %840 = vst [vmem:[#allocation13 + $0x10] sm:$0xff] %v4787_v37  ;;  %3963 = vmatmul.mubr.f32.vlgmr.msra.gmra.mxu0 %v4787_v37  ;;  %v5910_v37 = vld [vmem:[#allocation12 + $0x58] sm:$0xff] }
 0x205   :  { %4001 = vmatpush3.msra.mxu0 %v5156_v34  ;;  %4032 = vmatprep.mubr.msk.f32.mxu0 %vm4950_vm0, %v4949_v0 }
 0x206   :  { %4002 = vmatprep.subr.mxu0 %v4949_v0 }
 0x207   :  { %4003 = vmatpush3.msra.mxu0 %v5163_v36 }
 0x208   :  { %4004 = vmatprep.subr.mxu0 %v4949_v0 }
 0x209   :  { %4005 = vmatpush3.msra.mxu0 %v5171_v38 }
 0x20a   :  { %4006 = vmatprep.subr.mxu0 %v4949_v0 }
 0x20b   :  { %4007 = vmatpush3.msra.mxu0 %v5179_v40  ;;  %v5614_v40 = vld [vmem:[#allocation9 + $0x78] sm:$0xff] }
 0x20c   :  { %4008 = vmatprep.subr.mxu0 %v4949_v0 }
 0x20d   :  { %4009 = vmatpush3.msra.mxu0 %v5187_v42  ;;  %v5616_v42 = vld [vmem:[#allocation9 + $0x70] sm:$0xff] }
 0x20e   :  { %4010 = vmatprep.subr.mxu0 %v4949_v0 }
 0x20f   :  { %4011 = vmatpush3.msra.mxu0 %v5195_v44  ;;  %v5626_v44 = vld [vmem:[#allocation9 + $0x60] sm:$0xff] }
 0x210   :  { %4012 = vmatprep.subr.mxu0 %v4949_v0 }
 0x211   :  { %4013 = vmatpush3.msra.mxu0 %v5203_v46  ;;  %v5634_v46 = vld [vmem:[#allocation9 + $0x50] sm:$0xff] }
 0x212   :  { %4014 = vmatprep.subr.mxu0 %v4949_v0 }
 0x213   :  { %v754_v34 = vpop.f32.mrf.mxu0  ;;  %4015 = vmatpush3.msra.mxu0 %v5211_v48  ;;  %v5642_v48 = vld [vmem:[#allocation9 + $0x48] sm:$0xff] }
 0x214   :  { %v825_v36 = vadd.f32 %v5524_v7, %v754_v34  ;;  %4016 = vmatprep.subr.mxu0 %v4949_v0  ;;  %v5768_v7 = vld [vmem:[#allocation10 + $0x20] sm:$0xff]  ;;  %v5914_v34 = vld [vmem:[#allocation12 + $0x50] sm:$0xff] }
 0x215   :  { %v3894_v38 = vpop.f32.mrf.mxu0  ;;  %4017 = vmatpush3.msra.mxu0 %v5219_v50 }
 0x216   :  { %v835_v39 = vadd.f32 %v5453_v22, %v825_v36  ;;  %4018 = vmatprep.subr.mxu0 %v4949_v0  ;;  %v5918_v36 = vld [vmem:[#allocation12 + $0x48] sm:$0xff]  ;;  %v5922_v38 = vld [vmem:[#allocation12 + $0x40] sm:$0xff] }
 0x217   :  { %4019 = vmatpush3.msra.mxu0 %v5227_v52  ;;  %v5652_v52 = vld [vmem:[#allocation7 + $0x38] sm:$0xff] }
 0x218   :  { %4788 = vtanh.f32 %v835_v39  ;;  %4020 = vmatprep.subr.mxu0 %v4949_v0  ;;  %4122 = vmatpush3.msra.mxu1 %v5652_v52  ;;  %v5926_v39 = vld [vmem:[#allocation12 + $0x38] sm:$0xff] }
 0x219   :  { %4021 = vmatpush3.msra.mxu0 %v5235_v54  ;;  %v5640_v47 = vpop.f32.mrf.mxu1  ;;  %4123 = vmatprep.subr.mxu1 %v4949_v0  ;;  %v5660_v54 = vld [vmem:[#allocation7 + $0x30] sm:$0xff] }
 0x21a   :  { %4022 = vmatprep.subr.mxu0 %v4949_v0  ;;  %4124 = vmatpush3.msra.mxu1 %v5660_v54 }
 0x21b   :  { %4023 = vmatpush3.msra.mxu0 %v6581_v32  ;;  %v3999_v50 = vpop.f32.mrf.mxu1  ;;  %4125 = vmatprep.subr.mxu1 %v4949_v0 }
 0x21c   :  { %4024 = vmatprep.subr.mxu0 %v4949_v0  ;;  %4126 = vmatpush3.msra.mxu1 %v5668_v57 }
 0x21d   :  { %4025 = vmatpush3.msra.mxu0 %v6582_v56  ;;  %4127 = vmatprep.subr.mxu1 %v4949_v0  ;;  %v5752_v56 = vld [vmem:[#allocation10 + $0x40] sm:$0xff] }
 0x21e   :  { %4026 = vmatprep.subr.mxu0 %v4949_v0  ;;  %4128 = vmatpush3.msra.mxu1 %v5676_v59 }
 0x21f   :  { %4027 = vmatpush3.msra.mxu0 %v5259_v60  ;;  %4129 = vmatprep.subr.mxu1 %v4949_v0  ;;  %v5682_v60 = vld [vmem:[#allocation9 + $0x20] sm:$0xff] }
 0x220   :  { %4028 = vmatprep.subr.mxu0 %v4949_v0  ;;  %4130 = vmatpush3.msra.mxu1 %v5684_v61 }
 0x221   :  { %4029 = vmatpush3.msra.mxu0 %v5267_v62  ;;  %4131 = vmatprep.subr.mxu1 %v4949_v0  ;;  %v5690_v62 = vld [vmem:[#allocation9 + $0x18] sm:$0xff] }
 0x222   :  { %4030 = vmatprep.subr.mxu0 %v4949_v0  ;;  %4132 = vmatpush3.msra.mxu1 %v5692_v63 }
 0x223   :  { %4031 = vmatpush3.msra.mxu0 %v5275_v33  ;;  %4133 = vmatprep.subr.mxu1 %v4949_v0  ;;  %v5698_v33 = vld [vmem:[#allocation9 + $0x10] sm:$0xff] }
 0x224   :  { %4070 = vmatprep.subr.mxu0 %v4949_v0  ;;  %4134 = vmatpush3.msra.mxu1 %v5700_v4 }
 0x225   :  { %v4789_v41 = vpop.eup %4788  ;;  %4135 = vmatprep.subr.mxu1 %v4949_v0 }
 0x226   :  { %842 = vst [vmem:[#allocation13 + $0x68] sm:$0xff] %v4789_v41  ;;  %4033 = vmatmul.mubr.f32.vlgmr.msra.gmra.mxu0 %v4789_v41  ;;  %4136 = vmatpush3.msra.mxu1 %v5708_v10 }
 0x227   :  { %4071 = vmatpush3.msra.mxu0 %v5614_v40  ;;  %4102 = vmatprep.mubr.msk.f32.mxu0 %vm4950_vm0, %v4949_v0 }
 0x228   :  { %4072 = vmatprep.subr.mxu0 %v4949_v0  ;;  %4175 = vmatprep.subr.mxu1 %v4949_v0 }
 0x229   :  { %4073 = vmatpush3.msra.mxu0 %v5616_v42  ;;  %4138 = vmatmul.mubr.f32.vlgmr.msra.gmra.mxu1 %v5716_v14 }
 0x22a   :  { %4074 = vmatprep.subr.mxu0 %v4949_v0  ;;  %4176 = vmatpush3.msra.mxu1 %v5718_v16 }
 0x22b   :  { %4075 = vmatpush3.msra.mxu0 %v5622_v43  ;;  %4177 = vmatprep.subr.mxu1 %v4949_v0 }
 0x22c   :  { %4076 = vmatprep.subr.mxu0 %v4949_v0  ;;  %4207 = vmatprep.mubr.msk.f32.mxu1 %vm4950_vm0, %v4949_v0 }
 0x22d   :  { %4077 = vmatpush3.msra.mxu0 %v5626_v44  ;;  %4178 = vmatpush3.msra.mxu1 %v5722_v18 }
 0x22e   :  { %4078 = vmatprep.subr.mxu0 %v4949_v0  ;;  %4179 = vmatprep.subr.mxu1 %v4949_v0 }
 0x22f   :  { %4079 = vmatpush3.msra.mxu0 %v5630_v45  ;;  %4180 = vmatpush3.msra.mxu1 %v5727_v20 }
 0x230   :  { %4080 = vmatprep.subr.mxu0 %v4949_v0  ;;  %4181 = vmatprep.subr.mxu1 %v4949_v0 }
 0x231   :  { %4081 = vmatpush3.msra.mxu0 %v5634_v46  ;;  %4182 = vmatpush3.msra.mxu1 %v5733_v24 }
 0x232   :  { %4082 = vmatprep.subr.mxu0 %v4949_v0  ;;  %4183 = vmatprep.subr.mxu1 %v4949_v0 }
 0x233   :  { %4083 = vmatpush3.msra.mxu0 %v5642_v48  ;;  %4184 = vmatpush3.msra.mxu1 %v5737_v26 }
 0x234   :  { %4084 = vmatprep.subr.mxu0 %v4949_v0  ;;  %4185 = vmatprep.subr.mxu1 %v4949_v0 }
 0x235   :  { %4085 = vmatpush3.msra.mxu0 %v5650_v51  ;;  %4186 = vmatpush3.msra.mxu1 %v5741_v28 }
 0x236   :  { %4086 = vmatprep.subr.mxu0 %v4949_v0  ;;  %4187 = vmatprep.subr.mxu1 %v4949_v0 }
 0x237   :  { %4087 = vmatpush3.msra.mxu0 %v5658_v53  ;;  %4188 = vmatpush3.msra.mxu1 %v5745_v30 }
 0x238   :  { %4088 = vmatprep.subr.mxu0 %v4949_v0  ;;  %4189 = vmatprep.subr.mxu1 %v4949_v0 }
 0x239   :  { %4089 = vmatpush3.msra.mxu0 %v5666_v55  ;;  %4190 = vmatpush3.msra.mxu1 %v5752_v56 }
 0x23a   :  { %4090 = vmatprep.subr.mxu0 %v4949_v0  ;;  %v5749_v32 = vpop.f32.mrf.mxu1  ;;  %4191 = vmatprep.subr.mxu1 %v4949_v0 }
 0x23b   :  { %4091 = vmatpush3.msra.mxu0 %v5674_v58  ;;  %4192 = vmatpush3.msra.mxu1 %v5756_v1 }
 0x23c   :  { %4092 = vmatprep.subr.mxu0 %v4949_v0  ;;  %v4069_v2 = vpop.f32.mrf.mxu1  ;;  %4193 = vmatprep.subr.mxu1 %v4949_v0 }
 0x23d   :  { %4093 = vmatpush3.msra.mxu0 %v5682_v60  ;;  %4194 = vmatpush3.msra.mxu1 %v5760_v3 }
 0x23e   :  { %4094 = vmatprep.subr.mxu0 %v4949_v0  ;;  %4195 = vmatprep.subr.mxu1 %v4949_v0 }
 0x23f   :  { %4095 = vmatpush3.msra.mxu0 %v5690_v62  ;;  %4196 = vmatpush3.msra.mxu1 %v5764_v5 }
 0x240   :  { %4096 = vmatprep.subr.mxu0 %v4949_v0  ;;  %4197 = vmatprep.subr.mxu1 %v4949_v0 }
 0x241   :  { %4097 = vmatpush3.msra.mxu0 %v5698_v33  ;;  %4198 = vmatpush3.msra.mxu1 %v5768_v7 }
 0x242   :  { %4098 = vmatprep.subr.mxu0 %v4949_v0  ;;  %4199 = vmatprep.subr.mxu1 %v4949_v0 }
 0x243   :  { %4099 = vmatpush3.msra.mxu0 %v5706_v8  ;;  %4200 = vmatpush3.msra.mxu1 %v5772_v9 }
 0x244   :  { %4100 = vmatprep.subr.mxu0 %v4949_v0  ;;  %4201 = vmatprep.subr.mxu1 %v4949_v0 }
 0x245   :  { %4101 = vmatpush3.msra.mxu0 %v5714_v12  ;;  %4202 = vmatpush3.msra.mxu1 %v5776_v11 }
 0x246   :  { %4140 = vmatprep.subr.mxu0 %v4949_v0  ;;  %4203 = vmatprep.subr.mxu1 %v4949_v0 }
 0x247   :  { %4204 = vmatpush3.msra.mxu1 %v5780_v27 }
 0x248   :  { %4205 = vmatprep.subr.mxu1 %v4949_v0 }
 0x249   :  { %4206 = vmatpush3.msra.mxu1 %v5784_v29 }
 0x24a   :  { %4208 = vmatmul.mubr.f32.vlgmr.msra.gmra.mxu1 %v1402_v31  ;;  %4245 = vmatprep.subr.mxu1 %v4949_v0 }
 0x24b   :  { %4246 = vmatpush3.msra.mxu1 %v5546_v13  ;;  %4277 = vmatprep.mubr.msk.f32.mxu1 %vm4950_vm0, %v4949_v0 }
 0x24c   :  { %4247 = vmatprep.subr.mxu1 %v4949_v0 }
 0x24d   :  { %4248 = vmatpush3.msra.mxu1 %v5551_v15 }
 0x24e   :  { %4249 = vmatprep.subr.mxu1 %v4949_v0 }
 0x24f   :  { %4250 = vmatpush3.msra.mxu1 %v5555_v17 }
 0x250   :  { %4251 = vmatprep.subr.mxu1 %v4949_v0 }
 0x251   :  { %4252 = vmatpush3.msra.mxu1 %v5559_v19 }
 0x252   :  { %4253 = vmatprep.subr.mxu1 %v4949_v0 }
 0x253   :  { %4254 = vmatpush3.msra.mxu1 %v5563_v21 }
 0x254   :  { %4255 = vmatprep.subr.mxu1 %v4949_v0 }
 0x255   :  { %4256 = vmatpush3.msra.mxu1 %v5567_v23 }
 0x256   :  { %4257 = vmatprep.subr.mxu1 %v4949_v0 }
 0x257   :  { %4258 = vmatpush3.msra.mxu1 %v5571_v25 }
 0x258   :  { %4259 = vmatprep.subr.mxu1 %v4949_v0 }
 0x259   :  { %4260 = vmatpush3.msra.mxu1 %v5644_v49 }
 0x25a   :  { %4261 = vmatprep.subr.mxu1 %v4949_v0 }
 0x25b   :  { %4262 = vmatpush3.msra.mxu1 %v5652_v52 }
 0x25c   :  { %4263 = vmatprep.subr.mxu1 %v4949_v0 }
 0x25d   :  { %4264 = vmatpush3.msra.mxu1 %v5660_v54 }
 0x25e   :  { %4265 = vmatprep.subr.mxu1 %v4949_v0 }
 0x25f   :  { %4266 = vmatpush3.msra.mxu1 %v5668_v57 }
 0x260   :  { %4267 = vmatprep.subr.mxu1 %v4949_v0 }
 0x261   :  { %4268 = vmatpush3.msra.mxu1 %v5676_v59 }
 0x262   :  { %4269 = vmatprep.subr.mxu1 %v4949_v0 }
 0x263   :  { %4270 = vmatpush3.msra.mxu1 %v5684_v61 }
 0x264   :  { %4271 = vmatprep.subr.mxu1 %v4949_v0 }
 0x265   :  { %4272 = vmatpush3.msra.mxu1 %v5692_v63 }
 0x266   :  { %4273 = vmatprep.subr.mxu1 %v4949_v0 }
 0x267   :  { %4274 = vmatpush3.msra.mxu1 %v5700_v4 }
 0x268   :  { %4275 = vmatprep.subr.mxu1 %v4949_v0 }
 0x269   :  { %4276 = vmatpush3.msra.mxu1 %v5708_v10 }
 0x26a   :  { %4315 = vmatprep.subr.mxu1 %v4949_v0  ;;  %4278 = vmatmul.mubr.f32.vlgmr.msra.gmra.mxu1 %v1402_v31 }
 0x26b   :  { %4316 = vmatpush3.msra.mxu1 %v5718_v16  ;;  %4347 = vmatprep.mubr.msk.f32.mxu1 %vm4950_vm0, %v4949_v0 }
 0x26c   :  { %4317 = vmatprep.subr.mxu1 %v4949_v0 }
 0x26d   :  { %4318 = vmatpush3.msra.mxu1 %v5722_v18 }
 0x26e   :  { %4319 = vmatprep.subr.mxu1 %v4949_v0 }
 0x26f   :  { %4320 = vmatpush3.msra.mxu1 %v5727_v20 }
 0x270   :  { %4321 = vmatprep.subr.mxu1 %v4949_v0 }
 0x271   :  { %4322 = vmatpush3.msra.mxu1 %v5733_v24 }
 0x272   :  { %4323 = vmatprep.subr.mxu1 %v4949_v0 }
 0x273   :  { %4324 = vmatpush3.msra.mxu1 %v5737_v26 }
 0x274   :  { %4325 = vmatprep.subr.mxu1 %v4949_v0 }
 0x275   :  { %4326 = vmatpush3.msra.mxu1 %v5741_v28 }
 0x276   :  { %4327 = vmatprep.subr.mxu1 %v4949_v0 }
 0x277   :  { %4328 = vmatpush3.msra.mxu1 %v5745_v30 }
 0x278   :  { %4329 = vmatprep.subr.mxu1 %v4949_v0 }
 0x279   :  { %4330 = vmatpush3.msra.mxu1 %v5752_v56 }
 0x27a   :  { %4331 = vmatprep.subr.mxu1 %v4949_v0 }
 0x27b   :  { %4332 = vmatpush3.msra.mxu1 %v5756_v1 }
 0x27c   :  { %4333 = vmatprep.subr.mxu1 %v4949_v0 }
 0x27d   :  { %4334 = vmatpush3.msra.mxu1 %v5760_v3 }
 0x27e   :  { %4335 = vmatprep.subr.mxu1 %v4949_v0 }
 0x27f   :  { %4336 = vmatpush3.msra.mxu1 %v5764_v5 }
 0x280   :  { %4337 = vmatprep.subr.mxu1 %v4949_v0 }
 0x281   :  { %4338 = vmatpush3.msra.mxu1 %v5768_v7 }
 0x282   :  { %4339 = vmatprep.subr.mxu1 %v4949_v0 }
 0x283   :  { %4340 = vmatpush3.msra.mxu1 %v5772_v9 }
 0x284   :  { %4341 = vmatprep.subr.mxu1 %v4949_v0 }
 0x285   :  { %4342 = vmatpush3.msra.mxu1 %v5776_v11 }
 0x286   :  { %4343 = vmatprep.subr.mxu1 %v4949_v0 }
 0x287   :  { %4344 = vmatpush3.msra.mxu1 %v5780_v27 }
 0x288   :  { %4345 = vmatprep.subr.mxu1 %v4949_v0 }
 0x289   :  { %4346 = vmatpush3.msra.mxu1 %v5784_v29 }
 0x28a   :  { %4348 = vmatmul.mubr.f32.vlgmr.msra.gmra.mxu1 %v5716_v14  ;;  %4385 = vmatprep.subr.mxu1 %v4949_v0 }
 0x28b   :  { %4386 = vmatpush3.msra.mxu1 %v5546_v13  ;;  %4417 = vmatprep.mubr.msk.f32.mxu1 %vm4950_vm0, %v4949_v0 }
 0x28c   :  { %4387 = vmatprep.subr.mxu1 %v4949_v0 }
 0x28d   :  { %4388 = vmatpush3.msra.mxu1 %v5551_v15 }
 0x28e   :  { %4389 = vmatprep.subr.mxu1 %v4949_v0 }
 0x28f   :  { %4390 = vmatpush3.msra.mxu1 %v5555_v17 }
 0x290   :  { %4391 = vmatprep.subr.mxu1 %v4949_v0 }
 0x291   :  { %4392 = vmatpush3.msra.mxu1 %v5559_v19 }
 0x292   :  { %4393 = vmatprep.subr.mxu1 %v4949_v0 }
 0x293   :  { %4394 = vmatpush3.msra.mxu1 %v5563_v21 }
 0x294   :  { %4395 = vmatprep.subr.mxu1 %v4949_v0 }
 0x295   :  { %4396 = vmatpush3.msra.mxu1 %v5567_v23  ;;  %v5894_v23 = vld [vmem:[#allocation12 + $0x70] sm:$0xff] }
 0x296   :  { %4397 = vmatprep.subr.mxu1 %v4949_v0 }
 0x297   :  { %4398 = vmatpush3.msra.mxu1 %v5571_v25  ;;  %v5901_v25 = vld [vmem:[#allocation12 + $0x68] sm:$0xff] }
 0x298   :  { %4399 = vmatprep.subr.mxu1 %v4949_v0 }
 0x299   :  { %4400 = vmatpush3.msra.mxu1 %v5644_v49  ;;  %v5931_v49 = vld [vmem:[#allocation12 + $0x30] sm:$0xff] }
 0x29a   :  { %4401 = vmatprep.subr.mxu1 %v4949_v0 }
 0x29b   :  { %4402 = vmatpush3.msra.mxu1 %v5652_v52 }
 0x29c   :  { %4403 = vmatprep.subr.mxu1 %v4949_v0 }
 0x29d   :  { %4404 = vmatpush3.msra.mxu1 %v5660_v54  ;;  %v5936_v54 = vld [vmem:[#allocation12 + $0x28] sm:$0xff] }
 0x29e   :  { %4405 = vmatprep.subr.mxu1 %v4949_v0 }
 0x29f   :  { %4406 = vmatpush3.msra.mxu1 %v5668_v57  ;;  %v5940_v57 = vld [vmem:[#allocation12 + $0x20] sm:$0xff] }
 0x2a0   :  { %4407 = vmatprep.subr.mxu1 %v4949_v0 }
 0x2a1   :  { %4408 = vmatpush3.msra.mxu1 %v5676_v59  ;;  %v5944_v59 = vld [vmem:[#allocation12 + $0x18] sm:$0xff] }
 0x2a2   :  { %4409 = vmatprep.subr.mxu1 %v4949_v0 }
 0x2a3   :  { %4410 = vmatpush3.msra.mxu1 %v5684_v61  ;;  %v5952_v61 = vld [vmem:[#allocation12 + $0x8] sm:$0xff] }
 0x2a4   :  { %4411 = vmatprep.subr.mxu1 %v4949_v0 }
 0x2a5   :  { %4412 = vmatpush3.msra.mxu1 %v5692_v63  ;;  %v5956_v63 = vld [vmem:[#allocation12] sm:$0xff] }
 0x2a6   :  { %4413 = vmatprep.subr.mxu1 %v4949_v0 }
 0x2a7   :  { %4414 = vmatpush3.msra.mxu1 %v5700_v4 }
 0x2a8   :  { %4415 = vmatprep.subr.mxu1 %v4949_v0 }
 0x2a9   :  { %4416 = vmatpush3.msra.mxu1 %v5708_v10 }
 0x2aa   :  { %4455 = vmatprep.subr.mxu1 %v4949_v0 }
 0x2c4   :  { %v944_v13 = vpop.f32.mrf.mxu0 }
 0x2c5   :  { %v1015_v15 = vadd.f32 %v5640_v47, %v944_v13 }
 0x2c6   :  { %v3964_v17 = vpop.f32.mrf.mxu0 }
 0x2c7   :  { %v1025_v19 = vadd.f32 %v5431_v6, %v1015_v15  ;;  %v5890_v6 = vld [vmem:[#allocation12 + $0x78] sm:$0xff]  ;;  %v6001_v17 = vld [vmem:[%s6570_s3] ss:$0 sm:$0xff] }
 0x2c9   :  { %4790 = vtanh.f32 %v1025_v19 }
 0x2d6   :  { %v4791_v21 = vpop.eup %4790 }
 0x2d7   :  { %1214 = vst [vmem:[#allocation13 + $0x20] sm:$0xff] %v4791_v21  ;;  %4103 = vmatmul.mubr.f32.vlgmr.msra.gmra.mxu0 %v4791_v21 }
 0x2d8   :  { %4141 = vmatpush3.msra.mxu0 %v5890_v6  ;;  %4172 = vmatprep.mubr.msk.f32.mxu0 %vm4950_vm0, %v4949_v0 }
 0x2d9   :  { %4142 = vmatprep.subr.mxu0 %v4949_v0 }
 0x2da   :  { %4143 = vmatpush3.msra.mxu0 %v5894_v23 }
 0x2db   :  { %4144 = vmatprep.subr.mxu0 %v4949_v0 }
 0x2dc   :  { %4145 = vmatpush3.msra.mxu0 %v5901_v25 }
 0x2dd   :  { %4146 = vmatprep.subr.mxu0 %v4949_v0 }
 0x2de   :  { %4147 = vmatpush3.msra.mxu0 %v5906_v35 }
 0x2df   :  { %4148 = vmatprep.subr.mxu0 %v4949_v0 }
 0x2e0   :  { %4149 = vmatpush3.msra.mxu0 %v5910_v37 }
 0x2e1   :  { %4150 = vmatprep.subr.mxu0 %v4949_v0 }
 0x2e2   :  { %4151 = vmatpush3.msra.mxu0 %v5914_v34 }
 0x2e3   :  { %4152 = vmatprep.subr.mxu0 %v4949_v0 }
 0x2e4   :  { %4153 = vmatpush3.msra.mxu0 %v5918_v36 }
 0x2e5   :  { %4154 = vmatprep.subr.mxu0 %v4949_v0 }
 0x2e6   :  { %v1128_v41 = vpop.f32.mrf.mxu0  ;;  %4155 = vmatpush3.msra.mxu0 %v5922_v38 }
 0x2e7   :  { %v1199_v47 = vadd.f32 %v5749_v32, %v1128_v41  ;;  %4156 = vmatprep.subr.mxu0 %v4949_v0 }
 0x2e8   :  { %v4034_v50 = vpop.f32.mrf.mxu0  ;;  %4157 = vmatpush3.msra.mxu0 %v5926_v39 }
 0x2e9   :  { %v1209_v52 = vadd.f32 %v5453_v22, %v1199_v47  ;;  %4158 = vmatprep.subr.mxu0 %v4949_v0  ;;  %v5948_v22 = vld [vmem:[#allocation12 + $0x10] sm:$0xff]  ;;  %v1388_v10 = vpop.f32.mrf.mxu1 }
 0x2ea   :  { %4159 = vmatpush3.msra.mxu0 %v5931_v49 }
 0x2eb   :  { %4792 = vtanh.f32 %v1209_v52  ;;  %4160 = vmatprep.subr.mxu0 %v4949_v0  ;;  %v4139_v14 = vpop.f32.mrf.mxu1  ;;  %v6023_v52 = vld [vmem:[%s6573_s6] ss:$0 sm:$0xff] }
 0x2ec   :  { %4161 = vmatpush3.msra.mxu0 %v5936_v54 }
 0x2ed   :  { %4162 = vmatprep.subr.mxu0 %v4949_v0 }
 0x2ee   :  { %4163 = vmatpush3.msra.mxu0 %v5940_v57 }
 0x2ef   :  { %4164 = vmatprep.subr.mxu0 %v4949_v0 }
 0x2f0   :  { %4165 = vmatpush3.msra.mxu0 %v5944_v59 }
 0x2f1   :  { %4166 = vmatprep.subr.mxu0 %v4949_v0 }
 0x2f2   :  { %4167 = vmatpush3.msra.mxu0 %v5948_v22 }
 0x2f3   :  { %4168 = vmatprep.subr.mxu0 %v4949_v0 }
 0x2f4   :  { %4169 = vmatpush3.msra.mxu0 %v5952_v61 }
 0x2f5   :  { %4170 = vmatprep.subr.mxu0 %v4949_v0 }
 0x2f6   :  { %4171 = vmatpush3.msra.mxu0 %v5956_v63 }
 0x2f7   :  { %4210 = vmatprep.subr.mxu0 %v4949_v0 }
 0x2f8   :  { %v4793_v4 = vpop.eup %4792 }
 0x2f9   :  { %1216 = vst [vmem:[#allocation13 + $0x58] sm:$0xff] %v4793_v4  ;;  %4173 = vmatmul.mubr.f32.vlgmr.msra.gmra.mxu0 %v4793_v4 }
 0x2fa   :  { %4211 = vmatpush3.msra.mxu0 %v5614_v40  ;;  %4242 = vmatprep.mubr.msk.f32.mxu0 %vm4950_vm0, %v4949_v0 }
 0x2fb   :  { %4212 = vmatprep.subr.mxu0 %v4949_v0 }
 0x2fc   :  { %4213 = vmatpush3.msra.mxu0 %v5616_v42 }
 0x2fd   :  { %4214 = vmatprep.subr.mxu0 %v4949_v0 }
 0x2fe   :  { %4215 = vmatpush3.msra.mxu0 %v5622_v43 }
 0x2ff   :  { %4216 = vmatprep.subr.mxu0 %v4949_v0 }
 0x300   :  { %4217 = vmatpush3.msra.mxu0 %v5626_v44 }
 0x301   :  { %4218 = vmatprep.subr.mxu0 %v4949_v0 }
 0x302   :  { %4219 = vmatpush3.msra.mxu0 %v5630_v45 }
 0x303   :  { %4220 = vmatprep.subr.mxu0 %v4949_v0 }
 0x304   :  { %4221 = vmatpush3.msra.mxu0 %v5634_v46 }
 0x305   :  { %4222 = vmatprep.subr.mxu0 %v4949_v0 }
 0x306   :  { %4223 = vmatpush3.msra.mxu0 %v5642_v48 }
 0x307   :  { %4224 = vmatprep.subr.mxu0 %v4949_v0 }
 0x308   :  { %4225 = vmatpush3.msra.mxu0 %v5650_v51 }
 0x309   :  { %4226 = vmatprep.subr.mxu0 %v4949_v0 }
 0x30a   :  { %4227 = vmatpush3.msra.mxu0 %v5658_v53  ;;  %v1572_v32 = vpop.f32.mrf.mxu1 }
 0x30b   :  { %4228 = vmatprep.subr.mxu0 %v4949_v0 }
 0x30c   :  { %4229 = vmatpush3.msra.mxu0 %v5666_v55  ;;  %v4209_v2 = vpop.f32.mrf.mxu1 }
 0x30d   :  { %4230 = vmatprep.subr.mxu0 %v4949_v0  ;;  %v2331_v2 = vld [vmem:[#allocation4 + $0x30] sm:$0xff] }
 0x30e   :  { %4231 = vmatpush3.msra.mxu0 %v5674_v58 }
 0x30f   :  { %4232 = vmatprep.subr.mxu0 %v4949_v0 }
 0x310   :  { %4233 = vmatpush3.msra.mxu0 %v5682_v60 }
 0x311   :  { %4234 = vmatprep.subr.mxu0 %v4949_v0 }
 0x312   :  { %4235 = vmatpush3.msra.mxu0 %v5690_v62 }
 0x313   :  { %4236 = vmatprep.subr.mxu0 %v4949_v0 }
 0x314   :  { %4237 = vmatpush3.msra.mxu0 %v5698_v33 }
 0x315   :  { %4238 = vmatprep.subr.mxu0 %v4949_v0 }
 0x316   :  { %4239 = vmatpush3.msra.mxu0 %v5706_v8 }
 0x317   :  { %4240 = vmatprep.subr.mxu0 %v4949_v0 }
 0x318   :  { %4241 = vmatpush3.msra.mxu0 %v5714_v12 }
 0x319   :  { %4280 = vmatprep.subr.mxu0 %v4949_v0 }
 0x32a   :  { %v5996_v31 = vpop.f32.mrf.mxu1 }
 0x32c   :  { %v4279_v13 = vpop.f32.mrf.mxu1 }
 0x32d   :  { %v6287_v13 = vld [vmem:[#allocation10 + $0x70] sm:$0xff] }
 0x397   :  { %v1318_v15 = vpop.f32.mrf.mxu0 }
 0x398   :  { %v1389_v19 = vadd.f32 %v1388_v10, %v1318_v15  ;;  %v6292_v15 = vld [vmem:[#allocation10 + $0x68] sm:$0xff] }
 0x399   :  { %v4104_v21 = vpop.f32.mrf.mxu0 }
 0x39a   :  { %v1399_v41 = vadd.f32 %v6001_v17, %v1389_v19  ;;  %v6298_v19 = vld [vmem:[#allocation10 + $0x60] sm:$0xff]  ;;  %v6302_v21 = vld [vmem:[#allocation10 + $0x58] sm:$0xff] }
 0x39c   :  { %4794 = vtanh.f32 %v1399_v41  ;;  %v6306_v41 = vld [vmem:[#allocation10 + $0x50] sm:$0xff] }
 0x3a9   :  { %v4795_v47 = vpop.eup %4794 }
 0x3aa   :  { %1588 = vst [vmem:[#allocation13 + $0x30] sm:$0xff] %v4795_v47  ;;  %4243 = vmatmul.mubr.f32.vlgmr.msra.gmra.mxu0 %v4795_v47  ;;  %v6310_v47 = vld [vmem:[#allocation10 + $0x48] sm:$0xff] }
 0x3ab   :  { %4281 = vmatpush3.msra.mxu0 %v5890_v6  ;;  %4312 = vmatprep.mubr.msk.f32.mxu0 %vm4950_vm0, %v4949_v0 }
 0x3ac   :  { %4282 = vmatprep.subr.mxu0 %v4949_v0 }
 0x3ad   :  { %4283 = vmatpush3.msra.mxu0 %v5894_v23 }
 0x3ae   :  { %4284 = vmatprep.subr.mxu0 %v4949_v0 }
 0x3af   :  { %4285 = vmatpush3.msra.mxu0 %v5901_v25 }
 0x3b0   :  { %4286 = vmatprep.subr.mxu0 %v4949_v0 }
 0x3b1   :  { %4287 = vmatpush3.msra.mxu0 %v5906_v35 }
 0x3b2   :  { %4288 = vmatprep.subr.mxu0 %v4949_v0 }
 0x3b3   :  { %4289 = vmatpush3.msra.mxu0 %v5910_v37 }
 0x3b4   :  { %4290 = vmatprep.subr.mxu0 %v4949_v0 }
 0x3b5   :  { %4291 = vmatpush3.msra.mxu0 %v5914_v34 }
 0x3b6   :  { %4292 = vmatprep.subr.mxu0 %v4949_v0 }
 0x3b7   :  { %4293 = vmatpush3.msra.mxu0 %v5918_v36 }
 0x3b8   :  { %4294 = vmatprep.subr.mxu0 %v4949_v0 }
 0x3b9   :  { %v1502_v50 = vpop.f32.mrf.mxu0  ;;  %4295 = vmatpush3.msra.mxu0 %v5922_v38 }
 0x3ba   :  { %v1573_v4 = vadd.f32 %v1572_v32, %v1502_v50  ;;  %4296 = vmatprep.subr.mxu0 %v4949_v0 }
 0x3bb   :  { %v4174_v10 = vpop.f32.mrf.mxu0  ;;  %4297 = vmatpush3.msra.mxu0 %v5926_v39 }
 0x3bc   :  { %v1583_v14 = vadd.f32 %v6023_v52, %v1573_v4  ;;  %4298 = vmatprep.subr.mxu0 %v4949_v0  ;;  %v6317_v4 = vld [vmem:[#allocation10 + $0x40] sm:$0xff] }
 0x3bd   :  { %4299 = vmatpush3.msra.mxu0 %v5931_v49 }
 0x3be   :  { %4796 = vtanh.f32 %v1583_v14  ;;  %4300 = vmatprep.subr.mxu0 %v4949_v0  ;;  %v6321_v14 = vld [vmem:[#allocation10 + $0x38] sm:$0xff] }
 0x3bf   :  { %4301 = vmatpush3.msra.mxu0 %v5936_v54 }
 0x3c0   :  { %4302 = vmatprep.subr.mxu0 %v4949_v0 }
 0x3c1   :  { %4303 = vmatpush3.msra.mxu0 %v5940_v57 }
 0x3c2   :  { %4304 = vmatprep.subr.mxu0 %v4949_v0 }
 0x3c3   :  { %4305 = vmatpush3.msra.mxu0 %v5944_v59 }
 0x3c4   :  { %4306 = vmatprep.subr.mxu0 %v4949_v0 }
 0x3c5   :  { %4307 = vmatpush3.msra.mxu0 %v5948_v22 }
 0x3c6   :  { %4308 = vmatprep.subr.mxu0 %v4949_v0 }
 0x3c7   :  { %4309 = vmatpush3.msra.mxu0 %v5952_v61 }
 0x3c8   :  { %4310 = vmatprep.subr.mxu0 %v4949_v0 }
 0x3c9   :  { %4311 = vmatpush3.msra.mxu0 %v5956_v63 }
 0x3ca   :  { %4350 = vmatprep.subr.mxu0 %v4949_v0 }
 0x3cb   :  { %v4797_v32 = vpop.eup %4796 }
 0x3cc   :  { %1590 = vst [vmem:[#allocation13 + $0x48] sm:$0xff] %v4797_v32  ;;  %4313 = vmatmul.mubr.f32.vlgmr.msra.gmra.mxu0 %v4797_v32  ;;  %v6325_v32 = vld [vmem:[#allocation10 + $0x30] sm:$0xff] }
 0x3cd   :  { %4351 = vmatpush3.msra.mxu0 %v5614_v40  ;;  %4382 = vmatprep.mubr.msk.f32.mxu0 %vm4950_vm0, %v4949_v0  ;;  %v1961_v40 = vld [vmem:[#allocation4 + $0x28] sm:$0xff] }
 0x3ce   :  { %4352 = vmatprep.subr.mxu0 %v4949_v0  ;;  %4418 = vmatmul.mubr.f32.vlgmr.msra.gmra.mxu1 %v1961_v40  ;;  %v6329_v40 = vld [vmem:[#allocation10 + $0x28] sm:$0xff] }
 0x3cf   :  { %4353 = vmatpush3.msra.mxu0 %v5616_v42  ;;  %4456 = vmatpush3.msra.mxu1 %v5718_v16  ;;  %v6089_v42 = vpop.f32.mrf.mxu1 }
 0x3d0   :  { %4354 = vmatprep.subr.mxu0 %v4949_v0  ;;  %4487 = vmatprep.mubr.msk.f32.mxu1 %vm4950_vm0, %v4949_v0 }
 0x3d1   :  { %4355 = vmatpush3.msra.mxu0 %v5622_v43  ;;  %4457 = vmatprep.subr.mxu1 %v4949_v0  ;;  %v4349_v43 = vpop.f32.mrf.mxu1 }
 0x3d2   :  { %4356 = vmatprep.subr.mxu0 %v4949_v0  ;;  %4458 = vmatpush3.msra.mxu1 %v5722_v18  ;;  %v6337_v43 = vld [vmem:[#allocation10 + $0x18] sm:$0xff] }
 0x3d3   :  { %4357 = vmatpush3.msra.mxu0 %v5626_v44  ;;  %4459 = vmatprep.subr.mxu1 %v4949_v0  ;;  %v2144_v44 = vld [vmem:[#allocation4 + $0x10] sm:$0xff] }
 0x3d4   :  { %4358 = vmatprep.subr.mxu0 %v4949_v0  ;;  %4460 = vmatpush3.msra.mxu1 %v5727_v20 }
 0x3d5   :  { %4359 = vmatpush3.msra.mxu0 %v5630_v45  ;;  %4461 = vmatprep.subr.mxu1 %v4949_v0  ;;  %v6114_v45 = vld [vmem:[#allocation7 + $0x78] sm:$0xff] }
 0x3d6   :  { %4360 = vmatprep.subr.mxu0 %v4949_v0  ;;  %4462 = vmatpush3.msra.mxu1 %v5733_v24 }
 0x3d7   :  { %4361 = vmatpush3.msra.mxu0 %v5634_v46  ;;  %4463 = vmatprep.subr.mxu1 %v4949_v0  ;;  %v6119_v46 = vld [vmem:[#allocation7 + $0x70] sm:$0xff] }
 0x3d8   :  { %4362 = vmatprep.subr.mxu0 %v4949_v0  ;;  %4464 = vmatpush3.msra.mxu1 %v5737_v26  ;;  %v6182_v26 = vld [vmem:[#allocation9 + $0x78] sm:$0xff] }
 0x3d9   :  { %4363 = vmatpush3.msra.mxu0 %v5642_v48  ;;  %4465 = vmatprep.subr.mxu1 %v4949_v0  ;;  %v6123_v48 = vld [vmem:[#allocation7 + $0x68] sm:$0xff] }
 0x3da   :  { %4364 = vmatprep.subr.mxu0 %v4949_v0  ;;  %4466 = vmatpush3.msra.mxu1 %v5741_v28 }
 0x3db   :  { %4365 = vmatpush3.msra.mxu0 %v5650_v51  ;;  %4467 = vmatprep.subr.mxu1 %v4949_v0  ;;  %v6127_v51 = vld [vmem:[#allocation7 + $0x60] sm:$0xff] }
 0x3dc   :  { %4366 = vmatprep.subr.mxu0 %v4949_v0  ;;  %4468 = vmatpush3.msra.mxu1 %v5745_v30  ;;  %v6184_v30 = vld [vmem:[#allocation9 + $0x70] sm:$0xff] }
 0x3dd   :  { %4367 = vmatpush3.msra.mxu0 %v5658_v53  ;;  %4469 = vmatprep.subr.mxu1 %v4949_v0  ;;  %v6131_v53 = vld [vmem:[#allocation7 + $0x58] sm:$0xff] }
 0x3de   :  { %4368 = vmatprep.subr.mxu0 %v4949_v0  ;;  %4470 = vmatpush3.msra.mxu1 %v5752_v56  ;;  %v6190_v56 = vld [vmem:[#allocation9 + $0x68] sm:$0xff] }
 0x3df   :  { %4369 = vmatpush3.msra.mxu0 %v5666_v55  ;;  %4471 = vmatprep.subr.mxu1 %v4949_v0  ;;  %v6135_v55 = vld [vmem:[#allocation7 + $0x50] sm:$0xff] }
 0x3e0   :  { %4370 = vmatprep.subr.mxu0 %v4949_v0  ;;  %4472 = vmatpush3.msra.mxu1 %v5756_v1  ;;  %v6194_v1 = vld [vmem:[#allocation9 + $0x60] sm:$0xff] }
 0x3e1   :  { %4371 = vmatpush3.msra.mxu0 %v5674_v58  ;;  %4473 = vmatprep.subr.mxu1 %v4949_v0  ;;  %v6139_v58 = vld [vmem:[#allocation7 + $0x48] sm:$0xff] }
 0x3e2   :  { %4372 = vmatprep.subr.mxu0 %v4949_v0  ;;  %4474 = vmatpush3.msra.mxu1 %v5760_v3  ;;  %v6198_v3 = vld [vmem:[#allocation9 + $0x58] sm:$0xff] }
 0x3e3   :  { %4373 = vmatpush3.msra.mxu0 %v5682_v60  ;;  %4475 = vmatprep.subr.mxu1 %v4949_v0 }
 0x3e4   :  { %4374 = vmatprep.subr.mxu0 %v4949_v0  ;;  %4476 = vmatpush3.msra.mxu1 %v5764_v5  ;;  %v6202_v5 = vld [vmem:[#allocation9 + $0x50] sm:$0xff] }
 0x3e5   :  { %4375 = vmatpush3.msra.mxu0 %v5690_v62  ;;  %4477 = vmatprep.subr.mxu1 %v4949_v0 }
 0x3e6   :  { %4376 = vmatprep.subr.mxu0 %v4949_v0  ;;  %4478 = vmatpush3.msra.mxu1 %v5768_v7 }
 0x3e7   :  { %4377 = vmatpush3.msra.mxu0 %v5698_v33  ;;  %4479 = vmatprep.subr.mxu1 %v4949_v0 }
 0x3e8   :  { %4378 = vmatprep.subr.mxu0 %v4949_v0  ;;  %4480 = vmatpush3.msra.mxu1 %v5772_v9  ;;  %v6210_v9 = vld [vmem:[#allocation9 + $0x48] sm:$0xff] }
 0x3e9   :  { %4379 = vmatpush3.msra.mxu0 %v5706_v8  ;;  %4481 = vmatprep.subr.mxu1 %v4949_v0 }
 0x3ea   :  { %4380 = vmatprep.subr.mxu0 %v4949_v0  ;;  %4482 = vmatpush3.msra.mxu1 %v5776_v11  ;;  %v6212_v11 = vld [vmem:[#allocation7 + $0x40] sm:$0xff] }
 0x3eb   :  { %4381 = vmatpush3.msra.mxu0 %v5714_v12  ;;  %4483 = vmatprep.subr.mxu1 %v4949_v0 }
 0x3ec   :  { %4420 = vmatprep.subr.mxu0 %v4949_v0  ;;  %4484 = vmatpush3.msra.mxu1 %v5780_v27 }
 0x3ed   :  { %4485 = vmatprep.subr.mxu1 %v4949_v0 }
 0x3ee   :  { %4486 = vmatpush3.msra.mxu1 %v5784_v29  ;;  %v6218_v29 = vld [vmem:[#allocation9 + $0x40] sm:$0xff] }
 0x3ef   :  { %4488 = vmatmul.mubr.f32.vlgmr.msra.gmra.mxu1 %v2144_v44  ;;  %4525 = vmatprep.subr.mxu1 %v4949_v0  ;;  %v6341_v44 = vld [vmem:[#allocation10 + $0x10] sm:$0xff] }
 0x3f0   :  { %4557 = vmatprep.mubr.msk.f32.mxu1 %vm4950_vm0, %v4949_v0  ;;  %4526 = vmatpush3.msra.mxu1 %v6114_v45 }
 0x3f1   :  { %4527 = vmatprep.subr.mxu1 %v4949_v0 }
 0x3f2   :  { %4528 = vmatpush3.msra.mxu1 %v6119_v46 }
 0x3f3   :  { %4529 = vmatprep.subr.mxu1 %v4949_v0 }
 0x3f4   :  { %4530 = vmatpush3.msra.mxu1 %v6123_v48 }
 0x3f5   :  { %4531 = vmatprep.subr.mxu1 %v4949_v0 }
 0x3f6   :  { %4532 = vmatpush3.msra.mxu1 %v6127_v51 }
 0x3f7   :  { %4533 = vmatprep.subr.mxu1 %v4949_v0 }
 0x3f8   :  { %4534 = vmatpush3.msra.mxu1 %v6131_v53 }
 0x3f9   :  { %4535 = vmatprep.subr.mxu1 %v4949_v0 }
 0x3fa   :  { %4536 = vmatpush3.msra.mxu1 %v6135_v55 }
 0x3fb   :  { %4537 = vmatprep.subr.mxu1 %v4949_v0 }
 0x3fc   :  { %4538 = vmatpush3.msra.mxu1 %v6139_v58 }
 0x3fd   :  { %4539 = vmatprep.subr.mxu1 %v4949_v0 }
 0x3fe   :  { %4540 = vmatpush3.msra.mxu1 %v6212_v11 }
 0x3ff   :  { %4541 = vmatprep.subr.mxu1 %v4949_v0 }
 0x46a   :  { %v1691_v60 = vpop.f32.mrf.mxu0 }
 0x46b   :  { %v1762_v62 = vadd.f32 %v5996_v31, %v1691_v60  ;;  %v6284_v31 = vld [vmem:[#allocation10 + $0x78] sm:$0xff]  ;;  %v6345_v60 = vld [vmem:[#allocation10 + $0x8] sm:$0xff] }
 0x46c   :  { %v4244_v33 = vpop.f32.mrf.mxu0 }
 0x46d   :  { %v1772_v8 = vadd.f32 %v6001_v17, %v1762_v62  ;;  %v6349_v62 = vld [vmem:[#allocation10] sm:$0xff]  ;;  %v2514_v33 = vld [vmem:[#allocation4 + $0x8] sm:$0xff] }
 0x46f   :  { %4798 = vtanh.f32 %v1772_v8  ;;  %v6398_v8 = vld [vmem:[#allocation12 + $0x68] sm:$0xff] }
 0x47c   :  { %v4799_v12 = vpop.eup %4798 }
 0x47d   :  { %1959 = vst [vmem:[#allocation13 + $0x40] sm:$0xff] %v4799_v12  ;;  %4383 = vmatmul.mubr.f32.vlgmr.msra.gmra.mxu0 %v4799_v12  ;;  %v6406_v12 = vld [vmem:[#allocation12 + $0x58] sm:$0xff] }
 0x47e   :  { %4421 = vmatpush3.msra.mxu0 %v5890_v6  ;;  %4452 = vmatprep.mubr.msk.f32.mxu0 %vm4950_vm0, %v4949_v0  ;;  %v6220_v6 = vld [vmem:[#allocation7 + $0x38] sm:$0xff] }
 0x47f   :  { %4422 = vmatprep.subr.mxu0 %v4949_v0  ;;  %4542 = vmatpush3.msra.mxu1 %v6220_v6 }
 0x480   :  { %4423 = vmatpush3.msra.mxu0 %v5894_v23  ;;  %4543 = vmatprep.subr.mxu1 %v4949_v0  ;;  %v6226_v23 = vld [vmem:[#allocation9 + $0x38] sm:$0xff] }
 0x481   :  { %4424 = vmatprep.subr.mxu0 %v4949_v0 }
 0x482   :  { %4425 = vmatpush3.msra.mxu0 %v5901_v25  ;;  %v6228_v25 = vld [vmem:[#allocation7 + $0x30] sm:$0xff] }
 0x483   :  { %4426 = vmatprep.subr.mxu0 %v4949_v0  ;;  %4544 = vmatpush3.msra.mxu1 %v6228_v25 }
 0x484   :  { %4427 = vmatpush3.msra.mxu0 %v5906_v35  ;;  %4545 = vmatprep.subr.mxu1 %v4949_v0  ;;  %v6234_v35 = vld [vmem:[#allocation9 + $0x30] sm:$0xff] }
 0x485   :  { %4428 = vmatprep.subr.mxu0 %v4949_v0 }
 0x486   :  { %4429 = vmatpush3.msra.mxu0 %v5910_v37  ;;  %v6236_v37 = vld [vmem:[#allocation7 + $0x28] sm:$0xff] }
 0x487   :  { %4430 = vmatprep.subr.mxu0 %v4949_v0  ;;  %4546 = vmatpush3.msra.mxu1 %v6236_v37 }
 0x488   :  { %4431 = vmatpush3.msra.mxu0 %v5914_v34  ;;  %4547 = vmatprep.subr.mxu1 %v4949_v0  ;;  %v6242_v34 = vld [vmem:[#allocation9 + $0x28] sm:$0xff] }
 0x489   :  { %4432 = vmatprep.subr.mxu0 %v4949_v0 }
 0x48a   :  { %4433 = vmatpush3.msra.mxu0 %v5918_v36  ;;  %v6244_v36 = vld [vmem:[#allocation7 + $0x20] sm:$0xff] }
 0x48b   :  { %4434 = vmatprep.subr.mxu0 %v4949_v0  ;;  %4548 = vmatpush3.msra.mxu1 %v6244_v36 }
 0x48c   :  { %v1874_v16 = vpop.f32.mrf.mxu0  ;;  %4435 = vmatpush3.msra.mxu0 %v5922_v38  ;;  %4549 = vmatprep.subr.mxu1 %v4949_v0  ;;  %v6250_v38 = vld [vmem:[#allocation9 + $0x20] sm:$0xff] }
 0x48d   :  { %v1945_v18 = vadd.f32 %v6089_v42, %v1874_v16  ;;  %4436 = vmatprep.subr.mxu0 %v4949_v0  ;;  %v6333_v42 = vld [vmem:[#allocation10 + $0x20] sm:$0xff]  ;;  %v6410_v16 = vld [vmem:[#allocation12 + $0x50] sm:$0xff] }
 0x48e   :  { %v4314_v20 = vpop.f32.mrf.mxu0  ;;  %4437 = vmatpush3.msra.mxu0 %v5926_v39  ;;  %v6208_v7 = vpop.f32.mrf.mxu1  ;;  %v6252_v39 = vld [vmem:[#allocation7 + $0x18] sm:$0xff] }
 0x48f   :  { %v1955_v24 = vadd.f32 %v6023_v52, %v1945_v18  ;;  %4438 = vmatprep.subr.mxu0 %v4949_v0  ;;  %4550 = vmatpush3.msra.mxu1 %v6252_v39  ;;  %v6414_v18 = vld [vmem:[#allocation12 + $0x48] sm:$0xff]  ;;  %v6418_v20 = vld [vmem:[#allocation12 + $0x40] sm:$0xff] }
 0x490   :  { %4439 = vmatpush3.msra.mxu0 %v5931_v49  ;;  %v4419_v27 = vpop.f32.mrf.mxu1  ;;  %4551 = vmatprep.subr.mxu1 %v4949_v0  ;;  %v6258_v49 = vld [vmem:[#allocation9 + $0x18] sm:$0xff] }
 0x491   :  { %4800 = vtanh.f32 %v1955_v24  ;;  %4440 = vmatprep.subr.mxu0 %v4949_v0  ;;  %v6422_v24 = vld [vmem:[#allocation12 + $0x38] sm:$0xff] }
 0x492   :  { %4441 = vmatpush3.msra.mxu0 %v5936_v54  ;;  %v6260_v54 = vld [vmem:[#allocation7 + $0x10] sm:$0xff] }
 0x493   :  { %4442 = vmatprep.subr.mxu0 %v4949_v0  ;;  %4552 = vmatpush3.msra.mxu1 %v6260_v54 }
 0x494   :  { %4443 = vmatpush3.msra.mxu0 %v5940_v57  ;;  %4553 = vmatprep.subr.mxu1 %v4949_v0  ;;  %v6266_v57 = vld [vmem:[#allocation9 + $0x10] sm:$0xff] }
 0x495   :  { %4444 = vmatprep.subr.mxu0 %v4949_v0 }
 0x496   :  { %4445 = vmatpush3.msra.mxu0 %v5944_v59  ;;  %v6268_v59 = vld [vmem:[#allocation7 + $0x8] sm:$0xff] }
 0x497   :  { %4446 = vmatprep.subr.mxu0 %v4949_v0  ;;  %4554 = vmatpush3.msra.mxu1 %v6268_v59 }
 0x498   :  { %4447 = vmatpush3.msra.mxu0 %v5948_v22  ;;  %4555 = vmatprep.subr.mxu1 %v4949_v0  ;;  %v6274_v22 = vld [vmem:[#allocation9 + $0x8] sm:$0xff] }
 0x499   :  { %4448 = vmatprep.subr.mxu0 %v4949_v0 }
 0x49a   :  { %4449 = vmatpush3.msra.mxu0 %v5952_v61  ;;  %v6276_v61 = vld [vmem:[#allocation7] sm:$0xff] }
 0x49b   :  { %4450 = vmatprep.subr.mxu0 %v4949_v0  ;;  %4556 = vmatpush3.msra.mxu1 %v6276_v61 }
 0x49c   :  { %4451 = vmatpush3.msra.mxu0 %v5956_v63  ;;  %4595 = vmatprep.subr.mxu1 %v4949_v0  ;;  %v6282_v63 = vld [vmem:[#allocation9] sm:$0xff] }
 0x49d   :  { %4490 = vmatprep.subr.mxu0 %v4949_v0  ;;  %4558 = vmatmul.mubr.f32.vlgmr.msra.gmra.mxu1 %v2331_v2 }
 0x49e   :  { %v4801_v28 = vpop.eup %4800  ;;  %4596 = vmatpush3.msra.mxu1 %v6284_v31  ;;  %4627 = vmatprep.mubr.msk.f32.mxu1 %vm4950_vm0, %v4949_v0 }
 0x49f   :  { %1960 = vst [vmem:[#allocation13 + $0x38] sm:$0xff] %v4801_v28  ;;  %4453 = vmatmul.mubr.f32.vlgmr.msra.gmra.mxu0 %v4801_v28  ;;  %4597 = vmatprep.subr.mxu1 %v4949_v0 }
 0x4a0   :  { %4491 = vmatpush3.msra.mxu0 %v6182_v26  ;;  %4522 = vmatprep.mubr.msk.f32.mxu0 %vm4950_vm0, %v4949_v0 }
 0x4a1   :  { %4492 = vmatprep.subr.mxu0 %v4949_v0  ;;  %4598 = vmatpush3.msra.mxu1 %v6287_v13 }
 0x4a2   :  { %4493 = vmatpush3.msra.mxu0 %v6184_v30  ;;  %4599 = vmatprep.subr.mxu1 %v4949_v0 }
 0x4a3   :  { %4494 = vmatprep.subr.mxu0 %v4949_v0  ;;  %4600 = vmatpush3.msra.mxu1 %v6292_v15 }
 0x4a4   :  { %4495 = vmatpush3.msra.mxu0 %v6190_v56  ;;  %4601 = vmatprep.subr.mxu1 %v4949_v0 }
 0x4a5   :  { %4496 = vmatprep.subr.mxu0 %v4949_v0  ;;  %4602 = vmatpush3.msra.mxu1 %v6298_v19 }
 0x4a6   :  { %4497 = vmatpush3.msra.mxu0 %v6194_v1  ;;  %4603 = vmatprep.subr.mxu1 %v4949_v0 }
 0x4a7   :  { %4498 = vmatprep.subr.mxu0 %v4949_v0  ;;  %4604 = vmatpush3.msra.mxu1 %v6302_v21 }
 0x4a8   :  { %4499 = vmatpush3.msra.mxu0 %v6198_v3  ;;  %4605 = vmatprep.subr.mxu1 %v4949_v0 }
 0x4a9   :  { %4500 = vmatprep.subr.mxu0 %v4949_v0  ;;  %4606 = vmatpush3.msra.mxu1 %v6306_v41 }
 0x4aa   :  { %4501 = vmatpush3.msra.mxu0 %v6202_v5  ;;  %4607 = vmatprep.subr.mxu1 %v4949_v0 }
 0x4ab   :  { %4502 = vmatprep.subr.mxu0 %v4949_v0  ;;  %4608 = vmatpush3.msra.mxu1 %v6310_v47 }
 0x4ac   :  { %4503 = vmatpush3.msra.mxu0 %v6210_v9  ;;  %4609 = vmatprep.subr.mxu1 %v4949_v0 }
 0x4ad   :  { %4504 = vmatprep.subr.mxu0 %v4949_v0  ;;  %4610 = vmatpush3.msra.mxu1 %v6317_v4 }
 0x4ae   :  { %4505 = vmatpush3.msra.mxu0 %v6218_v29  ;;  %4611 = vmatprep.subr.mxu1 %v4949_v0 }
 0x4af   :  { %4506 = vmatprep.subr.mxu0 %v4949_v0  ;;  %v6314_v50 = vpop.f32.mrf.mxu1  ;;  %4612 = vmatpush3.msra.mxu1 %v6321_v14 }
 0x4b0   :  { %4507 = vmatpush3.msra.mxu0 %v6226_v23  ;;  %4613 = vmatprep.subr.mxu1 %v4949_v0 }
 0x4b1   :  { %4508 = vmatprep.subr.mxu0 %v4949_v0  ;;  %v4489_v10 = vpop.f32.mrf.mxu1  ;;  %4614 = vmatpush3.msra.mxu1 %v6325_v32 }
 0x4b2   :  { %4509 = vmatpush3.msra.mxu0 %v6234_v35  ;;  %4615 = vmatprep.subr.mxu1 %v4949_v0 }
 0x4b3   :  { %4510 = vmatprep.subr.mxu0 %v4949_v0  ;;  %4616 = vmatpush3.msra.mxu1 %v6329_v40 }
 0x4b4   :  { %4511 = vmatpush3.msra.mxu0 %v6242_v34  ;;  %4617 = vmatprep.subr.mxu1 %v4949_v0 }
 0x4b5   :  { %4512 = vmatprep.subr.mxu0 %v4949_v0  ;;  %4618 = vmatpush3.msra.mxu1 %v6333_v42 }
 0x4b6   :  { %4513 = vmatpush3.msra.mxu0 %v6250_v38  ;;  %4619 = vmatprep.subr.mxu1 %v4949_v0 }
 0x4b7   :  { %4514 = vmatprep.subr.mxu0 %v4949_v0  ;;  %4620 = vmatpush3.msra.mxu1 %v6337_v43 }
 0x4b8   :  { %4515 = vmatpush3.msra.mxu0 %v6258_v49  ;;  %4621 = vmatprep.subr.mxu1 %v4949_v0 }
 0x4b9   :  { %4516 = vmatprep.subr.mxu0 %v4949_v0  ;;  %4622 = vmatpush3.msra.mxu1 %v6341_v44 }
 0x4ba   :  { %4517 = vmatpush3.msra.mxu0 %v6266_v57  ;;  %4623 = vmatprep.subr.mxu1 %v4949_v0 }
 0x4bb   :  { %4518 = vmatprep.subr.mxu0 %v4949_v0  ;;  %4624 = vmatpush3.msra.mxu1 %v6345_v60 }
 0x4bc   :  { %4519 = vmatpush3.msra.mxu0 %v6274_v22  ;;  %4625 = vmatprep.subr.mxu1 %v4949_v0 }
 0x4bd   :  { %4520 = vmatprep.subr.mxu0 %v4949_v0  ;;  %4626 = vmatpush3.msra.mxu1 %v6349_v62 }
 0x4be   :  { %4521 = vmatpush3.msra.mxu0 %v6282_v63  ;;  %4628 = vmatmul.mubr.f32.vlgmr.msra.gmra.mxu1 %v2514_v33 }
 0x4bf   :  { %4560 = vmatprep.subr.mxu0 %v4949_v0  ;;  %4665 = vmatprep.subr.mxu1 %v4949_v0 }
 0x4c0   :  { %4666 = vmatpush3.msra.mxu1 %v6114_v45  ;;  %4697 = vmatprep.mubr.msk.f32.mxu1 %vm4950_vm0, %v4949_v0 }
 0x4c1   :  { %4667 = vmatprep.subr.mxu1 %v4949_v0 }
 0x4c2   :  { %4668 = vmatpush3.msra.mxu1 %v6119_v46 }
 0x4c3   :  { %4669 = vmatprep.subr.mxu1 %v4949_v0 }
 0x4c4   :  { %4670 = vmatpush3.msra.mxu1 %v6123_v48 }
 0x4c5   :  { %4671 = vmatprep.subr.mxu1 %v4949_v0 }
 0x4c6   :  { %4672 = vmatpush3.msra.mxu1 %v6127_v51 }
 0x4c7   :  { %4673 = vmatprep.subr.mxu1 %v4949_v0 }
 0x4c8   :  { %4674 = vmatpush3.msra.mxu1 %v6131_v53  ;;  %v6390_v53 = vld [vmem:[#allocation12 + $0x78] sm:$0xff] }
 0x4c9   :  { %4675 = vmatprep.subr.mxu1 %v4949_v0 }
 0x4ca   :  { %4676 = vmatpush3.msra.mxu1 %v6135_v55 }
 0x4cb   :  { %4677 = vmatprep.subr.mxu1 %v4949_v0 }
 0x4cc   :  { %4678 = vmatpush3.msra.mxu1 %v6139_v58  ;;  %v6392_v58 = vld [vmem:[#allocation12 + $0x70] sm:$0xff] }
 0x4cd   :  { %4679 = vmatprep.subr.mxu1 %v4949_v0 }
 0x4ce   :  { %4680 = vmatpush3.msra.mxu1 %v6212_v11  ;;  %v6427_v11 = vld [vmem:[#allocation12 + $0x30] sm:$0xff] }
 0x4cf   :  { %4681 = vmatprep.subr.mxu1 %v4949_v0 }
 0x4d0   :  { %4682 = vmatpush3.msra.mxu1 %v6220_v6 }
 0x4d1   :  { %4683 = vmatprep.subr.mxu1 %v4949_v0 }
 0x4d2   :  { %4684 = vmatpush3.msra.mxu1 %v6228_v25  ;;  %v6432_v25 = vld [vmem:[#allocation12 + $0x28] sm:$0xff] }
 0x4d3   :  { %4685 = vmatprep.subr.mxu1 %v4949_v0 }
 0x4d4   :  { %4686 = vmatpush3.msra.mxu1 %v6236_v37  ;;  %v6436_v37 = vld [vmem:[#allocation12 + $0x20] sm:$0xff] }
 0x4d5   :  { %4687 = vmatprep.subr.mxu1 %v4949_v0 }
 0x4d6   :  { %4688 = vmatpush3.msra.mxu1 %v6244_v36  ;;  %v6440_v36 = vld [vmem:[#allocation12 + $0x18] sm:$0xff] }
 0x4d7   :  { %4689 = vmatprep.subr.mxu1 %v4949_v0 }
 0x4d8   :  { %4690 = vmatpush3.msra.mxu1 %v6252_v39  ;;  %v6448_v39 = vld [vmem:[#allocation12 + $0x8] sm:$0xff] }
 0x4d9   :  { %4691 = vmatprep.subr.mxu1 %v4949_v0 }
 0x4da   :  { %4692 = vmatpush3.msra.mxu1 %v6260_v54  ;;  %v6452_v54 = vld [vmem:[#allocation12] sm:$0xff] }
 0x4db   :  { %4693 = vmatprep.subr.mxu1 %v4949_v0 }
 0x4dc   :  { %4694 = vmatpush3.msra.mxu1 %v6268_v59 }
 0x4dd   :  { %4695 = vmatprep.subr.mxu1 %v4949_v0 }
 0x4de   :  { %4696 = vmatpush3.msra.mxu1 %v6276_v61 }
 0x4df   :  { %4735 = vmatprep.subr.mxu1 %v4949_v0 }
 0x53d   :  { %v2061_v45 = vpop.f32.mrf.mxu0 }
 0x53e   :  { %v2132_v46 = vadd.f32 %v6208_v7, %v2061_v45 }
 0x53f   :  { %v4384_v48 = vpop.f32.mrf.mxu0 }
 0x540   :  { %v2142_v51 = vadd.f32 %v6001_v17, %v2132_v46  ;;  %v6402_v17 = vld [vmem:[#allocation12 + $0x60] sm:$0xff] }
 0x542   :  { %4802 = vtanh.f32 %v2142_v51 }
 0x54f   :  { %v4803_v55 = vpop.eup %4802 }
 0x550   :  { %2329 = vst [vmem:[#allocation13 + $0x50] sm:$0xff] %v4803_v55  ;;  %4523 = vmatmul.mubr.f32.vlgmr.msra.gmra.mxu0 %v4803_v55 }
 0x551   :  { %4561 = vmatpush3.msra.mxu0 %v6390_v53  ;;  %4592 = vmatprep.mubr.msk.f32.mxu0 %vm4950_vm0, %v4949_v0 }
 0x552   :  { %4562 = vmatprep.subr.mxu0 %v4949_v0 }
 0x553   :  { %4563 = vmatpush3.msra.mxu0 %v6392_v58 }
 0x554   :  { %4564 = vmatprep.subr.mxu0 %v4949_v0 }
 0x555   :  { %4565 = vmatpush3.msra.mxu0 %v6398_v8 }
 0x556   :  { %4566 = vmatprep.subr.mxu0 %v4949_v0 }
 0x557   :  { %4567 = vmatpush3.msra.mxu0 %v6402_v17 }
 0x558   :  { %4568 = vmatprep.subr.mxu0 %v4949_v0 }
 0x559   :  { %4569 = vmatpush3.msra.mxu0 %v6406_v12 }
 0x55a   :  { %4570 = vmatprep.subr.mxu0 %v4949_v0 }
 0x55b   :  { %4571 = vmatpush3.msra.mxu0 %v6410_v16 }
 0x55c   :  { %4572 = vmatprep.subr.mxu0 %v4949_v0 }
 0x55d   :  { %4573 = vmatpush3.msra.mxu0 %v6414_v18 }
 0x55e   :  { %4574 = vmatprep.subr.mxu0 %v4949_v0 }
 0x55f   :  { %v2244_v28 = vpop.f32.mrf.mxu0  ;;  %4575 = vmatpush3.msra.mxu0 %v6418_v20 }
 0x560   :  { %v2315_v7 = vadd.f32 %v6314_v50, %v2244_v28  ;;  %4576 = vmatprep.subr.mxu0 %v4949_v0 }
 0x561   :  { %v4454_v27 = vpop.f32.mrf.mxu0  ;;  %4577 = vmatpush3.msra.mxu0 %v6422_v24 }
 0x562   :  { %v2325_v6 = vadd.f32 %v6023_v52, %v2315_v7  ;;  %4578 = vmatprep.subr.mxu0 %v4949_v0  ;;  %v6444_v52 = vld [vmem:[#allocation12 + $0x10] sm:$0xff] }
 0x563   :  { %4579 = vmatpush3.msra.mxu0 %v6427_v11 }
 0x564   :  { %4804 = vtanh.f32 %v2325_v6  ;;  %4580 = vmatprep.subr.mxu0 %v4949_v0 }
 0x565   :  { %4581 = vmatpush3.msra.mxu0 %v6432_v25 }
 0x566   :  { %4582 = vmatprep.subr.mxu0 %v4949_v0 }
 0x567   :  { %4583 = vmatpush3.msra.mxu0 %v6436_v37 }
 0x568   :  { %4584 = vmatprep.subr.mxu0 %v4949_v0 }
 0x569   :  { %4585 = vmatpush3.msra.mxu0 %v6440_v36 }
 0x56a   :  { %4586 = vmatprep.subr.mxu0 %v4949_v0 }
 0x56b   :  { %4587 = vmatpush3.msra.mxu0 %v6444_v52 }
 0x56c   :  { %4588 = vmatprep.subr.mxu0 %v4949_v0 }
 0x56d   :  { %4589 = vmatpush3.msra.mxu0 %v6448_v39 }
 0x56e   :  { %4590 = vmatprep.subr.mxu0 %v4949_v0 }
 0x56f   :  { %4591 = vmatpush3.msra.mxu0 %v6452_v54 }
 0x570   :  { %4630 = vmatprep.subr.mxu0 %v4949_v0 }
 0x571   :  { %v4805_v59 = vpop.eup %4804 }
 0x572   :  { %2330 = vst [vmem:[#allocation13 + $0x28] sm:$0xff] %v4805_v59  ;;  %4593 = vmatmul.mubr.f32.vlgmr.msra.gmra.mxu0 %v4805_v59 }
 0x573   :  { %4631 = vmatpush3.msra.mxu0 %v6182_v26  ;;  %4662 = vmatprep.mubr.msk.f32.mxu0 %vm4950_vm0, %v4949_v0  ;;  %v2501_v26 = vpop.f32.mrf.mxu1 }
 0x574   :  { %4632 = vmatprep.subr.mxu0 %v4949_v0 }
 0x575   :  { %4633 = vmatpush3.msra.mxu0 %v6184_v30  ;;  %v4559_v30 = vpop.f32.mrf.mxu1 }
 0x576   :  { %4634 = vmatprep.subr.mxu0 %v4949_v0 }
 0x577   :  { %4635 = vmatpush3.msra.mxu0 %v6190_v56  ;;  %v2701_v56 = vld [vmem:[#allocation4 + $0x38] sm:$0xff] }
 0x578   :  { %4636 = vmatprep.subr.mxu0 %v4949_v0  ;;  %4698 = vmatmul.mubr.f32.vlgmr.msra.gmra.mxu1 %v2701_v56 }
 0x579   :  { %4637 = vmatpush3.msra.mxu0 %v6194_v1  ;;  %4736 = vmatpush3.msra.mxu1 %v6284_v31 }
 0x57a   :  { %4638 = vmatprep.subr.mxu0 %v4949_v0  ;;  %4767 = vmatprep.mubr.msk.f32.mxu1 %vm4950_vm0, %v4949_v0 }
 0x57b   :  { %4639 = vmatpush3.msra.mxu0 %v6198_v3  ;;  %4737 = vmatprep.subr.mxu1 %v4949_v0 }
 0x57c   :  { %4640 = vmatprep.subr.mxu0 %v4949_v0  ;;  %4738 = vmatpush3.msra.mxu1 %v6287_v13 }
 0x57d   :  { %4641 = vmatpush3.msra.mxu0 %v6202_v5  ;;  %4739 = vmatprep.subr.mxu1 %v4949_v0  ;;  %v2884_v5 = vld [vmem:[#allocation4] sm:$0xff] }
 0x57e   :  { %4642 = vmatprep.subr.mxu0 %v4949_v0  ;;  %4740 = vmatpush3.msra.mxu1 %v6292_v15  ;;  %v2684_v1 = vpop.f32.mrf.mxu1 }
 0x57f   :  { %4643 = vmatpush3.msra.mxu0 %v6210_v9  ;;  %4741 = vmatprep.subr.mxu1 %v4949_v0 }
 0x580   :  { %4644 = vmatprep.subr.mxu0 %v4949_v0  ;;  %4742 = vmatpush3.msra.mxu1 %v6298_v19  ;;  %v4629_v3 = vpop.f32.mrf.mxu1 }
 0x581   :  { %4645 = vmatpush3.msra.mxu0 %v6218_v29  ;;  %4743 = vmatprep.subr.mxu1 %v4949_v0  ;;  %v3102_v29 = vld [vmem:[%s6570_s3] ss:$0 sm:$0xff] }
 0x582   :  { %4646 = vmatprep.subr.mxu0 %v4949_v0  ;;  %4744 = vmatpush3.msra.mxu1 %v6302_v21 }
 0x583   :  { %4647 = vmatpush3.msra.mxu0 %v6226_v23  ;;  %4745 = vmatprep.subr.mxu1 %v4949_v0 }
 0x584   :  { %4648 = vmatprep.subr.mxu0 %v4949_v0  ;;  %4746 = vmatpush3.msra.mxu1 %v6306_v41 }
 0x585   :  { %4649 = vmatpush3.msra.mxu0 %v6234_v35  ;;  %4747 = vmatprep.subr.mxu1 %v4949_v0 }
 0x586   :  { %4650 = vmatprep.subr.mxu0 %v4949_v0  ;;  %4748 = vmatpush3.msra.mxu1 %v6310_v47 }
 0x587   :  { %4651 = vmatpush3.msra.mxu0 %v6242_v34  ;;  %4749 = vmatprep.subr.mxu1 %v4949_v0 }
 0x588   :  { %4652 = vmatprep.subr.mxu0 %v4949_v0  ;;  %4750 = vmatpush3.msra.mxu1 %v6317_v4 }
 0x589   :  { %4653 = vmatpush3.msra.mxu0 %v6250_v38  ;;  %4751 = vmatprep.subr.mxu1 %v4949_v0 }
 0x58a   :  { %4654 = vmatprep.subr.mxu0 %v4949_v0  ;;  %4752 = vmatpush3.msra.mxu1 %v6321_v14 }
 0x58b   :  { %4655 = vmatpush3.msra.mxu0 %v6258_v49  ;;  %4753 = vmatprep.subr.mxu1 %v4949_v0 }
 0x58c   :  { %4656 = vmatprep.subr.mxu0 %v4949_v0  ;;  %4754 = vmatpush3.msra.mxu1 %v6325_v32 }
 0x58d   :  { %4657 = vmatpush3.msra.mxu0 %v6266_v57  ;;  %4755 = vmatprep.subr.mxu1 %v4949_v0  ;;  %v3103_v57 = vld [vmem:[%s6573_s6] ss:$0 sm:$0xff]  ;;  %s4951_s6 = smov [#allocation13]  }
 0x58e   :  { %4658 = vmatprep.subr.mxu0 %v4949_v0  ;;  %4756 = vmatpush3.msra.mxu1 %v6329_v40  ;;  %s3076_s11 = sshll.u32 %s4951_s6, 4  ;;  %s3077_s11 = int_to_ptr.vmem [resolvable:$true] %s3076_s11 }
 0x58f   :  { %4659 = vmatpush3.msra.mxu0 %v6274_v22  ;;  %4757 = vmatprep.subr.mxu1 %v4949_v0  ;;  %s4914_s12 = scalar_lea.vmem %s3077_s11, 2048  ;;  %p4919_p12 = scmp.lt.s32.totalorder %s3077_s11, %s3077_s11 }
 0x590   :  { %4660 = vmatprep.subr.mxu0 %v4949_v0  ;;  %4758 = vmatpush3.msra.mxu1 %v6333_v42  ;;  %p4915_p11 = scmp.ne.s32.totalorder %s3077_s11, %s4914_s12  ;;  %p4920_p13 = scmp.lt.s32.totalorder %s4914_s12, %s4914_s12 }
 0x591   :  { %4661 = vmatpush3.msra.mxu0 %v6282_v63  ;;  %4759 = vmatprep.subr.mxu1 %v4949_v0 }
 0x592   :  { %4700 = vmatprep.subr.mxu0 %v4949_v0  ;;  %4760 = vmatpush3.msra.mxu1 %v6337_v43  ;;  %p4921_p0 = por %p4920_p13, %p4919_p12 }
 0x593   :  { %4761 = vmatprep.subr.mxu1 %v4949_v0 }
 0x594   :  { %4762 = vmatpush3.msra.mxu1 %v6341_v44  ;;  %p4922_p1 = pnand %p4921_p0, %p4915_p11 }
 0x595   :  { %4763 = vmatprep.subr.mxu1 %v4949_v0 }
 0x596   :  { %4764 = vmatpush3.msra.mxu1 %v6345_v60 }
 0x597   :  { %4765 = vmatprep.subr.mxu1 %v4949_v0 }
 0x598   :  { %4766 = vmatpush3.msra.mxu1 %v6349_v62 }
 0x599   :  { %4768 = vmatmul.mubr.f32.vlgmr.msra.gmra.mxu1 %v2884_v5 }
 0x610   :  { %v2431_v9 = vpop.f32.mrf.mxu0 }
 0x611   :  { %v2502_v23 = vadd.f32 %v2501_v26, %v2431_v9 }
 0x612   :  { %v4524_v35 = vpop.f32.mrf.mxu0 }
 0x613   :  { %v2512_v34 = vadd.f32 %v3102_v29, %v2502_v23 }
 0x615   :  { %4806 = vtanh.f32 %v2512_v34 }
 0x622   :  { %v4807_v38 = vpop.eup %4806 }
 0x623   :  { %2699 = vst [vmem:[#allocation13 + $0x60] sm:$0xff] %v4807_v38  ;;  %4663 = vmatmul.mubr.f32.vlgmr.msra.gmra.mxu0 %v4807_v38 }
 0x624   :  { %4701 = vmatpush3.msra.mxu0 %v6390_v53  ;;  %4732 = vmatprep.mubr.msk.f32.mxu0 %vm4950_vm0, %v4949_v0 }
 0x625   :  { %4702 = vmatprep.subr.mxu0 %v4949_v0 }
 0x626   :  { %4703 = vmatpush3.msra.mxu0 %v6392_v58 }
 0x627   :  { %4704 = vmatprep.subr.mxu0 %v4949_v0 }
 0x628   :  { %4705 = vmatpush3.msra.mxu0 %v6398_v8 }
 0x629   :  { %4706 = vmatprep.subr.mxu0 %v4949_v0 }
 0x62a   :  { %4707 = vmatpush3.msra.mxu0 %v6402_v17 }
 0x62b   :  { %4708 = vmatprep.subr.mxu0 %v4949_v0 }
 0x62c   :  { %4709 = vmatpush3.msra.mxu0 %v6406_v12 }
 0x62d   :  { %4710 = vmatprep.subr.mxu0 %v4949_v0 }
 0x62e   :  { %4711 = vmatpush3.msra.mxu0 %v6410_v16 }
 0x62f   :  { %4712 = vmatprep.subr.mxu0 %v4949_v0 }
 0x630   :  { %4713 = vmatpush3.msra.mxu0 %v6414_v18 }
 0x631   :  { %4714 = vmatprep.subr.mxu0 %v4949_v0 }
 0x632   :  { %v2614_v49 = vpop.f32.mrf.mxu0  ;;  %4715 = vmatpush3.msra.mxu0 %v6418_v20 }
 0x633   :  { %v2685_v22 = vadd.f32 %v2684_v1, %v2614_v49  ;;  %4716 = vmatprep.subr.mxu0 %v4949_v0 }
 0x634   :  { %v4594_v61 = vpop.f32.mrf.mxu0  ;;  %4717 = vmatpush3.msra.mxu0 %v6422_v24 }
 0x635   :  { %v2695_v63 = vadd.f32 %v3103_v57, %v2685_v22  ;;  %4718 = vmatprep.subr.mxu0 %v4949_v0 }
 0x636   :  { %4719 = vmatpush3.msra.mxu0 %v6427_v11 }
 0x637   :  { %4808 = vtanh.f32 %v2695_v63  ;;  %4720 = vmatprep.subr.mxu0 %v4949_v0 }
 0x638   :  { %4721 = vmatpush3.msra.mxu0 %v6432_v25  ;;  %v2871_v31 = vpop.f32.mrf.mxu1 }
 0x639   :  { %4722 = vmatprep.subr.mxu0 %v4949_v0 }
 0x63a   :  { %4723 = vmatpush3.msra.mxu0 %v6436_v37  ;;  %v4699_v13 = vpop.f32.mrf.mxu1 }
 0x63b   :  { %4724 = vmatprep.subr.mxu0 %v4949_v0 }
 0x63c   :  { %4725 = vmatpush3.msra.mxu0 %v6440_v36 }
 0x63d   :  { %4726 = vmatprep.subr.mxu0 %v4949_v0 }
 0x63e   :  { %4727 = vmatpush3.msra.mxu0 %v6444_v52 }
 0x63f   :  { %4728 = vmatprep.subr.mxu0 %v4949_v0 }
 0x640   :  { %4729 = vmatpush3.msra.mxu0 %v6448_v39 }
 0x641   :  { %4730 = vmatprep.subr.mxu0 %v4949_v0 }
 0x642   :  { %4731 = vmatpush3.msra.mxu0 %v6452_v54 }
 0x644   :  { %v4809_v2 = vpop.eup %4808 }
 0x645   :  { %2700 = vst [vmem:[#allocation13 + $0x18] sm:$0xff] %v4809_v2  ;;  %4733 = vmatmul.mubr.f32.vlgmr.msra.gmra.mxu0 %v4809_v2 }
 0x659   :  { %v3054_v15 = vpop.f32.mrf.mxu1 }
 0x65b   :  { %v4769_v19 = vpop.f32.mrf.mxu1 }
 0x6e3   :  { %v2801_v21 = vpop.f32.mrf.mxu0 }
 0x6e4   :  { %v2872_v41 = vadd.f32 %v2871_v31, %v2801_v21 }
 0x6e5   :  { %v4664_v47 = vpop.f32.mrf.mxu0 }
 0x6e6   :  { %v2882_v50 = vadd.f32 %v3102_v29, %v2872_v41 }
 0x6e8   :  { %4810 = vtanh.f32 %v2882_v50 }
 0x6f5   :  { %v4811_v4 = vpop.eup %4810 }
 0x6f6   :  { %3069 = vst [vmem:[#allocation13 + $0x70] sm:$0xff] %v4811_v4 }
 0x705   :  { %v2984_v10 = vpop.f32.mrf.mxu0 }
 0x706   :  { %v3055_v14 = vadd.f32 %v3054_v15, %v2984_v10 }
 0x707   :  { %v4734_v32 = vpop.f32.mrf.mxu0 }
 0x708   :  { %v3065_v0 = vadd.f32 %v3103_v57, %v3055_v14 }
 0x70a   :  { %4812 = vtanh.f32 %v3065_v0 }
 0x717   :  { %v4813_v40 = vpop.eup %4812 }
 0x718   :  { %3070 = vst [vmem:[#allocation13 + $0x8] sm:$0xff] %v4813_v40 }
 0x719   :  { %4925 = shalt.err (!%p4922_p1)
}
 0x71a   :  { %s4952_s13 = smov 256   ;;  %s4953_s14 = smov 16  }
 0x71b   :  { %3082 = dma.vmem_to_hbm [thread:$0]  %s3077_s11, 2048, %s6574_s7, [#allocation6], %s4952_s13, %s4952_s13, %s4953_s14  }
 0x71c   :  { %4940 = dma.done.wait [#allocation6], 2048  }
 0x71d   :  { %4941 = vsyncadd [#allocation6], 4294965248 }
 0x71e   :  { %3086 = vsyncpa [#allocation5], 1 }
 0x71f   :  { %3087 = vsyncpa [#allocation8], 1 }
 0x720   :  { %3088 = vsyncpa [#allocation11], 1 }
 0x721   :  { %3089 = vsyncpa [#allocation6], 1 }

</bundles_post_ra>
